<compile_context>
chip_gen: v7x
topology: tpu7x:2x2x1
jax: 0.10.0
libtpu: 0.0.40
codegen_flags: <defaults>
</compile_context>

<pallas_src>
import jax
import jax.numpy as jnp
import numpy as np
from jax import lax
from jax.experimental import pallas as pl
from jax.experimental.pallas import tpu as pltpu

EPS = 1e-5


def _round_up(x, m):
    return (x + m - 1) // m * m


def _fold_bn(gamma, beta, mean, var):
    scale = gamma / jnp.sqrt(var + EPS)
    bias = beta - mean * scale
    return scale, bias


def _make_basic_block_kernel(H, W, Cp):
    """Fused conv-bn-relu-conv-bn-add-relu on one batch element.

    Activation layout: zero-padded flat frame (Hp*Wp, Cp): flattened padded spatial on
    sublanes, channels on lanes.  Output pixel (h, w) lives at frame index
    q = (h+1)*Wp + (w+1); all output pixels sit in the contiguous span [q0, q0+L).
    Tap (ky, kx) of a 3x3 conv reads the frame shifted by (ky-1)*Wp + (kx-1), i.e. the
    slice starting at ky*Wp + kx — a sublane-only shift, no lane relayout.
    """
    Wp = W + 2
    Hp = H + 2
    HpWp = Hp * Wp
    q0 = Wp + 1                    # frame index of output pixel (0, 0)
    L = (H - 1) * Wp + W           # contiguous span covering every output pixel
    tail = HpWp - q0 - L           # = W + 3

    def conv3x3(src_ref, w_ref):
        # 9 shift-and-accumulate bf16 MXU matmuls, f32 accumulation.
        acc = None
        for t in range(9):
            ky, kx = t // 3, t % 3
            xs = src_ref[pl.ds(ky * Wp + kx, L), :]                       # (L, Cp) bf16
            d = jnp.dot(xs, w_ref[t], preferred_element_type=jnp.float32)  # (L, Cp) f32
            acc = d if acc is None else acc + d
        return acc

    def kernel(x_ref, w1_ref, w2_ref, b1_ref, b2_ref, mask_ref, out_ref, yp_ref):
        # Zero only the never-written border rows of the intermediate frame (keeps conv2's
        # zero padding valid).  Cheap (~2*(W+2) rows) and done every step so the kernel is
        # correct under megacore partitioning of the batch grid.
        yp_ref[pl.ds(0, q0), :] = jnp.zeros((q0, Cp), jnp.bfloat16)
        yp_ref[pl.ds(q0 + L, tail), :] = jnp.zeros((tail, Cp), jnp.bfloat16)

        mask = mask_ref[...]                                   # (L, 1): 1.0 on real columns

        # ---- conv1 (BN1 scale folded into w1) + bias + ReLU --------------------------------
        y = jnp.maximum(conv3x3(x_ref, w1_ref) + b1_ref[...], 0.0) * mask
        yp_ref[pl.ds(q0, L), :] = y.astype(jnp.bfloat16)

        # ---- conv2 (BN2 scale folded into w2) + bias + identity + ReLU ---------------------
        identity = x_ref[pl.ds(q0, L), :].astype(jnp.float32)
        z = conv3x3(yp_ref, w2_ref) + b2_ref[...] + identity

        out_ref[pl.ds(0, q0), :] = jnp.zeros((q0, Cp), jnp.float32)
        out_ref[pl.ds(q0, L), :] = jnp.maximum(z, 0.0)
        out_ref[pl.ds(q0 + L, tail), :] = jnp.zeros((tail, Cp), jnp.float32)

    return kernel


@jax.jit
def basic_block_forward(x_nchw, w1, w2, g1, b1, m1, v1, g2, b2, m2, v2):
    N, Cin, H, W = x_nchw.shape
    Cout = w1.shape[0]
    assert Cin == Cout, "identity-shortcut config requires Cin == Cout (stride=1, no downsample)"
    C = Cin
    Cp = _round_up(C, 8)           # channel pad guardrail; real ResNet C (>=64) is untouched
    Hp, Wp = H + 2, W + 2
    HpWp = Hp * Wp
    q0 = Wp + 1
    L = (H - 1) * Wp + W

    s1, bb1 = _fold_bn(g1, b1, m1, v1)
    s2, bb2 = _fold_bn(g2, b2, m2, v2)

    # Fold BN scale into the conv weights; OIHW -> (ky*3+kx, ci, co), channel-padded, bf16.
    def prep_w(w, scale):
        w = w * scale[:, None, None, None]
        w = jnp.transpose(w, (2, 3, 1, 0)).reshape(9, C, C)
        w = jnp.pad(w, ((0, 0), (0, Cp - C), (0, Cp - C)))
        return w.astype(jnp.bfloat16)

    w1m = prep_w(w1, s1)
    w2m = prep_w(w2, s2)
    b1p = jnp.pad(bb1, (0, Cp - C)).reshape(1, Cp).astype(jnp.float32)
    b2p = jnp.pad(bb2, (0, Cp - C)).reshape(1, Cp).astype(jnp.float32)

    # NCHW -> zero-padded NHWC frame (channels on lanes), flattened spatial, bf16.
    x_nhwc = jnp.transpose(x_nchw, (0, 2, 3, 1))
    x_pad = jnp.pad(x_nhwc, ((0, 0), (1, 1), (1, 1), (0, Cp - C)))
    x_flat = x_pad.reshape(N, HpWp, Cp).astype(jnp.bfloat16)

    # 1.0 on real output columns of the span, 0.0 on the inter-row padding columns.
    col = (jnp.arange(L) + q0) % Wp
    col_mask = ((col >= 1) & (col <= W)).astype(jnp.float32).reshape(L, 1)

    kernel = _make_basic_block_kernel(H, W, Cp)

    out = pl.pallas_call(
        kernel,
        out_shape=jax.ShapeDtypeStruct((N, HpWp, Cp), jnp.float32),
        grid_spec=pltpu.PrefetchScalarGridSpec(
            num_scalar_prefetch=0,
            grid=(N,),
            in_specs=[
                pl.BlockSpec((None, HpWp, Cp), lambda n: (n, 0, 0)),   # padded input frame
                pl.BlockSpec((9, Cp, Cp), lambda n: (0, 0, 0)),        # w1 (BN1-scaled), resident
                pl.BlockSpec((9, Cp, Cp), lambda n: (0, 0, 0)),        # w2 (BN2-scaled), resident
                pl.BlockSpec((1, Cp), lambda n: (0, 0)),               # BN1 bias
                pl.BlockSpec((1, Cp), lambda n: (0, 0)),               # BN2 bias
                pl.BlockSpec((L, 1), lambda n: (0, 0)),                # interior-column mask
            ],
            out_specs=pl.BlockSpec((None, HpWp, Cp), lambda n: (n, 0, 0)),
            scratch_shapes=[pltpu.VMEM((HpWp, Cp), jnp.bfloat16)],     # padded intermediate y
        ),
        compiler_params=pltpu.CompilerParams(
            dimension_semantics=("parallel",),       # megacore split over batch
            vmem_limit_bytes=32 * 1024 * 1024,       # explicit; ample for ResNet block tiles
        ),
    )(x_flat, w1m, w2m, b1p, b2p, col_mask)

    # Strip spatial / channel padding, back to NCHW.
    out_img = out.reshape(N, Hp, Wp, Cp)[:, 1:1 + H, 1:1 + W, :C]
    return jnp.transpose(out_img, (0, 3, 1, 2))


def reference_forward(x, w1, w2, g1, b1, m1, v1, g2, b2, m2, v2):
    s1, bb1 = _fold_bn(g1, b1, m1, v1)
    s2, bb2 = _fold_bn(g2, b2, m2, v2)
    dn = ("NCHW", "OIHW", "NCHW")
    y = lax.conv_general_dilated(x, w1, (1, 1), "SAME", dimension_numbers=dn)
    y = jnp.maximum(y * s1[None, :, None, None] + bb1[None, :, None, None], 0.0)
    y = lax.conv_general_dilated(y, w2, (1, 1), "SAME", dimension_numbers=dn)
    y = jnp.maximum(y * s2[None, :, None, None] + bb2[None, :, None, None] + x, 0.0)
    return y


if __name__ == "__main__":
    key = jax.random.PRNGKey(0)
    kx, k1, k2, kg1, kb1, km1, kv1, kg2, kb2, km2, kv2 = jax.random.split(key, 11)

    N, C, H, W = 2, 4, 16, 16          # NCHW, matching nn.Conv2d conventions

    x = jax.random.normal(kx, (N, C, H, W), jnp.float32)

    # Conv weights in PyTorch-native OIHW layout; deterministic synthetic init.
    w1 = 0.1 * jax.random.normal(k1, (C, C, 3, 3), jnp.float32)
    w2 = 0.1 * jax.random.normal(k2, (C, C, 3, 3), jnp.float32)

    # BatchNorm parameters (inference-mode running stats).
    g1 = 1.0 + 0.1 * jax.random.normal(kg1, (C,), jnp.float32)
    b1 = 0.1 * jax.random.normal(kb1, (C,), jnp.float32)
    m1 = 0.1 * jax.random.normal(km1, (C,), jnp.float32)
    v1 = 0.5 + jnp.abs(jax.random.normal(kv1, (C,), jnp.float32))
    g2 = 1.0 + 0.1 * jax.random.normal(kg2, (C,), jnp.float32)
    b2 = 0.1 * jax.random.normal(kb2, (C,), jnp.float32)
    m2 = 0.1 * jax.random.normal(km2, (C,), jnp.float32)
    v2 = 0.5 + jnp.abs(jax.random.normal(kv2, (C,), jnp.float32))

    out = basic_block_forward(x, w1, w2, g1, b1, m1, v1, g2, b2, m2, v2)
    out = jax.block_until_ready(out)

    ref = reference_forward(x, w1, w2, g1, b1, m1, v1, g2, b2, m2, v2)
    ref = jax.block_until_ready(ref)

    assert out.shape == (N, C, H, W), out.shape
    # bf16 MXU operands (f32 accumulation) vs a pure-f32 reference -> widened tolerance.
    np.testing.assert_allclose(np.asarray(out), np.asarray(ref), rtol=1e-1, atol=1e-1)

    print("KERNEL_OK")
</pallas_src>

<mosaic_0001>
module attributes {stable_mosaic.version = 11 : i64} {
  func.func @kernel(%arg0: i32, %arg1: memref<1x324x8xbf16, #tpu.memory_space<vmem>>, %arg2: memref<9x8x8xbf16, #tpu.memory_space<vmem>>, %arg3: memref<9x8x8xbf16, #tpu.memory_space<vmem>>, %arg4: memref<1x8xf32, #tpu.memory_space<vmem>>, %arg5: memref<1x8xf32, #tpu.memory_space<vmem>>, %arg6: memref<286x1xf32, #tpu.memory_space<vmem>>, %arg7: memref<1x324x8xf32, #tpu.memory_space<vmem>>, %arg8: memref<324x8xbf16, #tpu.memory_space<vmem>>) attributes {dimension_semantics = [#tpu.dimension_semantics<parallel>], iteration_bounds = array<i64: 2>, scalar_prefetch = 0 : i64, scratch_operands = 1 : i64, tpu.core_type = #tpu.core_type<tc>, window_params = [{transform_indices = @transform_0, window_bounds = array<i64: 1, 324, 8>}, {pipeline_mode = #tpu.pipeline_mode<synchronous>, transform_indices = @transform_1, window_bounds = array<i64: 9, 8, 8>}, {pipeline_mode = #tpu.pipeline_mode<synchronous>, transform_indices = @transform_2, window_bounds = array<i64: 9, 8, 8>}, {pipeline_mode = #tpu.pipeline_mode<synchronous>, transform_indices = @transform_3, window_bounds = array<i64: 1, 8>}, {pipeline_mode = #tpu.pipeline_mode<synchronous>, transform_indices = @transform_4, window_bounds = array<i64: 1, 8>}, {pipeline_mode = #tpu.pipeline_mode<synchronous>, transform_indices = @transform_5, window_bounds = array<i64: 286, 1>}, {transform_indices = @transform_6, window_bounds = array<i64: 1, 324, 8>}]} {
    %cst = arith.constant 0.000000e+00 : bf16
    %0 = vector.broadcast %cst : bf16 to vector<19x8xbf16>
    %c0 = arith.constant 0 : index
    %c0_0 = arith.constant 0 : index
    %1 = vector.load %arg8[%c0, %c0_0] : memref<324x8xbf16, #tpu.memory_space<vmem>>, vector<19x8xbf16>
    tpu.vector_store %arg8[%c0, %c0_0], %0 {strides = array<i32>} : memref<324x8xbf16, #tpu.memory_space<vmem>>, vector<19x8xbf16>,
    %cst_1 = arith.constant 0.000000e+00 : bf16
    %2 = vector.broadcast %cst_1 : bf16 to vector<19x8xbf16>
    %c305 = arith.constant 305 : index
    %c0_2 = arith.constant 0 : index
    %3 = vector.load %arg8[%c305, %c0_2] : memref<324x8xbf16, #tpu.memory_space<vmem>>, vector<19x8xbf16>
    tpu.vector_store %arg8[%c305, %c0_2], %2 {strides = array<i32>} : memref<324x8xbf16, #tpu.memory_space<vmem>>, vector<19x8xbf16>,
    %c0_3 = arith.constant 0 : index
    %c0_4 = arith.constant 0 : index
    %4 = vector.load %arg6[%c0_3, %c0_4] : memref<286x1xf32, #tpu.memory_space<vmem>>, vector<286x1xf32>
    %c0_5 = arith.constant 0 : index
    %c0_6 = arith.constant 0 : index
    %c0_7 = arith.constant 0 : index
    %5 = vector.load %arg1[%c0_5, %c0_6, %c0_7] : memref<1x324x8xbf16, #tpu.memory_space<vmem>>, vector<1x286x8xbf16>
    %6 = vector.shape_cast %5 : vector<1x286x8xbf16> to vector<286x8xbf16>
    %c0_8 = arith.constant 0 : index
    %c0_9 = arith.constant 0 : index
    %c0_10 = arith.constant 0 : index
    %7 = vector.load %arg2[%c0_8, %c0_9, %c0_10] : memref<9x8x8xbf16, #tpu.memory_space<vmem>>, vector<1x8x8xbf16>
    %8 = vector.shape_cast %7 : vector<1x8x8xbf16> to vector<8x8xbf16>
    %cst_11 = arith.constant dense<0.000000e+00> : vector<286x8xf32>
    %9 = tpu.matmul %6, %8, %cst_11 {dimension_numbers = #tpu.dot_dimension_numbers<[1], [0], [0], [1], [0, 0, 1, 1], [], []>} : vector<286x8xbf16>, vector<8x8xbf16>, vector<286x8xf32> -> vector<286x8xf32>
    %c0_12 = arith.constant 0 : index
    %c1 = arith.constant 1 : index
    %c0_13 = arith.constant 0 : index
    %10 = vector.load %arg1[%c0_12, %c1, %c0_13] : memref<1x324x8xbf16, #tpu.memory_space<vmem>>, vector<1x286x8xbf16>
    %11 = vector.shape_cast %10 : vector<1x286x8xbf16> to vector<286x8xbf16>
    %c1_14 = arith.constant 1 : index
    %c0_15 = arith.constant 0 : index
    %c0_16 = arith.constant 0 : index
    %12 = vector.load %arg2[%c1_14, %c0_15, %c0_16] : memref<9x8x8xbf16, #tpu.memory_space<vmem>>, vector<1x8x8xbf16>
    %13 = vector.shape_cast %12 : vector<1x8x8xbf16> to vector<8x8xbf16>
    %cst_17 = arith.constant dense<0.000000e+00> : vector<286x8xf32>
    %14 = tpu.matmul %11, %13, %cst_17 {dimension_numbers = #tpu.dot_dimension_numbers<[1], [0], [0], [1], [0, 0, 1, 1], [], []>} : vector<286x8xbf16>, vector<8x8xbf16>, vector<286x8xf32> -> vector<286x8xf32>
    %15 = arith.addf %9, %14 : vector<286x8xf32>
    %c0_18 = arith.constant 0 : index
    %c2 = arith.constant 2 : index
    %c0_19 = arith.constant 0 : index
    %16 = vector.load %arg1[%c0_18, %c2, %c0_19] : memref<1x324x8xbf16, #tpu.memory_space<vmem>>, vector<1x286x8xbf16>
    %17 = vector.shape_cast %16 : vector<1x286x8xbf16> to vector<286x8xbf16>
    %c2_20 = arith.constant 2 : index
    %c0_21 = arith.constant 0 : index
    %c0_22 = arith.constant 0 : index
    %18 = vector.load %arg2[%c2_20, %c0_21, %c0_22] : memref<9x8x8xbf16, #tpu.memory_space<vmem>>, vector<1x8x8xbf16>
    %19 = vector.shape_cast %18 : vector<1x8x8xbf16> to vector<8x8xbf16>
    %cst_23 = arith.constant dense<0.000000e+00> : vector<286x8xf32>
    %20 = tpu.matmul %17, %19, %cst_23 {dimension_numbers = #tpu.dot_dimension_numbers<[1], [0], [0], [1], [0, 0, 1, 1], [], []>} : vector<286x8xbf16>, vector<8x8xbf16>, vector<286x8xf32> -> vector<286x8xf32>
    %21 = arith.addf %15, %20 : vector<286x8xf32>
    %c0_24 = arith.constant 0 : index
    %c18 = arith.constant 18 : index
    %c0_25 = arith.constant 0 : index
    %22 = vector.load %arg1[%c0_24, %c18, %c0_25] : memref<1x324x8xbf16, #tpu.memory_space<vmem>>, vector<1x286x8xbf16>
    %23 = vector.shape_cast %22 : vector<1x286x8xbf16> to vector<286x8xbf16>
    %c3 = arith.constant 3 : index
    %c0_26 = arith.constant 0 : index
    %c0_27 = arith.constant 0 : index
    %24 = vector.load %arg2[%c3, %c0_26, %c0_27] : memref<9x8x8xbf16, #tpu.memory_space<vmem>>, vector<1x8x8xbf16>
    %25 = vector.shape_cast %24 : vector<1x8x8xbf16> to vector<8x8xbf16>
    %cst_28 = arith.constant dense<0.000000e+00> : vector<286x8xf32>
    %26 = tpu.matmul %23, %25, %cst_28 {dimension_numbers = #tpu.dot_dimension_numbers<[1], [0], [0], [1], [0, 0, 1, 1], [], []>} : vector<286x8xbf16>, vector<8x8xbf16>, vector<286x8xf32> -> vector<286x8xf32>
    %27 = arith.addf %21, %26 : vector<286x8xf32>
    %c0_29 = arith.constant 0 : index
    %c19 = arith.constant 19 : index
    %c0_30 = arith.constant 0 : index
    %28 = vector.load %arg1[%c0_29, %c19, %c0_30] : memref<1x324x8xbf16, #tpu.memory_space<vmem>>, vector<1x286x8xbf16>
    %29 = vector.shape_cast %28 : vector<1x286x8xbf16> to vector<286x8xbf16>
    %c4 = arith.constant 4 : index
    %c0_31 = arith.constant 0 : index
    %c0_32 = arith.constant 0 : index
    %30 = vector.load %arg2[%c4, %c0_31, %c0_32] : memref<9x8x8xbf16, #tpu.memory_space<vmem>>, vector<1x8x8xbf16>
    %31 = vector.shape_cast %30 : vector<1x8x8xbf16> to vector<8x8xbf16>
    %cst_33 = arith.constant dense<0.000000e+00> : vector<286x8xf32>
    %32 = tpu.matmul %29, %31, %cst_33 {dimension_numbers = #tpu.dot_dimension_numbers<[1], [0], [0], [1], [0, 0, 1, 1], [], []>} : vector<286x8xbf16>, vector<8x8xbf16>, vector<286x8xf32> -> vector<286x8xf32>
    %33 = arith.addf %27, %32 : vector<286x8xf32>
    %c0_34 = arith.constant 0 : index
    %c20 = arith.constant 20 : index
    %c0_35 = arith.constant 0 : index
    %34 = vector.load %arg1[%c0_34, %c20, %c0_35] : memref<1x324x8xbf16, #tpu.memory_space<vmem>>, vector<1x286x8xbf16>
    %35 = vector.shape_cast %34 : vector<1x286x8xbf16> to vector<286x8xbf16>
    %c5 = arith.constant 5 : index
    %c0_36 = arith.constant 0 : index
    %c0_37 = arith.constant 0 : index
    %36 = vector.load %arg2[%c5, %c0_36, %c0_37] : memref<9x8x8xbf16, #tpu.memory_space<vmem>>, vector<1x8x8xbf16>
    %37 = vector.shape_cast %36 : vector<1x8x8xbf16> to vector<8x8xbf16>
    %cst_38 = arith.constant dense<0.000000e+00> : vector<286x8xf32>
    %38 = tpu.matmul %35, %37, %cst_38 {dimension_numbers = #tpu.dot_dimension_numbers<[1], [0], [0], [1], [0, 0, 1, 1], [], []>} : vector<286x8xbf16>, vector<8x8xbf16>, vector<286x8xf32> -> vector<286x8xf32>
    %39 = arith.addf %33, %38 : vector<286x8xf32>
    %c0_39 = arith.constant 0 : index
    %c36 = arith.constant 36 : index
    %c0_40 = arith.constant 0 : index
    %40 = vector.load %arg1[%c0_39, %c36, %c0_40] : memref<1x324x8xbf16, #tpu.memory_space<vmem>>, vector<1x286x8xbf16>
    %41 = vector.shape_cast %40 : vector<1x286x8xbf16> to vector<286x8xbf16>
    %c6 = arith.constant 6 : index
    %c0_41 = arith.constant 0 : index
    %c0_42 = arith.constant 0 : index
    %42 = vector.load %arg2[%c6, %c0_41, %c0_42] : memref<9x8x8xbf16, #tpu.memory_space<vmem>>, vector<1x8x8xbf16>
    %43 = vector.shape_cast %42 : vector<1x8x8xbf16> to vector<8x8xbf16>
    %cst_43 = arith.constant dense<0.000000e+00> : vector<286x8xf32>
    %44 = tpu.matmul %41, %43, %cst_43 {dimension_numbers = #tpu.dot_dimension_numbers<[1], [0], [0], [1], [0, 0, 1, 1], [], []>} : vector<286x8xbf16>, vector<8x8xbf16>, vector<286x8xf32> -> vector<286x8xf32>
    %45 = arith.addf %39, %44 : vector<286x8xf32>
    %c0_44 = arith.constant 0 : index
    %c37 = arith.constant 37 : index
    %c0_45 = arith.constant 0 : index
    %46 = vector.load %arg1[%c0_44, %c37, %c0_45] : memref<1x324x8xbf16, #tpu.memory_space<vmem>>, vector<1x286x8xbf16>
    %47 = vector.shape_cast %46 : vector<1x286x8xbf16> to vector<286x8xbf16>
    %c7 = arith.constant 7 : index
    %c0_46 = arith.constant 0 : index
    %c0_47 = arith.constant 0 : index
    %48 = vector.load %arg2[%c7, %c0_46, %c0_47] : memref<9x8x8xbf16, #tpu.memory_space<vmem>>, vector<1x8x8xbf16>
    %49 = vector.shape_cast %48 : vector<1x8x8xbf16> to vector<8x8xbf16>
    %cst_48 = arith.constant dense<0.000000e+00> : vector<286x8xf32>
    %50 = tpu.matmul %47, %49, %cst_48 {dimension_numbers = #tpu.dot_dimension_numbers<[1], [0], [0], [1], [0, 0, 1, 1], [], []>} : vector<286x8xbf16>, vector<8x8xbf16>, vector<286x8xf32> -> vector<286x8xf32>
    %51 = arith.addf %45, %50 : vector<286x8xf32>
    %c0_49 = arith.constant 0 : index
    %c38 = arith.constant 38 : index
    %c0_50 = arith.constant 0 : index
    %52 = vector.load %arg1[%c0_49, %c38, %c0_50] : memref<1x324x8xbf16, #tpu.memory_space<vmem>>, vector<1x286x8xbf16>
    %53 = vector.shape_cast %52 : vector<1x286x8xbf16> to vector<286x8xbf16>
    %c8 = arith.constant 8 : index
    %c0_51 = arith.constant 0 : index
    %c0_52 = arith.constant 0 : index
    %54 = vector.load %arg2[%c8, %c0_51, %c0_52] : memref<9x8x8xbf16, #tpu.memory_space<vmem>>, vector<1x8x8xbf16>
    %55 = vector.shape_cast %54 : vector<1x8x8xbf16> to vector<8x8xbf16>
    %cst_53 = arith.constant dense<0.000000e+00> : vector<286x8xf32>
    %56 = tpu.matmul %53, %55, %cst_53 {dimension_numbers = #tpu.dot_dimension_numbers<[1], [0], [0], [1], [0, 0, 1, 1], [], []>} : vector<286x8xbf16>, vector<8x8xbf16>, vector<286x8xf32> -> vector<286x8xf32>
    %57 = arith.addf %51, %56 : vector<286x8xf32>
    %c0_54 = arith.constant 0 : index
    %c0_55 = arith.constant 0 : index
    %58 = vector.load %arg4[%c0_54, %c0_55] : memref<1x8xf32, #tpu.memory_space<vmem>>, vector<1x8xf32>
    %59 = vector.broadcast %58 : vector<1x8xf32> to vector<286x8xf32>
    %60 = arith.addf %57, %59 : vector<286x8xf32>
    %cst_56 = arith.constant 0.000000e+00 : f32
    %61 = vector.broadcast %cst_56 : f32 to vector<286x8xf32>
    %62 = arith.maximumf %60, %61 : vector<286x8xf32>
    %63 = vector.broadcast %4 : vector<286x1xf32> to vector<286x8xf32>
    %64 = arith.mulf %62, %63 : vector<286x8xf32>
    %65 = arith.truncf %64 : vector<286x8xf32> to vector<286x8xbf16>
    %c19_57 = arith.constant 19 : index
    %c0_58 = arith.constant 0 : index
    %66 = vector.load %arg8[%c19_57, %c0_58] : memref<324x8xbf16, #tpu.memory_space<vmem>>, vector<286x8xbf16>
    tpu.vector_store %arg8[%c19_57, %c0_58], %65 {strides = array<i32>} : memref<324x8xbf16, #tpu.memory_space<vmem>>, vector<286x8xbf16>,
    %c0_59 = arith.constant 0 : index
    %c19_60 = arith.constant 19 : index
    %c0_61 = arith.constant 0 : index
    %67 = vector.load %arg1[%c0_59, %c19_60, %c0_61] : memref<1x324x8xbf16, #tpu.memory_space<vmem>>, vector<1x286x8xbf16>
    %68 = vector.shape_cast %67 : vector<1x286x8xbf16> to vector<286x8xbf16>
    %69 = arith.extf %68 : vector<286x8xbf16> to vector<286x8xf32>
    %c0_62 = arith.constant 0 : index
    %c0_63 = arith.constant 0 : index
    %70 = vector.load %arg8[%c0_62, %c0_63] : memref<324x8xbf16, #tpu.memory_space<vmem>>, vector<286x8xbf16>
    %c0_64 = arith.constant 0 : index
    %c0_65 = arith.constant 0 : index
    %c0_66 = arith.constant 0 : index
    %71 = vector.load %arg3[%c0_64, %c0_65, %c0_66] : memref<9x8x8xbf16, #tpu.memory_space<vmem>>, vector<1x8x8xbf16>
    %72 = vector.shape_cast %71 : vector<1x8x8xbf16> to vector<8x8xbf16>
    %cst_67 = arith.constant dense<0.000000e+00> : vector<286x8xf32>
    %73 = tpu.matmul %70, %72, %cst_67 {dimension_numbers = #tpu.dot_dimension_numbers<[1], [0], [0], [1], [0, 0, 1, 1], [], []>} : vector<286x8xbf16>, vector<8x8xbf16>, vector<286x8xf32> -> vector<286x8xf32>
    %c1_68 = arith.constant 1 : index
    %c0_69 = arith.constant 0 : index
    %74 = vector.load %arg8[%c1_68, %c0_69] : memref<324x8xbf16, #tpu.memory_space<vmem>>, vector<286x8xbf16>
    %c1_70 = arith.constant 1 : index
    %c0_71 = arith.constant 0 : index
    %c0_72 = arith.constant 0 : index
    %75 = vector.load %arg3[%c1_70, %c0_71, %c0_72] : memref<9x8x8xbf16, #tpu.memory_space<vmem>>, vector<1x8x8xbf16>
    %76 = vector.shape_cast %75 : vector<1x8x8xbf16> to vector<8x8xbf16>
    %cst_73 = arith.constant dense<0.000000e+00> : vector<286x8xf32>
    %77 = tpu.matmul %74, %76, %cst_73 {dimension_numbers = #tpu.dot_dimension_numbers<[1], [0], [0], [1], [0, 0, 1, 1], [], []>} : vector<286x8xbf16>, vector<8x8xbf16>, vector<286x8xf32> -> vector<286x8xf32>
    %78 = arith.addf %73, %77 : vector<286x8xf32>
    %c2_74 = arith.constant 2 : index
    %c0_75 = arith.constant 0 : index
    %79 = vector.load %arg8[%c2_74, %c0_75] : memref<324x8xbf16, #tpu.memory_space<vmem>>, vector<286x8xbf16>
    %c2_76 = arith.constant 2 : index
    %c0_77 = arith.constant 0 : index
    %c0_78 = arith.constant 0 : index
    %80 = vector.load %arg3[%c2_76, %c0_77, %c0_78] : memref<9x8x8xbf16, #tpu.memory_space<vmem>>, vector<1x8x8xbf16>
    %81 = vector.shape_cast %80 : vector<1x8x8xbf16> to vector<8x8xbf16>
    %cst_79 = arith.constant dense<0.000000e+00> : vector<286x8xf32>
    %82 = tpu.matmul %79, %81, %cst_79 {dimension_numbers = #tpu.dot_dimension_numbers<[1], [0], [0], [1], [0, 0, 1, 1], [], []>} : vector<286x8xbf16>, vector<8x8xbf16>, vector<286x8xf32> -> vector<286x8xf32>
    %83 = arith.addf %78, %82 : vector<286x8xf32>
    %c18_80 = arith.constant 18 : index
    %c0_81 = arith.constant 0 : index
    %84 = vector.load %arg8[%c18_80, %c0_81] : memref<324x8xbf16, #tpu.memory_space<vmem>>, vector<286x8xbf16>
    %c3_82 = arith.constant 3 : index
    %c0_83 = arith.constant 0 : index
    %c0_84 = arith.constant 0 : index
    %85 = vector.load %arg3[%c3_82, %c0_83, %c0_84] : memref<9x8x8xbf16, #tpu.memory_space<vmem>>, vector<1x8x8xbf16>
    %86 = vector.shape_cast %85 : vector<1x8x8xbf16> to vector<8x8xbf16>
    %cst_85 = arith.constant dense<0.000000e+00> : vector<286x8xf32>
    %87 = tpu.matmul %84, %86, %cst_85 {dimension_numbers = #tpu.dot_dimension_numbers<[1], [0], [0], [1], [0, 0, 1, 1], [], []>} : vector<286x8xbf16>, vector<8x8xbf16>, vector<286x8xf32> -> vector<286x8xf32>
    %88 = arith.addf %83, %87 : vector<286x8xf32>
    %c19_86 = arith.constant 19 : index
    %c0_87 = arith.constant 0 : index
    %89 = vector.load %arg8[%c19_86, %c0_87] : memref<324x8xbf16, #tpu.memory_space<vmem>>, vector<286x8xbf16>
    %c4_88 = arith.constant 4 : index
    %c0_89 = arith.constant 0 : index
    %c0_90 = arith.constant 0 : index
    %90 = vector.load %arg3[%c4_88, %c0_89, %c0_90] : memref<9x8x8xbf16, #tpu.memory_space<vmem>>, vector<1x8x8xbf16>
    %91 = vector.shape_cast %90 : vector<1x8x8xbf16> to vector<8x8xbf16>
    %cst_91 = arith.constant dense<0.000000e+00> : vector<286x8xf32>
    %92 = tpu.matmul %89, %91, %cst_91 {dimension_numbers = #tpu.dot_dimension_numbers<[1], [0], [0], [1], [0, 0, 1, 1], [], []>} : vector<286x8xbf16>, vector<8x8xbf16>, vector<286x8xf32> -> vector<286x8xf32>
    %93 = arith.addf %88, %92 : vector<286x8xf32>
    %c20_92 = arith.constant 20 : index
    %c0_93 = arith.constant 0 : index
    %94 = vector.load %arg8[%c20_92, %c0_93] : memref<324x8xbf16, #tpu.memory_space<vmem>>, vector<286x8xbf16>
    %c5_94 = arith.constant 5 : index
    %c0_95 = arith.constant 0 : index
    %c0_96 = arith.constant 0 : index
    %95 = vector.load %arg3[%c5_94, %c0_95, %c0_96] : memref<9x8x8xbf16, #tpu.memory_space<vmem>>, vector<1x8x8xbf16>
    %96 = vector.shape_cast %95 : vector<1x8x8xbf16> to vector<8x8xbf16>
    %cst_97 = arith.constant dense<0.000000e+00> : vector<286x8xf32>
    %97 = tpu.matmul %94, %96, %cst_97 {dimension_numbers = #tpu.dot_dimension_numbers<[1], [0], [0], [1], [0, 0, 1, 1], [], []>} : vector<286x8xbf16>, vector<8x8xbf16>, vector<286x8xf32> -> vector<286x8xf32>
    %98 = arith.addf %93, %97 : vector<286x8xf32>
    %c36_98 = arith.constant 36 : index
    %c0_99 = arith.constant 0 : index
    %99 = vector.load %arg8[%c36_98, %c0_99] : memref<324x8xbf16, #tpu.memory_space<vmem>>, vector<286x8xbf16>
    %c6_100 = arith.constant 6 : index
    %c0_101 = arith.constant 0 : index
    %c0_102 = arith.constant 0 : index
    %100 = vector.load %arg3[%c6_100, %c0_101, %c0_102] : memref<9x8x8xbf16, #tpu.memory_space<vmem>>, vector<1x8x8xbf16>
    %101 = vector.shape_cast %100 : vector<1x8x8xbf16> to vector<8x8xbf16>
    %cst_103 = arith.constant dense<0.000000e+00> : vector<286x8xf32>
    %102 = tpu.matmul %99, %101, %cst_103 {dimension_numbers = #tpu.dot_dimension_numbers<[1], [0], [0], [1], [0, 0, 1, 1], [], []>} : vector<286x8xbf16>, vector<8x8xbf16>, vector<286x8xf32> -> vector<286x8xf32>
    %103 = arith.addf %98, %102 : vector<286x8xf32>
    %c37_104 = arith.constant 37 : index
    %c0_105 = arith.constant 0 : index
    %104 = vector.load %arg8[%c37_104, %c0_105] : memref<324x8xbf16, #tpu.memory_space<vmem>>, vector<286x8xbf16>
    %c7_106 = arith.constant 7 : index
    %c0_107 = arith.constant 0 : index
    %c0_108 = arith.constant 0 : index
    %105 = vector.load %arg3[%c7_106, %c0_107, %c0_108] : memref<9x8x8xbf16, #tpu.memory_space<vmem>>, vector<1x8x8xbf16>
    %106 = vector.shape_cast %105 : vector<1x8x8xbf16> to vector<8x8xbf16>
    %cst_109 = arith.constant dense<0.000000e+00> : vector<286x8xf32>
    %107 = tpu.matmul %104, %106, %cst_109 {dimension_numbers = #tpu.dot_dimension_numbers<[1], [0], [0], [1], [0, 0, 1, 1], [], []>} : vector<286x8xbf16>, vector<8x8xbf16>, vector<286x8xf32> -> vector<286x8xf32>
    %108 = arith.addf %103, %107 : vector<286x8xf32>
    %c38_110 = arith.constant 38 : index
    %c0_111 = arith.constant 0 : index
    %109 = vector.load %arg8[%c38_110, %c0_111] : memref<324x8xbf16, #tpu.memory_space<vmem>>, vector<286x8xbf16>
    %c8_112 = arith.constant 8 : index
    %c0_113 = arith.constant 0 : index
    %c0_114 = arith.constant 0 : index
    %110 = vector.load %arg3[%c8_112, %c0_113, %c0_114] : memref<9x8x8xbf16, #tpu.memory_space<vmem>>, vector<1x8x8xbf16>
    %111 = vector.shape_cast %110 : vector<1x8x8xbf16> to vector<8x8xbf16>
    %cst_115 = arith.constant dense<0.000000e+00> : vector<286x8xf32>
    %112 = tpu.matmul %109, %111, %cst_115 {dimension_numbers = #tpu.dot_dimension_numbers<[1], [0], [0], [1], [0, 0, 1, 1], [], []>} : vector<286x8xbf16>, vector<8x8xbf16>, vector<286x8xf32> -> vector<286x8xf32>
    %113 = arith.addf %108, %112 : vector<286x8xf32>
    %c0_116 = arith.constant 0 : index
    %c0_117 = arith.constant 0 : index
    %114 = vector.load %arg5[%c0_116, %c0_117] : memref<1x8xf32, #tpu.memory_space<vmem>>, vector<1x8xf32>
    %115 = vector.broadcast %114 : vector<1x8xf32> to vector<286x8xf32>
    %116 = arith.addf %113, %115 : vector<286x8xf32>
    %117 = arith.addf %116, %69 : vector<286x8xf32>
    %cst_118 = arith.constant 0.000000e+00 : f32
    %118 = vector.broadcast %cst_118 : f32 to vector<19x8xf32>
    %c0_119 = arith.constant 0 : index
    %c0_120 = arith.constant 0 : index
    %c0_121 = arith.constant 0 : index
    %119 = vector.load %arg7[%c0_119, %c0_120, %c0_121] : memref<1x324x8xf32, #tpu.memory_space<vmem>>, vector<1x19x8xf32>
    %120 = vector.shape_cast %119 : vector<1x19x8xf32> to vector<19x8xf32>
    %121 = vector.shape_cast %118 : vector<19x8xf32> to vector<1x19x8xf32>
    tpu.vector_store %arg7[%c0_119, %c0_120, %c0_121], %121 {strides = array<i32>} : memref<1x324x8xf32, #tpu.memory_space<vmem>>, vector<1x19x8xf32>,
    %cst_122 = arith.constant 0.000000e+00 : f32
    %122 = vector.broadcast %cst_122 : f32 to vector<286x8xf32>
    %123 = arith.maximumf %117, %122 : vector<286x8xf32>
    %c0_123 = arith.constant 0 : index
    %c19_124 = arith.constant 19 : index
    %c0_125 = arith.constant 0 : index
    %124 = vector.load %arg7[%c0_123, %c19_124, %c0_125] : memref<1x324x8xf32, #tpu.memory_space<vmem>>, vector<1x286x8xf32>
    %125 = vector.shape_cast %124 : vector<1x286x8xf32> to vector<286x8xf32>
    %126 = vector.shape_cast %123 : vector<286x8xf32> to vector<1x286x8xf32>
    tpu.vector_store %arg7[%c0_123, %c19_124, %c0_125], %126 {strides = array<i32>} : memref<1x324x8xf32, #tpu.memory_space<vmem>>, vector<1x286x8xf32>,
    %cst_126 = arith.constant 0.000000e+00 : f32
    %127 = vector.broadcast %cst_126 : f32 to vector<19x8xf32>
    %c0_127 = arith.constant 0 : index
    %c305_128 = arith.constant 305 : index
    %c0_129 = arith.constant 0 : index
    %128 = vector.load %arg7[%c0_127, %c305_128, %c0_129] : memref<1x324x8xf32, #tpu.memory_space<vmem>>, vector<1x19x8xf32>
    %129 = vector.shape_cast %128 : vector<1x19x8xf32> to vector<19x8xf32>
    %130 = vector.shape_cast %127 : vector<19x8xf32> to vector<1x19x8xf32>
    tpu.vector_store %arg7[%c0_127, %c305_128, %c0_129], %130 {strides = array<i32>} : memref<1x324x8xf32, #tpu.memory_space<vmem>>, vector<1x19x8xf32>,
    return
  }
  func.func @transform_0(%arg0: i32) -> (i32, i32, i32) {
    %c0_i32 = arith.constant 0 : i32
    %c0_i32_0 = arith.constant 0 : i32
    %c0_i32_1 = arith.constant 0 : i32
    return %arg0, %c0_i32, %c0_i32_0 : i32, i32, i32
  }
  func.func @transform_1(%arg0: i32) -> (i32, i32, i32) {
    %c0_i32 = arith.constant 0 : i32
    %c0_i32_0 = arith.constant 0 : i32
    %c0_i32_1 = arith.constant 0 : i32
    %c0_i32_2 = arith.constant 0 : i32
    return %c0_i32, %c0_i32_0, %c0_i32_1 : i32, i32, i32
  }
  func.func @transform_2(%arg0: i32) -> (i32, i32, i32) {
    %c0_i32 = arith.constant 0 : i32
    %c0_i32_0 = arith.constant 0 : i32
    %c0_i32_1 = arith.constant 0 : i32
    %c0_i32_2 = arith.constant 0 : i32
    return %c0_i32, %c0_i32_0, %c0_i32_1 : i32, i32, i32
  }
  func.func @transform_3(%arg0: i32) -> (i32, i32) {
    %c0_i32 = arith.constant 0 : i32
    %c0_i32_0 = arith.constant 0 : i32
    %c0_i32_1 = arith.constant 0 : i32
    return %c0_i32, %c0_i32_0 : i32, i32
  }
  func.func @transform_4(%arg0: i32) -> (i32, i32) {
    %c0_i32 = arith.constant 0 : i32
    %c0_i32_0 = arith.constant 0 : i32
    %c0_i32_1 = arith.constant 0 : i32
    return %c0_i32, %c0_i32_0 : i32, i32
  }
  func.func @transform_5(%arg0: i32) -> (i32, i32) {
    %c0_i32 = arith.constant 0 : i32
    %c0_i32_0 = arith.constant 0 : i32
    %c0_i32_1 = arith.constant 0 : i32
    return %c0_i32, %c0_i32_0 : i32, i32
  }
  func.func @transform_6(%arg0: i32) -> (i32, i32, i32) {
    %c0_i32 = arith.constant 0 : i32
    %c0_i32_0 = arith.constant 0 : i32
    %c0_i32_1 = arith.constant 0 : i32
    return %arg0, %c0_i32, %c0_i32_0 : i32, i32, i32
  }
}

</mosaic_0001>

<bundles_post_ra>
// kernel: basic_block_forward.1
= control target key start
LH: loop header
LB: loop body
LE: loop exit
PB: predicated region body
PF: predicated region fallthrough
CT: control target
= control target key end

     0   :  { %s11210_s21 = smov 0   ;;  %s13449_s0 = inlined_call_operand.vmem [shape: bf16[2,324,8], index: 0, kind: input, shape index: {}]   ;;  %s13450_s1 = inlined_call_operand.vmem [shape: bf16[9,8,8], index: 1, kind: input, shape index: {}]   ;;  %s13451_s2 = inlined_call_operand.vmem [shape: bf16[9,8,8], index: 2, kind: input, shape index: {}]   ;;  %s13452_s3 = inlined_call_operand.vmem [shape: f32[1,8], index: 3, kind: input, shape index: {}]   ;;  %s13453_s4 = inlined_call_operand.vmem [shape: f32[1,8], index: 4, kind: input, shape index: {}]   ;;  %s13454_s5 = inlined_call_operand.vmem [shape: f32[286,1], index: 5, kind: input, shape index: {}]   ;;  %s13455_s6 = inlined_call_operand.vmem [shape: f32[2,324,8], index: 6, kind: output, shape index: {}]  }
   0x1 LB: > { %s8698_s22 = sadd.s32 4294967295, %s11171_s21   ;;  %p8702_p0 = scmp.ge.s32.totalorder %s11171_s21, 1  ;;  %s11171_s21 = sphi %s11210_s21, %s16_s21  }
   0x2   : > { %p212_p1 = scmp.lt.s32.totalorder %s11171_s21, 3 }
   0x4   : > { %p213_p2 = pnand %p8702_p0, %p212_p1 }
   0x6   : > { %216 = sbr.rel (%p213_p2) target bundleno = 1761 (0x6e1), region = 44 }
   0xd   : > { %v8705_v0 = vld [vmem:[%s13450_s1 + $0x4] sm:$0xf]  ;;  %vm636_vm0 = vcmask 1043456   ;;  %p242_p3 = scmp.lt.s32.totalorder %s8698_s22, 1  ;;  %v343_v2 = vld [vmem:[%s13450_s1] sm:$0xf] }
   0xe   : > { %10966 = vmatprep.subr.msk.bf16.mxu0 %vm636_vm0, %v8705_v0  ;;  %v638_v1 = vsel %vm636_vm0, %v8705_v0, 0  ;;  %vm437_vm1 = vsmask.f32 7424  ;;  %vm581_vm2 = vcmask 64512   ;;  %v858_v24 = vsel %vm636_vm0, %v343_v2, 0 }
   0xf   : > { %9707 = vmatpush3.bf16.msra.mxu0 %v638_v1  ;;  %s13589_s22 = smov (!%p242_p3, %s8698_s22), 1  ;;  %v11276_v33 = vld [vmem:[%s13450_s1 + $0x8] sm:$0xf]  ;;  %vm1043_vm3 = vcmask 1046528   ;;  %vm1914_vm4 = vsmask.f32 6400 }
  0x10   : > { %10967 = vmatprep.subr.msk.bf16.mxu0 %vm636_vm0, %v343_v2  ;;  %s10984_s27 = smul.u32 164, %s13589_s22  ;;  %vm2357_vm5 = vcmask 1045504   ;;  %vm256_vm6 = vcmask 58368   ;;  %vm257_vm7 = vsmask.f32 1280  ;;  %vm253_vm9 = vcmask 60416  }
  0x11   : > { %vm258_vm8 = vmand %vm256_vm6, %vm257_vm7  ;;  %vm3110_vm10 = vsmask.f32 5376  ;;  %vm3557_vm11 = vcmask 1044480   ;;  %vm263_vm12 = vsmask.f32 7938  ;;  %vm4666_vm15 = vcmask 60417  }
  0x12   : > { %s11233_s30 = scalar_lea.vmem %s13449_s0, %s10984_s27  ;;  %vm264_vm13 = vmand %vm253_vm9, %vm263_vm12  ;;  %vm4268_vm14 = vsmask.f32 5392  ;;  %s10985_s10 = smul.u32 328, %s13589_s22 }
  0x13   : > { %v307_v3 = vld [vmem:[%s11233_s30] sm:$0xf]  ;;  %v11237_v4 = vld [vmem:[%s11233_s30 + $0x4] sm:$0xf]  ;;  %v11243_v6 = vld [vmem:[%s11233_s30 + $0x8] sm:$0xff]  }
  0x14   : > { %v11240_v5 = vcombine.low %v307_v3, %v11237_v4  ;;  %v11246_v7 = vld [vmem:[%s11233_s30 + $0x10] sm:$0xff]   ;;  %v446_v10 = vshll.u32 %v11243_v6, 16  ;;  %v450_v11 = vshrl.u32 %v11243_v6, 16  ;;  %v11254_v13 = vld [vmem:[%s11233_s30 + $0x18] sm:$0xff]   ;;  %v11258_v15 = vld [vmem:[%s11233_s30 + $0x20] sm:$0xff]   ;;  %s13266_s13 = scalar_lea.vmem %s13455_s6, %s10985_s10 }
  0x15   : > { %v454_v12 = vshll.u32 %v11246_v7, 16  ;;  %v458_v14 = vshrl.u32 %v11246_v7, 16  ;;  %v462_v19 = vshll.u32 %v11254_v13, 16  ;;  %v470_v22 = vshll.u32 %v11258_v15, 16  ;;  %v11263_v23 = vld [vmem:[%s11233_s30 + $0x28] sm:$0xff]   ;;  %v11280_v35 = vld [vmem:[%s11233_s30 + $0x30] sm:$0xff]   ;;  %vm12148_vm12 = vmor %vm257_vm7, %vm4268_vm14 }
  0x16   : > { %v439_v8 = vshrl.u32 %v11240_v5, 16  ;;  %v441_v9 = vshll.u32 %v11240_v5, 16  ;;  %v448_v17 = vrot.slane %v446_v10, 1  ;;  %v466_v27 = vshrl.u32 %v11254_v13, 16  ;;  %v11284_v39 = vld [vmem:[%s11233_s30 + $0x38] sm:$0xff]   ;;  %v11290_v41 = vld [vmem:[%s11233_s30 + $0x40] sm:$0xff]  }
  0x17   : > { %v456_v18 = vrot.slane %v454_v12, 1  ;;  %v464_v26 = vrot.slane %v462_v19, 1  ;;  %v474_v30 = vshrl.u32 %v11258_v15, 16  ;;  %v478_v31 = vshll.u32 %v11263_v23, 16  ;;  %v11298_v47 = vld [vmem:[%s11233_s30 + $0x48] sm:$0xff]   ;;  %v11303_v50 = vld [vmem:[%s11233_s30 + $0x50] sm:$0xff]  }
  0x18   : > { %v443_v16 = vrot.slane %v441_v9, 1  ;;  %v452_v21 = vor.u32 %v450_v11, %v448_v17  ;;  %v472_v34 = vrot.slane %v470_v22, 1  ;;  %v486_v40 = vshll.u32 %v11280_v35, 16  ;;  %v11306_v51 = vld [vmem:[%s11233_s30 + $0x58] sm:$0xff]   ;;  %v11310_v53 = vld [vmem:[%s11233_s30 + $0x60] sm:$0xff]   ;;  %v11313_v56 = vld [vmem:[%s11233_s30 + $0x68] sm:$0xff]  }
  0x19   : > { %v460_v25 = vor.u32 %v458_v14, %v456_v18  ;;  %v468_v36 = vor.u32 %v466_v27, %v464_v26  ;;  %v480_v38 = vrot.slane %v478_v31, 1  ;;  %v482_v43 = vshrl.u32 %v11263_v23, 16 }
  0x1a   : > { %v444_v20 = vor.u32 %v443_v16, %v439_v8  ;;  %v457_v29 = vsel %vm437_vm1, %v452_v21, %v456_v18  ;;  %v476_v37 = vor.u32 %v474_v30, %v472_v34  ;;  %v490_v45 = vshrl.u32 %v11280_v35, 16  ;;  %v11326_v8 = vld [vmem:[%s11233_s30 + $0x70] sm:$0xff]  }
  0x1b   : > { %v465_v32 = vsel %vm437_vm1, %v460_v25, %v464_v26  ;;  %v473_v42 = vsel %vm437_vm1, %v468_v36, %v472_v34  ;;  %v494_v46 = vshll.u32 %v11284_v39, 16  ;;  %v488_v48 = vrot.slane %v486_v40, 1  ;;  %v344_v40 = vld [vmem:[%s11233_s30 + $0x8c] sm:$0xf] }
  0x1c   : > { %v449_v28 = vsel %vm437_vm1, %v444_v20, %v448_v17  ;;  %v481_v44 = vsel %vm437_vm1, %v476_v37, %v480_v38  ;;  %v502_v49 = vshll.u32 %v11290_v41, 16  ;;  %v484_v52 = vor.u32 %v482_v43, %v480_v38  ;;  %v341_v37 = vld [vmem:[%s11233_s30 + $0x88] sm:$0xf]  ;;  %v11352_v43 = vld [vmem:[%s11233_s30 + $0x80] sm:$0xff]  }
  0x1d   : > { %9708 = vmatprep.mubr.msk.bf16.mxu0 %vm581_vm2, %v449_v28  ;;  %v492_v54 = vor.u32 %v490_v45, %v488_v48  ;;  %v496_v55 = vrot.slane %v494_v46, 1  ;;  %v510_v57 = vshll.u32 %v11298_v47, 16  ;;  %v498_v58 = vshrl.u32 %v11284_v39, 16 }
  0x1e   : > { %9709 = vmatmul.mubr.msk.bf16.vlgmr.msra.gmra.mrb[0].mxu0 %vm581_vm2, %v457_v29  ;;  %v504_v59 = vrot.slane %v502_v49, 1  ;;  %v506_v60 = vshrl.u32 %v11290_v41, 16  ;;  %v518_v61 = vshll.u32 %v11303_v50, 16  ;;  %v489_v62 = vsel %vm437_vm1, %v484_v52, %v488_v48 }
  0x1f   : > { %9745 = vmatpush3.bf16.msra.mxu0 %v858_v24  ;;  %9712 = vmatprep.mubr.msk.bf16.mxu0 %vm581_vm2, %v465_v32  ;;  %v514_v63 = vshrl.u32 %v11298_v47, 16  ;;  %v526_v0 = vshll.u32 %v11306_v51, 16  ;;  %v534_v1 = vshll.u32 %v11310_v53, 16  ;;  %v497_v2 = vsel %vm437_vm1, %v492_v54, %v496_v55  ;;  %v11336_v24 = vld [vmem:[%s11233_s30 + $0x78] sm:$0xff]  }
  0x20   : > { %10968 = vmatprep.subr.msk.bf16.mxu0 %vm636_vm0, %v11276_v33  ;;  %v542_v3 = vshll.u32 %v11313_v56, 16  ;;  %v512_v9 = vrot.slane %v510_v57, 1  ;;  %v522_v10 = vshrl.u32 %v11303_v50, 16  ;;  %v500_v11 = vor.u32 %v498_v58, %v496_v55 }
  0x21   : > { %v520_v12 = vrot.slane %v518_v61, 1  ;;  %v530_v14 = vshrl.u32 %v11306_v51, 16  ;;  %v528_v16 = vrot.slane %v526_v0, 1  ;;  %v536_v17 = vrot.slane %v534_v1, 1 }
  0x22   : > { %v538_v18 = vshrl.u32 %v11310_v53, 16  ;;  %v546_v19 = vshrl.u32 %v11313_v56, 16  ;;  %v508_v20 = vor.u32 %v506_v60, %v504_v59  ;;  %v544_v21 = vrot.slane %v542_v3, 1 }
  0x23   : > { %v550_v22 = vshll.u32 %v11326_v8, 16  ;;  %v505_v25 = vsel %vm437_vm1, %v500_v11, %v504_v59  ;;  %v554_v27 = vshrl.u32 %v11326_v8, 16  ;;  %v558_v28 = vshll.u32 %v11336_v24, 16  ;;  %v342_v11 = vld [vmem:[%s11233_s30 + $0x8c] sm:$0x7] }
  0x24   : > { %v513_v26 = vsel %vm437_vm1, %v508_v20, %v512_v9  ;;  %v516_v29 = vor.u32 %v514_v63, %v512_v9  ;;  %v562_v31 = vshrl.u32 %v11336_v24, 16  ;;  %v524_v32 = vor.u32 %v522_v10, %v520_v12  ;;  %v8781_v10 = vld [vmem:[%s13450_s1 + $0xc] sm:$0xf] }
  0x25   : > { %v552_v30 = vrot.slane %v550_v22, 1  ;;  %v532_v38 = vor.u32 %v530_v14, %v528_v16  ;;  %v11355_v45 = vcombine.low %v341_v37, %v344_v40  ;;  %v560_v48 = vrot.slane %v558_v28, 1 }
  0x26   : > { %9713 = vmatmul.mubr.msk.bf16.gmra.mrb[4].mxu0 %vm581_vm2, %v473_v42  ;;  %v521_v34 = vsel %vm437_vm1, %v516_v29, %v520_v12  ;;  %v529_v36 = vsel %vm437_vm1, %v524_v32, %v528_v16  ;;  %v540_v42 = vor.u32 %v538_v18, %v536_v17  ;;  %v566_v49 = vshll.u32 %v11352_v43, 16 }
  0x27   : > { %9716 = vmatprep.mubr.msk.bf16.mxu0 %vm581_vm2, %v481_v44  ;;  %v537_v44 = vsel %vm437_vm1, %v532_v38, %v536_v17  ;;  %v548_v52 = vor.u32 %v546_v19, %v544_v21  ;;  %v570_v54 = vshrl.u32 %v11352_v43, 16  ;;  %v574_v55 = vshll.u32 %v11355_v45, 16 }
  0x28   : > { %v545_v46 = vsel %vm437_vm1, %v540_v42, %v544_v21  ;;  %v556_v57 = vor.u32 %v554_v27, %v552_v30  ;;  %v568_v60 = vrot.slane %v566_v49, 1  ;;  %v564_v61 = vor.u32 %v562_v31, %v560_v48  ;;  %v11020_v49 = vld [vmem:[%s11233_s30 + $0x18] sm:$0xff]  }
  0x29   : > { %v553_v58 = vsel %vm437_vm1, %v548_v52, %v552_v30  ;;  %v1134_v9 = vsel %vm636_vm0, %v11276_v33, 0  ;;  %v1045_v14 = vrot.slane %v11243_v6, 1  ;;  %v8742_v16 = vcombine.low %v341_v37, %v342_v11 }
  0x2a   : > { %v561_v59 = vsel %vm437_vm1, %v556_v57, %v560_v48  ;;  %v572_v63 = vor.u32 %v570_v54, %v568_v60  ;;  %v569_v0 = vsel %vm437_vm1, %v564_v61, %v568_v60  ;;  %v1049_v18 = vrot.slane %v11254_v13, 1  ;;  %v11022_v57 = vld [vmem:[%s11233_s30 + $0x28] sm:$0xff]   ;;  %v11023_v60 = vld [vmem:[%s11233_s30 + $0x30] sm:$0xff]  }
  0x2b   : > { %v1567_v20 = vsel %vm636_vm0, %v8781_v10, 0  ;;  %v1051_v22 = vrot.slane %v11258_v15, 1  ;;  %v1057_v27 = vrot.slane %v11284_v39, 1  ;;  %v1061_v29 = vrot.slane %v11298_v47, 1  ;;  %v11488_v61 = vld [vmem:[%s13450_s1 + $0x14] sm:$0xf] }
  0x2c   : > { %v1073_v37 = vrot.slane %v11336_v24, 1  ;;  %v1077_v40 = vrot.slane %v11355_v45, 1  ;;  %vm4707_vm7 = vcmask 57344  }
  0x2e   : > { %9717 = vmatmul.mubr.msk.bf16.gmra.mrb[8].mxu0 %vm581_vm2, %v489_v62  ;;  %v576_v62 = vrot.slane %v574_v55, 1 }
  0x2f   : > { %9720 = vmatprep.mubr.msk.bf16.mxu0 %vm581_vm2, %v497_v2  ;;  %v578_v2 = vshrl.u32 %v11355_v45, 16  ;;  %v1480_v45 = vrot.slane %v11020_v49, 1  ;;  %v11546_v49 = vld [vmem:[%s11233_s30 + $0x20] sm:$0xff]  }
  0x30   : > { %v577_v1 = vsel %vm437_vm1, %v572_v63, %v576_v62  ;;  %v1486_v63 = vrot.slane %v11023_v60, 1  ;;  %v11555_v60 = vld [vmem:[%s11233_s30 + $0x28] sm:$0xff]  }
  0x31   : > { %v580_v3 = vor.u32 %v578_v2, %v576_v62  ;;  %v1484_v62 = vrot.slane %v11022_v57, 1  ;;  %v1945_v57 = vshll.u32 %v11546_v49, 16 }
  0x33   : > { %v1487_v2 = vsel %vm1043_vm3, %v1484_v62, %v1486_v63 }
  0x36   : > { %9721 = vmatmul.mubr.msk.bf16.gmra.mrb[12].mxu0 %vm581_vm2, %v505_v25 }
  0x37   : > { %9724 = vmatprep.mubr.msk.bf16.mxu0 %vm581_vm2, %v513_v26  ;;  %v1055_v26 = vrot.slane %v11280_v35, 1 }
  0x3e   : > { %9725 = vmatmul.mubr.msk.bf16.gmra.mrb[16].mxu0 %vm581_vm2, %v521_v34 }
  0x3f   : > { %9728 = vmatprep.mubr.msk.bf16.mxu0 %vm581_vm2, %v529_v36 }
  0x46   : > { %9729 = vmatmul.mubr.msk.bf16.gmra.mrb[20].mxu0 %vm581_vm2, %v537_v44  ;;  %v11018_v44 = vld [vmem:[%s11233_s30 + $0x8] sm:$0xfe]  }
  0x47   : > { %9732 = vmatprep.mubr.msk.bf16.mxu0 %vm581_vm2, %v545_v46  ;;  %v1477_v46 = vrot.slane %v11018_v44, 1 }
  0x4e   : > { %9733 = vmatmul.mubr.msk.bf16.gmra.mrb[24].mxu0 %vm581_vm2, %v553_v58 }
  0x4f   : > { %9736 = vmatprep.mubr.msk.bf16.mxu0 %vm581_vm2, %v561_v59 }
  0x56   : > { %9737 = vmatmul.mubr.msk.bf16.gmra.mrb[28].mxu0 %vm581_vm2, %v569_v0 }
  0x57   : > { %9740 = vmatprep.mubr.msk.bf16.mxu0 %vm581_vm2, %v577_v1  ;;  %v11024_v1 = vld [vmem:[%s11233_s30 + $0x38] sm:$0xff]  }
  0x5e   : > { %9741 = vmatmul.mubr.msk.bf16.gmra.mrb[32].mxu0 %vm581_vm2, %v580_v3  ;;  %v11025_v3 = vld [vmem:[%s11233_s30 + $0x40] sm:$0xff]  }
  0x5f   : > { %9746 = vmatprep.mubr.msk.bf16.mxu0 %vm581_vm2, %v11240_v5  ;;  %v1037_v5 = vld [vmem:[%s11233_s30] sm:$0xe] }
  0x60   : > { %v8762_v33 = vcombine.low %v1037_v5, %v11237_v4  ;;  %v1047_v4 = vrot.slane %v11246_v7, 1 }
  0x62   : > { %v1044_v12 = vrot.slane %v8762_v33, 1  ;;  %v1048_v19 = vsel %vm1043_vm3, %v1045_v14, %v1047_v4  ;;  %v1050_v21 = vsel %vm1043_vm3, %v1047_v4, %v1049_v18  ;;  %v11026_v33 = vld [vmem:[%s11233_s30 + $0x48] sm:$0xff]   ;;  %v11028_v4 = vld [vmem:[%s11233_s30 + $0x58] sm:$0xff]  }
  0x64   : > { %v1046_v17 = vsel %vm1043_vm3, %v1044_v12, %v1045_v14  ;;  %v11027_v12 = vld [vmem:[%s11233_s30 + $0x50] sm:$0xff]   ;;  %v1492_v14 = vrot.slane %v11026_v33, 1 }
  0x66   : > { %9747 = vmatmul.mubr.msk.bf16.vlgmr.msra.gmra.mrb[0].mxu0 %vm581_vm2, %v11243_v6  ;;  %v8818_v6 = vld [vmem:[%s13450_s1 + $0x10] sm:$0xf] }
  0x67   : > { %9783 = vmatpush3.bf16.msra.mxu0 %v1134_v9  ;;  %9750 = vmatprep.mubr.msk.bf16.mxu0 %vm581_vm2, %v11246_v7  ;;  %v1053_v7 = vrot.slane %v11263_v23, 1  ;;  %v2136_v58 = vsel %vm636_vm0, %v8818_v6, 0  ;;  %v1488_v9 = vrot.slane %v11024_v1, 1  ;;  %v11559_v1 = vld [vmem:[%s11233_s30 + $0x30] sm:$0xff]  }
  0x68   : > { %10969 = vmatprep.subr.msk.bf16.mxu0 %vm636_vm0, %v8781_v10  ;;  %v1490_v10 = vrot.slane %v11025_v3, 1  ;;  %v1951_v3 = vshrl.u32 %v11555_v60, 16  ;;  %v1963_v33 = vshll.u32 %v11559_v1, 16 }
  0x69   : > { %v1054_v25 = vsel %vm1043_vm3, %v1051_v22, %v1053_v7  ;;  %v1056_v28 = vsel %vm1043_vm3, %v1053_v7, %v1055_v26  ;;  %v1489_v5 = vsel %vm1043_vm3, %v1486_v63, %v1488_v9 }
  0x6a   : > { %v1491_v11 = vsel %vm1043_vm3, %v1488_v9, %v1490_v10  ;;  %v1954_v9 = vshll.u32 %v11555_v60, 16 }
  0x6e   : > { %9751 = vmatmul.mubr.msk.bf16.gmra.mrb[4].mxu0 %vm581_vm2, %v11254_v13  ;;  %v1052_v13 = vsel %vm1043_vm3, %v1049_v18, %v1051_v22  ;;  %v11030_v22 = vld [vmem:[%s11233_s30 + $0x68] sm:$0xff]  }
  0x6f   : > { %9754 = vmatprep.mubr.msk.bf16.mxu0 %vm581_vm2, %v11258_v15  ;;  %v1058_v15 = vsel %vm1043_vm3, %v1055_v26, %v1057_v27 }
  0x76   : > { %9755 = vmatmul.mubr.msk.bf16.gmra.mrb[8].mxu0 %vm581_vm2, %v11263_v23  ;;  %v1059_v23 = vrot.slane %v11290_v41, 1 }
  0x77   : > { %9758 = vmatprep.mubr.msk.bf16.mxu0 %vm581_vm2, %v11280_v35  ;;  %v1063_v35 = vrot.slane %v11303_v50, 1 }
  0x78   : > { %v1060_v30 = vsel %vm1043_vm3, %v1057_v27, %v1059_v23  ;;  %v1062_v31 = vsel %vm1043_vm3, %v1059_v23, %v1061_v29  ;;  %v11033_v23 = vld [vmem:[%s11233_s30 + $0x80] sm:$0xff]  }
  0x79   : > { %v1064_v32 = vsel %vm1043_vm3, %v1061_v29, %v1063_v35 }
  0x7e   : > { %9759 = vmatmul.mubr.msk.bf16.gmra.mrb[12].mxu0 %vm581_vm2, %v11284_v39  ;;  %v1065_v39 = vrot.slane %v11306_v51, 1 }
  0x7f   : > { %9762 = vmatprep.mubr.msk.bf16.mxu0 %vm581_vm2, %v11290_v41  ;;  %v1067_v41 = vrot.slane %v11310_v53, 1 }
  0x80   : > { %v1066_v34 = vsel %vm1043_vm3, %v1063_v35, %v1065_v39  ;;  %v11526_v35 = vld [vmem:[%s11233_s30 + $0xc] sm:$0xf] }
  0x81   : > { %v1068_v36 = vsel %vm1043_vm3, %v1065_v39, %v1067_v41 }
  0x86   : > { %9763 = vmatmul.mubr.msk.bf16.gmra.mrb[16].mxu0 %vm581_vm2, %v11298_v47  ;;  %v1069_v47 = vrot.slane %v11313_v56, 1 }
  0x87   : > { %9766 = vmatprep.mubr.msk.bf16.mxu0 %vm581_vm2, %v11303_v50 }
  0x88   : > { %v1070_v50 = vsel %vm1043_vm3, %v1067_v41, %v1069_v47 }
  0x8e   : > { %9767 = vmatmul.mubr.msk.bf16.gmra.mrb[20].mxu0 %vm581_vm2, %v11306_v51  ;;  %v1071_v51 = vrot.slane %v11326_v8, 1 }
  0x8f   : > { %9770 = vmatprep.mubr.msk.bf16.mxu0 %vm581_vm2, %v11310_v53 }
  0x90   : > { %v1072_v38 = vsel %vm1043_vm3, %v1069_v47, %v1071_v51  ;;  %v1074_v53 = vsel %vm1043_vm3, %v1071_v51, %v1073_v37 }
  0x96   : > { %9771 = vmatmul.mubr.msk.bf16.gmra.mrb[24].mxu0 %vm581_vm2, %v11313_v56  ;;  %v1075_v56 = vrot.slane %v11352_v43, 1 }
  0x97   : > { %9774 = vmatprep.mubr.msk.bf16.mxu0 %vm581_vm2, %v11326_v8 }
  0x98   : > { %v1076_v42 = vsel %vm1043_vm3, %v1073_v37, %v1075_v56  ;;  %v1078_v8 = vsel %vm1043_vm3, %v1075_v56, %v1077_v40 }
  0x9e   : > { %9775 = vmatmul.mubr.msk.bf16.gmra.mrb[28].mxu0 %vm581_vm2, %v11336_v24  ;;  %v11019_v24 = vld [vmem:[%s11233_s30 + $0x10] sm:$0xff]  }
  0x9f   : > { %9778 = vmatprep.mubr.msk.bf16.mxu0 %vm581_vm2, %v11352_v43  ;;  %v1478_v48 = vrot.slane %v11019_v24, 1  ;;  %v11021_v43 = vld [vmem:[%s11233_s30 + $0x20] sm:$0xff]  }
  0xa0   : > { %v1482_v54 = vrot.slane %v11021_v43, 1 }
  0xa1   : > { %v1479_v52 = vsel %vm1043_vm3, %v1477_v46, %v1478_v48  ;;  %v1481_v55 = vsel %vm1043_vm3, %v1478_v48, %v1480_v45 }
  0xa2   : > { %v1483_v59 = vsel %vm1043_vm3, %v1480_v45, %v1482_v54  ;;  %v1485_v0 = vsel %vm1043_vm3, %v1482_v54, %v1484_v62 }
  0xa6   : > { %9779 = vmatmul.mubr.msk.bf16.gmra.mrb[32].mxu0 %vm581_vm2, %v8742_v16  ;;  %v1494_v16 = vrot.slane %v11027_v12, 1  ;;  %v1953_v12 = vrot.slane %v1951_v3, 1 }
  0xa7   : > { %9784 = vmatprep.mubr.msk.bf16.mxu0 %vm581_vm2, %v1046_v17  ;;  %v1493_v17 = vsel %vm1043_vm3, %v1490_v10, %v1492_v14 }
  0xa8   : > { %v1495_v18 = vsel %vm1043_vm3, %v1492_v14, %v1494_v16  ;;  %v1956_v14 = vrot.slane %v1954_v9, 2 }
  0xae   : > { %9785 = vmatmul.mubr.msk.bf16.vlgmr.msra.gmra.mrb[0].mxu0 %vm581_vm2, %v1048_v19  ;;  %v11029_v19 = vld [vmem:[%s11233_s30 + $0x60] sm:$0xff]  }
  0xaf   : > { %9821 = vmatpush3.bf16.msra.mxu0 %v1567_v20  ;;  %9788 = vmatprep.mubr.msk.bf16.mxu0 %vm581_vm2, %v1050_v21  ;;  %v1496_v20 = vrot.slane %v11028_v4, 1  ;;  %v1498_v21 = vrot.slane %v11029_v19, 1  ;;  %v1965_v19 = vrot.slane %v1963_v33, 2 }
  0xb0   : > { %10970 = vmatprep.subr.msk.bf16.mxu0 %vm636_vm0, %v8818_v6 }
  0xb1   : > { %v1497_v6 = vsel %vm1043_vm3, %v1494_v16, %v1496_v20  ;;  %v1499_v7 = vsel %vm1043_vm3, %v1496_v20, %v1498_v21  ;;  %v11569_v16 = vld [vmem:[%s11233_s30 + $0x38] sm:$0xff]   ;;  %v11575_v20 = vld [vmem:[%s11233_s30 + $0x40] sm:$0xff]  }
  0xb6   : > { %9789 = vmatmul.mubr.msk.bf16.gmra.mrb[4].mxu0 %vm581_vm2, %v1052_v13  ;;  %v11031_v13 = vld [vmem:[%s11233_s30 + $0x70] sm:$0xff]  }
  0xb7   : > { %9792 = vmatprep.mubr.msk.bf16.mxu0 %vm581_vm2, %v1054_v25  ;;  %v1500_v25 = vrot.slane %v11030_v22, 1  ;;  %v1502_v26 = vrot.slane %v11031_v13, 1  ;;  %v1972_v22 = vshll.u32 %v11569_v16, 16  ;;  %v1978_v13 = vshrl.u32 %v11575_v20, 16 }
  0xb9   : > { %v1501_v27 = vsel %vm1043_vm3, %v1498_v21, %v1500_v25  ;;  %v11580_v21 = vld [vmem:[%s13450_s1 + $0x18] sm:$0xf] }
  0xbe   : > { %9793 = vmatmul.mubr.msk.bf16.gmra.mrb[8].mxu0 %vm581_vm2, %v1056_v28  ;;  %v11032_v28 = vld [vmem:[%s11233_s30 + $0x78] sm:$0xff]  }
  0xbf   : > { %9796 = vmatprep.mubr.msk.bf16.mxu0 %vm581_vm2, %v1058_v15  ;;  %v1503_v15 = vsel %vm1043_vm3, %v1500_v25, %v1502_v26  ;;  %v1504_v29 = vrot.slane %v11032_v28, 1  ;;  %v1981_v25 = vshll.u32 %v11575_v20, 16  ;;  %v1974_v28 = vrot.slane %v1972_v22, 2 }
  0xc1   : > { %v1505_v39 = vsel %vm1043_vm3, %v1502_v26, %v1504_v29 }
  0xc6   : > { %9797 = vmatmul.mubr.msk.bf16.gmra.mrb[12].mxu0 %vm581_vm2, %v1060_v30  ;;  %v1506_v30 = vrot.slane %v11033_v23, 1 }
  0xc7   : > { %9800 = vmatprep.mubr.msk.bf16.mxu0 %vm581_vm2, %v1062_v31  ;;  %v1782_v31 = vld [vmem:[%s11233_s30 + $0x8] sm:$0xe] }
  0xc8   : > { %v1507_v41 = vsel %vm1043_vm3, %v1504_v29, %v1506_v30  ;;  %v8819_v47 = vcombine.low %v1782_v31, %v11526_v35  ;;  %v1980_v29 = vrot.slane %v1978_v13, 1  ;;  %v11596_v31 = vld [vmem:[%s11233_s30 + $0x50] sm:$0xff]  }
  0xca   : > { %v1916_v37 = vshrl.u32 %v8819_v47, 16 }
  0xcc   : > { %v1918_v44 = vrot.slane %v1916_v37, 1 }
  0xce   : > { %9801 = vmatmul.mubr.msk.bf16.gmra.mrb[16].mxu0 %vm581_vm2, %v1064_v32  ;;  %v11034_v32 = vld [vmem:[%s11233_s30 + $0x88] sm:$0xff]  }
  0xcf   : > { %9804 = vmatprep.mubr.msk.bf16.mxu0 %vm581_vm2, %v1066_v34  ;;  %v11035_v34 = vld [vmem:[%s11233_s30 + $0x90] sm:$0xff]  }
  0xd0   : > { %v1510_v51 = vrot.slane %v11035_v34, 1 }
  0xd6   : > { %9805 = vmatmul.mubr.msk.bf16.gmra.mrb[20].mxu0 %vm581_vm2, %v1068_v36  ;;  %v11534_v36 = vld [vmem:[%s11233_s30 + $0x10] sm:$0xff]  }
  0xd7   : > { %9808 = vmatprep.mubr.msk.bf16.mxu0 %vm581_vm2, %v1070_v50  ;;  %v1508_v50 = vrot.slane %v11034_v32, 1  ;;  %v1927_v56 = vshll.u32 %v11534_v36, 16 }
  0xd9   : > { %v1929_v48 = vrot.slane %v1927_v56, 2 }
  0xde   : > { %9809 = vmatmul.mubr.msk.bf16.gmra.mrb[24].mxu0 %vm581_vm2, %v1072_v38  ;;  %v1919_v38 = vshll.u32 %v8819_v47, 16  ;;  %v1996_v47 = vshrl.u32 %v11596_v31, 16 }
  0xdf   : > { %9812 = vmatprep.mubr.msk.bf16.mxu0 %vm581_vm2, %v1074_v53  ;;  %v1924_v53 = vshrl.u32 %v11534_v36, 16 }
  0xe0   : > { %v1921_v24 = vrot.slane %v1919_v38, 2 }
  0xe1   : > { %v1926_v46 = vrot.slane %v1924_v53, 1  ;;  %v11606_v53 = vld [vmem:[%s11233_s30 + $0x58] sm:$0xff]  }
  0xe2   : > { %v1922_v45 = vor.u32 %v1921_v24, %v1918_v44  ;;  %v11610_v44 = vld [vmem:[%s11233_s30 + $0x60] sm:$0xff]  }
  0xe3   : > { %v1930_v54 = vor.u32 %v1929_v48, %v1926_v46  ;;  %v2005_v46 = vshrl.u32 %v11606_v53, 16  ;;  %v2008_v48 = vshll.u32 %v11606_v53, 16 }
  0xe5   : > { %v1931_v62 = vsel %vm1914_vm4, %v1922_v45, %v1930_v54  ;;  %v2017_v45 = vshll.u32 %v11610_v44, 16 }
  0xe6   : > { %9813 = vmatmul.mubr.msk.bf16.gmra.mrb[28].mxu0 %vm581_vm2, %v1076_v42  ;;  %v1511_v42 = vsel %vm1043_vm3, %v1508_v50, %v1510_v51 }
  0xe7   : > { %9816 = vmatprep.mubr.msk.bf16.mxu0 %vm581_vm2, %v1078_v8  ;;  %v11543_v8 = vld [vmem:[%s11233_s30 + $0x18] sm:$0xff]  }
  0xe8   : > { %v1936_v43 = vshll.u32 %v11543_v8, 16 }
  0xee   : > { %9817 = vmatmul.mubr.msk.bf16.gmra.mrb[32].mxu0 %vm581_vm2, %v1077_v40  ;;  %v1509_v40 = vsel %vm1043_vm3, %v1506_v30, %v1508_v50  ;;  %v1983_v30 = vrot.slane %v1981_v25, 2  ;;  %v1999_v50 = vshll.u32 %v11596_v31, 16 }
  0xef   : > { %9822 = vmatprep.mubr.msk.bf16.mxu0 %vm581_vm2, %v1479_v52  ;;  %v1933_v52 = vshrl.u32 %v11543_v8, 16 }
  0xf6   : > { %9823 = vmatmul.mubr.msk.bf16.vlgmr.msra.gmra.mrb[0].mxu0 %vm581_vm2, %v1481_v55  ;;  %v1942_v55 = vshrl.u32 %v11546_v49, 16 }
  0xf7   : > { %9859 = vmatpush3.bf16.msra.mxu0 %v2136_v58  ;;  %9826 = vmatprep.mubr.msk.bf16.mxu0 %vm581_vm2, %v1483_v59  ;;  %v1935_v58 = vrot.slane %v1933_v52, 1  ;;  %v1938_v59 = vrot.slane %v1936_v43, 2  ;;  %v2014_v43 = vshrl.u32 %v11610_v44, 16 }
  0xf8   : > { %10971 = vmatprep.subr.msk.bf16.mxu0 %vm636_vm0, %v11488_v61  ;;  %v1944_v63 = vrot.slane %v1942_v55, 1  ;;  %v2007_v55 = vrot.slane %v2005_v46, 1 }
  0xfe   : > { %9827 = vmatmul.mubr.msk.bf16.gmra.mrb[4].mxu0 %vm581_vm2, %v1485_v0  ;;  %v1947_v0 = vrot.slane %v1945_v57, 2  ;;  %v2010_v57 = vrot.slane %v2008_v48, 2 }
  0xff   : > { %9830 = vmatprep.mubr.msk.bf16.mxu0 %vm581_vm2, %v1487_v2  ;;  %v1939_v2 = vor.u32 %v1938_v59, %v1935_v58  ;;  %v11620_v58 = vld [vmem:[%s11233_s30 + $0x68] sm:$0xff]  }
 0x100   : > { %v1948_v10 = vor.u32 %v1947_v0, %v1944_v63  ;;  %v2019_v63 = vrot.slane %v2017_v45, 2  ;;  %v11624_v0 = vld [vmem:[%s11233_s30 + $0x70] sm:$0xff]   ;;  %v2023_v3 = vshrl.u32 %v11620_v58, 16  ;;  %v2026_v9 = vshll.u32 %v11620_v58, 16 }
 0x101   : > { %v2035_v33 = vshll.u32 %v11624_v0, 16 }
 0x102   : > { %v1949_v4 = vsel %vm1914_vm4, %v1939_v2, %v1948_v10 }
 0x106   : > { %9831 = vmatmul.mubr.msk.bf16.gmra.mrb[8].mxu0 %vm581_vm2, %v1489_v5  ;;  %v1960_v5 = vshrl.u32 %v11559_v1, 16 }
 0x107   : > { %9834 = vmatprep.mubr.msk.bf16.mxu0 %vm581_vm2, %v1491_v11  ;;  %v1940_v11 = vsel %vm1914_vm4, %v1930_v54, %v1939_v2  ;;  %v2011_v2 = vor.u32 %v2010_v57, %v2007_v55 }
 0x10e   : > { %9835 = vmatmul.mubr.msk.bf16.gmra.mrb[12].mxu0 %vm581_vm2, %v1493_v17  ;;  %v2450_v17 = vsel %vm636_vm0, %v11488_v61, 0  ;;  %v1969_v61 = vshrl.u32 %v11569_v16, 16 }
 0x10f   : > { %9838 = vmatprep.mubr.msk.bf16.mxu0 %vm581_vm2, %v1495_v18  ;;  %v1962_v18 = vrot.slane %v1960_v5, 1  ;;  %v2032_v5 = vshrl.u32 %v11624_v0, 16 }
 0x116   : > { %9839 = vmatmul.mubr.msk.bf16.gmra.mrb[16].mxu0 %vm581_vm2, %v1497_v6  ;;  %v1957_v6 = vor.u32 %v1956_v14, %v1953_v12  ;;  %v2025_v12 = vrot.slane %v2023_v3, 1  ;;  %v2028_v14 = vrot.slane %v2026_v9, 2  ;;  %v2359_v3 = vrot.slane %v11534_v36, 2 }
 0x117   : > { %9842 = vmatprep.mubr.msk.bf16.mxu0 %vm581_vm2, %v1499_v7  ;;  %v1966_v7 = vor.u32 %v1965_v19, %v1962_v18  ;;  %v2034_v18 = vrot.slane %v2032_v5, 1  ;;  %v2037_v19 = vrot.slane %v2035_v33, 2  ;;  %v2361_v5 = vrot.slane %v11543_v8, 2 }
 0x118   : > { %v1958_v26 = vsel %vm1914_vm4, %v1948_v10, %v1957_v6  ;;  %v2365_v8 = vrot.slane %v11555_v60, 2 }
 0x119   : > { %v1967_v23 = vsel %vm1914_vm4, %v1957_v6, %v1966_v7  ;;  %v11638_v6 = vld [vmem:[%s11233_s30 + $0x80] sm:$0xff]   ;;  %v2038_v13 = vor.u32 %v2037_v19, %v2034_v18  ;;  %v2362_v33 = vsel %vm2357_vm5, %v2359_v3, %v2361_v5  ;;  %v2371_v18 = vrot.slane %v11575_v20, 2 }
 0x11a   : > { %v2050_v25 = vshrl.u32 %v11638_v6, 16  ;;  %v2379_v20 = vrot.slane %v11610_v44, 2 }
 0x11e   : > { %9843 = vmatmul.mubr.msk.bf16.gmra.mrb[20].mxu0 %vm581_vm2, %v1501_v27  ;;  %v1971_v27 = vrot.slane %v1969_v61, 1  ;;  %v2029_v61 = vor.u32 %v2028_v14, %v2025_v12  ;;  %v11688_v12 = vld [vmem:[%s13450_s1 + $0x1c] sm:$0xf] }
 0x11f   : > { %9846 = vmatprep.mubr.msk.bf16.mxu0 %vm581_vm2, %v1503_v15  ;;  %v11592_v15 = vld [vmem:[%s11233_s30 + $0x48] sm:$0xff]  }
 0x120   : > { %v1987_v32 = vshrl.u32 %v11592_v15, 16  ;;  %v1990_v34 = vshll.u32 %v11592_v15, 16 }
 0x122   : > { %v1989_v37 = vrot.slane %v1987_v32, 1  ;;  %v1992_v38 = vrot.slane %v1990_v34, 2  ;;  %v11652_v34 = vld [vmem:[%s11233_s30 + $0x90] sm:$0xff]  }
 0x124   : > { %v1993_v24 = vor.u32 %v1992_v38, %v1989_v37  ;;  %v2068_v37 = vshrl.u32 %v11652_v34, 16  ;;  %v2071_v38 = vshll.u32 %v11652_v34, 16 }
 0x126   : > { %9847 = vmatmul.mubr.msk.bf16.gmra.mrb[24].mxu0 %vm581_vm2, %v1505_v39  ;;  %v1975_v39 = vor.u32 %v1974_v28, %v1971_v27  ;;  %v2070_v46 = vrot.slane %v2068_v37, 1  ;;  %v2073_v48 = vrot.slane %v2071_v38, 2  ;;  %v11755_v38 = vld [vmem:[%s11233_s30 + $0x28] sm:$0xff]  }
 0x127   : > { %9850 = vmatprep.mubr.msk.bf16.mxu0 %vm581_vm2, %v1507_v41  ;;  %v1984_v41 = vor.u32 %v1983_v30, %v1980_v29  ;;  %v11648_v29 = vld [vmem:[%s11233_s30 + $0x88] sm:$0xff]   ;;  %v2039_v30 = vsel %vm1914_vm4, %v2029_v61, %v2038_v13 }
 0x128   : > { %v2074_v45 = vor.u32 %v2073_v48, %v2070_v46  ;;  %v3336_v46 = vsel %vm636_vm0, %v11688_v12, 0 }
 0x129   : > { %v1985_v56 = vsel %vm1914_vm4, %v1975_v39, %v1984_v41  ;;  %v1994_v54 = vsel %vm1914_vm4, %v1984_v41, %v1993_v24 }
 0x12e   : > { %9851 = vmatmul.mubr.msk.bf16.gmra.mrb[28].mxu0 %vm581_vm2, %v1509_v40  ;;  %v1998_v40 = vrot.slane %v1996_v47, 1  ;;  %v2059_v47 = vshrl.u32 %v11648_v29, 16 }
 0x12f   : > { %9854 = vmatprep.mubr.msk.bf16.mxu0 %vm581_vm2, %v1511_v42  ;;  %v2001_v42 = vrot.slane %v1999_v50, 2  ;;  %v2062_v50 = vshll.u32 %v11648_v29, 16 }
 0x131   : > { %v2002_v52 = vor.u32 %v2001_v42, %v1998_v40  ;;  %v2061_v40 = vrot.slane %v2059_v47, 1  ;;  %v2064_v42 = vrot.slane %v2062_v50, 2 }
 0x133   : > { %v2003_v59 = vsel %vm1914_vm4, %v1993_v24, %v2002_v52 }
 0x136   : > { %9855 = vmatmul.mubr.msk.bf16.gmra.mrb[32].mxu0 %vm581_vm2, %v1510_v51  ;;  %v1976_v51 = vsel %vm1914_vm4, %v1966_v7, %v1975_v39  ;;  %v2052_v39 = vrot.slane %v2050_v25, 1 }
 0x137   : > { %9860 = vmatprep.mubr.msk.bf16.mxu0 %vm581_vm2, %v1931_v62  ;;  %v2016_v62 = vrot.slane %v2014_v43, 1  ;;  %v11665_v43 = vld [vmem:[%s11233_s30 + $0x98] ss:$0 sps:$4 sm:$0x11]  }
 0x138   : > { %v2077_v57 = vshll.u32 %v11665_v43, 16 }
 0x139   : > { %v2020_v10 = vor.u32 %v2019_v63, %v2016_v62 }
 0x13a   : > { %v2079_v63 = vrot.slane %v2077_v57, 2  ;;  %v11784_v57 = vld [vmem:[%s11233_s30 + $0x40] sm:$0xff]  }
 0x13b   : > { %v2030_v27 = vsel %vm1914_vm4, %v2020_v10, %v2029_v61  ;;  %v2375_v61 = vrot.slane %v11596_v31, 2  ;;  %v2383_v31 = vrot.slane %v11624_v0, 2  ;;  %v2391_v0 = vrot.slane %v11652_v34, 2 }
 0x13c   : > { %v2080_v9 = vsel %vm1914_vm4, %v2074_v45, %v2079_v63  ;;  %v2808_v63 = vrot.slane %v11784_v57, 2 }
 0x13e   : > { %9861 = vmatmul.mubr.msk.bf16.vlgmr.msra.gmra.mrb[0].mxu0 %vm581_vm2, %v1940_v11  ;;  %v2012_v11 = vsel %vm1914_vm4, %v2002_v52, %v2011_v2  ;;  %v2065_v52 = vor.u32 %v2064_v42, %v2061_v40  ;;  %v2802_v40 = vrot.slane %v11755_v38, 2 }
 0x13f   : > { %9897 = vmatpush3.bf16.msra.mxu0 %v2450_v17  ;;  %9864 = vmatprep.mubr.msk.bf16.mxu0 %vm581_vm2, %v1949_v4  ;;  %v11634_v17 = vld [vmem:[%s11233_s30 + $0x78] sm:$0xff]   ;;  %v2021_v4 = vsel %vm1914_vm4, %v2011_v2, %v2020_v10 }
 0x140   : > { %10972 = vmatprep.subr.msk.bf16.mxu0 %vm636_vm0, %v11580_v21  ;;  %v2041_v22 = vshrl.u32 %v11634_v17, 16  ;;  %v2044_v7 = vshll.u32 %v11634_v17, 16  ;;  %v2385_v44 = vrot.slane %v11634_v17, 2 }
 0x142   : > { %v2043_v28 = vrot.slane %v2041_v22, 1 }
 0x146   : > { %9865 = vmatmul.mubr.msk.bf16.gmra.mrb[4].mxu0 %vm581_vm2, %v1958_v26  ;;  %v2053_v26 = vshll.u32 %v11638_v6, 16 }
 0x147   : > { %9868 = vmatprep.mubr.msk.bf16.mxu0 %vm581_vm2, %v1967_v23  ;;  %v2046_v23 = vrot.slane %v2044_v7, 2 }
 0x148   : > { %v2055_v32 = vrot.slane %v2053_v26, 2 }
 0x149   : > { %v2047_v41 = vor.u32 %v2046_v23, %v2043_v28  ;;  %v2386_v28 = vsel %vm2357_vm5, %v2383_v31, %v2385_v44 }
 0x14e   : > { %9869 = vmatmul.mubr.msk.bf16.gmra.mrb[8].mxu0 %vm581_vm2, %v1976_v51  ;;  %v2056_v51 = vor.u32 %v2055_v32, %v2052_v39  ;;  %v11734_v39 = vld [vmem:[%s11233_s30 + $0x14] sm:$0xf] }
 0x14f   : > { %9872 = vmatprep.mubr.msk.bf16.mxu0 %vm581_vm2, %v1985_v56  ;;  %v2048_v56 = vsel %vm1914_vm4, %v2038_v13, %v2047_v41 }
 0x150   : > { %v2057_v24 = vsel %vm1914_vm4, %v2047_v41, %v2056_v51  ;;  %v2066_v55 = vsel %vm1914_vm4, %v2056_v51, %v2065_v52  ;;  %v11742_v41 = vld [vmem:[%s11233_s30 + $0x18] sm:$0xff]   ;;  %v11751_v51 = vld [vmem:[%s11233_s30 + $0x20] sm:$0xff]  }
 0x151   : > { %v2798_v47 = vrot.slane %v11742_v41, 2 }
 0x156   : > { %9873 = vmatmul.mubr.msk.bf16.gmra.mrb[12].mxu0 %vm581_vm2, %v1994_v54  ;;  %v2351_v54 = vld [vmem:[%s11233_s30 + $0x8] sm:$0xc] }
 0x157   : > { %9876 = vmatprep.mubr.msk.bf16.mxu0 %vm581_vm2, %v2003_v59  ;;  %v2075_v59 = vsel %vm1914_vm4, %v2065_v52, %v2074_v45  ;;  %v8857_v62 = vcombine.low %v2351_v54, %v11526_v35  ;;  %v2363_v35 = vrot.slane %v11546_v49, 2  ;;  %v2367_v49 = vrot.slane %v11559_v1, 2  ;;  %v11769_v52 = vld [vmem:[%s11233_s30 + $0x38] sm:$0xff]  }
 0x158   : > { %v2373_v1 = vrot.slane %v11592_v15, 2  ;;  %v2381_v15 = vrot.slane %v11620_v58, 2  ;;  %v2389_v58 = vrot.slane %v11648_v29, 2  ;;  %v2393_v29 = vrot.slane %v11665_v43, 2  ;;  %v11774_v43 = vld [vmem:[%s13450_s1 + $0x20] sm:$0xf] }
 0x159   : > { %v2358_v2 = vrot.slane %v8857_v62, 2  ;;  %v2364_v36 = vsel %vm2357_vm5, %v2361_v5, %v2363_v35  ;;  %v2368_v14 = vsel %vm2357_vm5, %v2365_v8, %v2367_v49  ;;  %v2806_v54 = vrot.slane %v11769_v52, 2  ;;  %v11788_v62 = vld [vmem:[%s11233_s30 + $0x48] sm:$0xff]   ;;  %v11800_v5 = vld [vmem:[%s11233_s30 + $0x58] sm:$0xff]  }
 0x15a   : > { %v2374_v22 = vsel %vm2357_vm5, %v2371_v18, %v2373_v1  ;;  %v2376_v7 = vsel %vm2357_vm5, %v2373_v1, %v2375_v61  ;;  %v2382_v26 = vsel %vm2357_vm5, %v2379_v20, %v2381_v15  ;;  %v2394_v50 = vsel %vm2357_vm5, %v2391_v0, %v2393_v29  ;;  %v278_v29 = vld [vmem:[%s13454_s5 + $0x38] sm:$0xff] }
 0x15b   : > { %v2360_v10 = vsel %vm2357_vm5, %v2358_v2, %v2359_v3  ;;  %v2810_v2 = vrot.slane %v11788_v62, 2  ;;  %v2809_v3 = vsel %vm2357_vm5, %v2806_v54, %v2808_v63 }
 0x15e   : > { %9877 = vmatmul.mubr.msk.bf16.gmra.mrb[16].mxu0 %vm581_vm2, %v2012_v11  ;;  %v2889_v11 = vsel %vm636_vm0, %v11580_v21, 0  ;;  %v2366_v21 = vsel %vm2357_vm5, %v2363_v35, %v2365_v8  ;;  %v11812_v8 = vld [vmem:[%s11233_s30 + $0x68] sm:$0xff]  }
 0x15f   : > { %9880 = vmatprep.mubr.msk.bf16.mxu0 %vm581_vm2, %v2021_v4  ;;  %v2369_v4 = vrot.slane %v11569_v16, 2  ;;  %v2377_v16 = vrot.slane %v11606_v53, 2  ;;  %v2384_v53 = vsel %vm2357_vm5, %v2381_v15, %v2383_v31  ;;  %v11845_v15 = vld [vmem:[%s11233_s30 + $0x80] sm:$0xff]  }
 0x161   : > { %v2370_v19 = vsel %vm2357_vm5, %v2367_v49, %v2369_v4  ;;  %v2372_v60 = vsel %vm2357_vm5, %v2369_v4, %v2371_v18  ;;  %v2378_v13 = vsel %vm2357_vm5, %v2375_v61, %v2377_v16  ;;  %v2380_v25 = vsel %vm2357_vm5, %v2377_v16, %v2379_v20  ;;  %v11820_v4 = vld [vmem:[%s11233_s30 + $0x70] sm:$0xff]  }
 0x162   : > { %v2820_v1 = vrot.slane %v11820_v4, 2  ;;  %v11173_v61 = vmov 0  }
 0x163   : > { %10996 = vset.pattern.permute.xlu0 %v11173_v61  ;;  %270 = vst.msk [vmem:[#allocation2 + $0xa0] sm:$0x3] %vm256_vm6, %v11173_v61  ;;  %10997 = vset.pattern.permute.xlu1 %v11173_v61  ;;  %vm4667_vm6 = vsmask.f32 7942 }
 0x164   : > { %254 = vst.msk [vmem:[#allocation2] sm:$0xf] %vm253_vm9, %v11173_v61  ;;  %255 = vst.msk [vmem:[#allocation2 + $0x4] sm:$0xf] %vm253_vm9, %v11173_v61 }
 0x165   : > { %268 = vst.msk [vmem:[#allocation2 + $0x9c] sm:$0xf] %vm253_vm9, %v11173_v61 }
 0x166   : > { %9881 = vmatmul.mubr.msk.bf16.gmra.mrb[20].mxu0 %vm581_vm2, %v2030_v27  ;;  %v2387_v27 = vrot.slane %v11638_v6, 2  ;;  %v2392_v6 = vsel %vm2357_vm5, %v2389_v58, %v2391_v0 }
 0x167   : > { %9884 = vmatprep.mubr.msk.bf16.mxu0 %vm581_vm2, %v2039_v30  ;;  %v2665_v30 = vld [vmem:[%s11233_s30 + $0x10] sm:$0xc] }
 0x168   : > { %v2388_v23 = vsel %vm2357_vm5, %v2385_v44, %v2387_v27  ;;  %v2390_v17 = vsel %vm2357_vm5, %v2387_v27, %v2389_v58  ;;  %v11739_v32 = vcombine.low %v2665_v30, %v11734_v39  ;;  %v275_v44 = vld [vmem:[%s13454_s5 + $0x20] sm:$0xff]  ;;  %v2824_v27 = vrot.slane %v11845_v15, 2  ;;  %v277_v58 = vld [vmem:[%s13454_s5 + $0x30] sm:$0xff] }
 0x169   : > { %v11869_v30 = vld [vmem:[%s11233_s30 + $0x90] sm:$0xff]  }
 0x16a   : > { %v2797_v34 = vrot.slane %v11739_v32, 2 }
 0x16c   : > { %v2799_v37 = vsel %vm2357_vm5, %v2797_v34, %v2798_v47  ;;  %v279_v34 = vld [vmem:[%s13454_s5 + $0x40] sm:$0xff] }
 0x16e   : > { %9885 = vmatmul.mubr.msk.bf16.gmra.mrb[24].mxu0 %vm581_vm2, %v2048_v56  ;;  %v2800_v56 = vrot.slane %v11751_v51, 2 }
 0x16f   : > { %9888 = vmatprep.mubr.msk.bf16.mxu0 %vm581_vm2, %v2057_v24  ;;  %v11763_v24 = vld [vmem:[%s11233_s30 + $0x30] sm:$0xff]  }
 0x170   : > { %v2801_v42 = vsel %vm2357_vm5, %v2798_v47, %v2800_v56  ;;  %v2803_v48 = vsel %vm2357_vm5, %v2800_v56, %v2802_v40  ;;  %v2804_v45 = vrot.slane %v11763_v24, 2  ;;  %v2828_v47 = vrot.slane %v11869_v30, 2 }
 0x171   : > { %v3115_v56 = vshll.u32 %v11739_v32, 16 }
 0x176   : > { %9889 = vmatmul.mubr.msk.bf16.gmra.mrb[28].mxu0 %vm581_vm2, %v2066_v55  ;;  %v2805_v55 = vsel %vm2357_vm5, %v2802_v40, %v2804_v45  ;;  %v3120_v40 = vshrl.u32 %v11742_v41, 16 }
 0x177   : > { %9892 = vmatprep.mubr.msk.bf16.mxu0 %vm581_vm2, %v2075_v59  ;;  %v2807_v59 = vsel %vm2357_vm5, %v2804_v45, %v2806_v54 }
 0x17e   : > { %9893 = vmatmul.mubr.msk.bf16.gmra.mrb[32].mxu0 %vm581_vm2, %v2080_v9  ;;  %v11796_v9 = vld [vmem:[%s11233_s30 + $0x50] sm:$0xff]  }
 0x17f   : > { %9898 = vmatprep.mubr.msk.bf16.mxu0 %vm581_vm2, %v2360_v10  ;;  %v2811_v10 = vsel %vm2357_vm5, %v2808_v63, %v2810_v2  ;;  %v2812_v35 = vrot.slane %v11796_v9, 2  ;;  %v3122_v63 = vrot.slane %v3120_v40, 2  ;;  %v290_v40 = vld [vmem:[%s13454_s5 + $0x98] sm:$0xff] }
 0x186   : > { %9899 = vmatmul.mubr.msk.bf16.vlgmr.msra.gmra.mrb[0].mxu0 %vm581_vm2, %v2362_v33  ;;  %v2814_v33 = vrot.slane %v11800_v5, 2 }
 0x187   : > { %9935 = vmatpush3.bf16.msra.mxu0 %v2889_v11  ;;  %9902 = vmatprep.mubr.msk.bf16.mxu0 %vm581_vm2, %v2364_v36  ;;  %v2813_v11 = vsel %vm2357_vm5, %v2810_v2, %v2812_v35  ;;  %v11808_v36 = vld [vmem:[%s11233_s30 + $0x60] sm:$0xff]  }
 0x188   : > { %10973 = vmatprep.subr.msk.bf16.mxu0 %vm636_vm0, %v11688_v12  ;;  %v2815_v12 = vsel %vm2357_vm5, %v2812_v35, %v2814_v33  ;;  %v2816_v49 = vrot.slane %v11808_v36, 2 }
 0x18e   : > { %9903 = vmatmul.mubr.msk.bf16.gmra.mrb[4].mxu0 %vm581_vm2, %v2366_v21  ;;  %v2818_v21 = vrot.slane %v11812_v8, 2 }
 0x18f   : > { %9906 = vmatprep.mubr.msk.bf16.mxu0 %vm581_vm2, %v2368_v14  ;;  %v2817_v14 = vsel %vm2357_vm5, %v2814_v33, %v2816_v49  ;;  %v3129_v33 = vshrl.u32 %v11751_v51, 16 }
 0x190   : > { %v2819_v18 = vsel %vm2357_vm5, %v2816_v49, %v2818_v21 }
 0x191   : > { %v3131_v61 = vrot.slane %v3129_v33, 2 }
 0x196   : > { %9907 = vmatmul.mubr.msk.bf16.gmra.mrb[8].mxu0 %vm581_vm2, %v2370_v19  ;;  %v11824_v19 = vld [vmem:[%s11233_s30 + $0x78] sm:$0xff]  }
 0x197   : > { %9910 = vmatprep.mubr.msk.bf16.mxu0 %vm581_vm2, %v2372_v60  ;;  %v259_v60 = vld [vmem:[#allocation2 + $0x8] sm:$0x3]  ;;  %v2822_v16 = vrot.slane %v11824_v19, 2 }
 0x198   : > { %v260_v20 = vsel %vm258_vm8, 0, %v259_v60  ;;  %v285_v60 = vld [vmem:[%s13454_s5 + $0x70] sm:$0xff]  ;;  %vm12142_vm8 = vmand %vm4666_vm15, %vm4667_vm6 }
 0x199   : > { %261 = vst [vmem:[#allocation2 + $0x8] sm:$0x3] %v260_v20  ;;  %v2823_v31 = vsel %vm2357_vm5, %v2820_v1, %v2822_v16  ;;  %v2825_v0 = vsel %vm2357_vm5, %v2822_v16, %v2824_v27 }
 0x19e   : > { %9911 = vmatmul.mubr.msk.bf16.gmra.mrb[12].mxu0 %vm581_vm2, %v2374_v22  ;;  %v271_v22 = vld [vmem:[%s13454_s5] sm:$0xff] }
 0x19f   : > { %9914 = vmatprep.mubr.msk.bf16.mxu0 %vm581_vm2, %v2376_v7  ;;  %v273_v7 = vld [vmem:[%s13454_s5 + $0x10] sm:$0xff]  ;;  %3946 = vperm.xlu0 %10996, %v271_v22  }
 0x1a0   : > { %3956 = vperm.xlu1 %10997, %v273_v7  }
 0x1a6   : > { %9915 = vmatmul.mubr.msk.bf16.gmra.mrb[16].mxu0 %vm581_vm2, %v2378_v13  ;;  %v272_v13 = vld [vmem:[%s13454_s5 + $0x8] sm:$0xff] }
 0x1a7   : > { %9918 = vmatprep.mubr.msk.bf16.mxu0 %vm581_vm2, %v2380_v25  ;;  %v2821_v25 = vsel %vm2357_vm5, %v2818_v21, %v2820_v1  ;;  %3951 = vperm.xlu0 %10996, %v272_v13   ;;  %v3138_v21 = vshrl.u32 %v11755_v38, 16  ;;  %v286_v13 = vld [vmem:[%s13454_s5 + $0x78] sm:$0xff] }
 0x1a9   : > { %v3140_v16 = vrot.slane %v3138_v21, 2  ;;  %v3183_v21 = vshrl.u32 %v11796_v9, 16 }
 0x1ab   : > { %3966 = vperm.xlu0 %10996, %v275_v44   ;;  %v3150_v44 = vshll.u32 %v11763_v24, 16 }
 0x1ae   : > { %9919 = vmatmul.mubr.msk.bf16.gmra.mrb[20].mxu0 %vm581_vm2, %v2382_v26  ;;  %v11849_v26 = vld [vmem:[%s11233_s30 + $0x88] sm:$0xff]  }
 0x1af   : > { %9922 = vmatprep.mubr.msk.bf16.mxu0 %vm581_vm2, %v2384_v53  ;;  %v274_v53 = vld [vmem:[%s13454_s5 + $0x18] sm:$0xff]  ;;  %3976 = vperm.xlu0 %10996, %v277_v58   ;;  %v288_v58 = vld [vmem:[%s13454_s5 + $0x88] sm:$0xff] }
 0x1b0   : > { %3961 = vperm.xlu1 %10997, %v274_v53   ;;  %v3147_v53 = vshrl.u32 %v11763_v24, 16 }
 0x1b3   : > { %3986 = vperm.xlu0 %10996, %v279_v34   ;;  %v3152_v34 = vrot.slane %v3150_v44, 3  ;;  %v299_v44 = vld [vmem:[%s13454_s5 + $0xe0] sm:$0xff] }
 0x1b6   : > { %9923 = vmatmul.mubr.msk.bf16.gmra.mrb[24].mxu0 %vm581_vm2, %v2386_v28  ;;  %v2826_v28 = vrot.slane %v11849_v26, 2 }
 0x1b7   : > { %9926 = vmatprep.mubr.msk.bf16.mxu0 %vm581_vm2, %v2388_v23  ;;  %v276_v23 = vld [vmem:[%s13454_s5 + $0x28] sm:$0xff] }
 0x1b8   : > { %3971 = vperm.xlu1 %10997, %v276_v23   ;;  %v2829_v45 = vsel %vm2357_vm5, %v2826_v28, %v2828_v47  ;;  %v3159_v23 = vshll.u32 %v11769_v52, 16 }
 0x1bc   : > { %3981 = vperm.xlu1 %10997, %v278_v29   ;;  %v3149_v29 = vrot.slane %v3147_v53, 2  ;;  %v298_v53 = vld [vmem:[%s13454_s5 + $0xd8] sm:$0xff] }
 0x1be   : > { %9927 = vmatmul.mubr.msk.bf16.gmra.mrb[28].mxu0 %vm581_vm2, %v2390_v17  ;;  %v11872_v17 = vld [vmem:[%s11233_s30 + $0x98] sm:$0xff]  }
 0x1bf   : > { %9930 = vmatprep.mubr.msk.bf16.mxu0 %vm581_vm2, %v2392_v6  ;;  %v2827_v6 = vsel %vm2357_vm5, %v2824_v27, %v2826_v28  ;;  %v3156_v28 = vshrl.u32 %v11769_v52, 16 }
 0x1c6   : > { %9931 = vmatmul.mubr.msk.bf16.gmra.mrb[32].mxu0 %vm581_vm2, %v2394_v50  ;;  %v2830_v50 = vrot.slane %v11872_v17, 2 }
 0x1c7   : > { %9936 = vmatprep.mubr.msk.bf16.mxu0 %vm581_vm2, %v2799_v37  ;;  %v3112_v37 = vshrl.u32 %v11739_v32, 16 }
 0x1c8   : > { %v2831_v54 = vsel %vm2357_vm5, %v2828_v47, %v2830_v50  ;;  %v3650_v47 = vsel %vm636_vm0, %v11774_v43, 0 }
 0x1c9   : > { %v3114_v32 = vrot.slane %v3112_v37, 2  ;;  %v3158_v37 = vrot.slane %v3156_v28, 2  ;;  %v3201_v28 = vshrl.u32 %v11808_v36, 16 }
 0x1ce   : > { %9937 = vmatmul.mubr.msk.bf16.vlgmr.msra.gmra.mrb[0].mxu0 %vm581_vm2, %v2801_v42  ;;  %v3123_v42 = vshll.u32 %v11742_v41, 16 }
 0x1cf   : > { %9973 = vmatpush3.bf16.msra.mxu0 %v3336_v46  ;;  %9940 = vmatprep.mubr.msk.bf16.mxu0 %vm581_vm2, %v2803_v48  ;;  %v280_v46 = vld [vmem:[%s13454_s5 + $0x48] sm:$0xff]  ;;  %v281_v48 = vld [vmem:[%s13454_s5 + $0x50] sm:$0xff] }
 0x1d0   : > { %10974 = vmatprep.subr.msk.bf16.mxu0 %vm636_vm0, %v11774_v43  ;;  %3991 = vperm.xlu1 %10997, %v280_v46   ;;  %v3125_v2 = vrot.slane %v3123_v42, 3  ;;  %v291_v42 = vld [vmem:[%s13454_s5 + $0xa0] sm:$0xff]  ;;  %v3153_v46 = vor.u32 %v3152_v34, %v3149_v29  ;;  %v3165_v43 = vshrl.u32 %v11784_v57, 16  ;;  %v300_v29 = vld [vmem:[%s13454_s5 + $0xe8] sm:$0xff]  ;;  %v301_v34 = vld [vmem:[%s13454_s5 + $0xf0] sm:$0xff] }
 0x1d1   : > { %3996 = vperm.xlu0 %10996, %v281_v48   ;;  %v3168_v48 = vshll.u32 %v11784_v57, 16 }
 0x1d2   : > { %v3126_v49 = vor.u32 %v3125_v2, %v3122_v63  ;;  %v3167_v2 = vrot.slane %v3165_v43, 2  ;;  %v303_v43 = vld [vmem:[%s13454_s5 + $0x100] sm:$0xff] }
 0x1d6   : > { %9941 = vmatmul.mubr.msk.bf16.gmra.mrb[4].mxu0 %vm581_vm2, %v2805_v55  ;;  %v11074_v55 = vld [vmem:[%s11233_s30 + $0xa0] ss:$0 sps:$4 sm:$0x11]  }
 0x1d7   : > { %9944 = vmatprep.mubr.msk.bf16.mxu0 %vm581_vm2, %v2807_v59  ;;  %v3117_v59 = vrot.slane %v3115_v56, 3  ;;  %v2832_v35 = vrot.slane %v11074_v55, 2  ;;  %v3161_v56 = vrot.slane %v3159_v23, 3  ;;  %v3177_v55 = vshll.u32 %v11788_v62, 16 }
 0x1d8   : > { %v3204_v23 = vshll.u32 %v11808_v36, 16 }
 0x1d9   : > { %v2833_v1 = vsel %vm2357_vm5, %v2830_v50, %v2832_v35  ;;  %v3179_v33 = vrot.slane %v3177_v55, 3 }
 0x1de   : > { %9945 = vmatmul.mubr.msk.bf16.gmra.mrb[8].mxu0 %vm581_vm2, %v2809_v3  ;;  %v282_v3 = vld [vmem:[%s13454_s5 + $0x58] sm:$0xff] }
 0x1df   : > { %9948 = vmatprep.mubr.msk.bf16.mxu0 %vm581_vm2, %v2811_v10  ;;  %v283_v10 = vld [vmem:[%s13454_s5 + $0x60] sm:$0xff]  ;;  %4001 = vperm.xlu1 %10997, %v282_v3   ;;  %v3170_v3 = vrot.slane %v3168_v48, 3 }
 0x1e0   : > { %4006 = vperm.xlu0 %10996, %v283_v10  }
 0x1e4   : > { %4016 = vperm.xlu0 %10996, %v285_v60   ;;  %v3192_v60 = vshrl.u32 %v11800_v5, 16 }
 0x1e6   : > { %9949 = vmatmul.mubr.msk.bf16.gmra.mrb[12].mxu0 %vm581_vm2, %v2813_v11  ;;  %v3132_v11 = vshll.u32 %v11751_v51, 16 }
 0x1e7   : > { %9952 = vmatprep.mubr.msk.bf16.mxu0 %vm581_vm2, %v2815_v12  ;;  %v3118_v12 = vor.u32 %v3117_v59, %v3114_v32  ;;  %v292_v32 = vld [vmem:[%s13454_s5 + $0xa8] sm:$0xff]  ;;  %v293_v59 = vld [vmem:[%s13454_s5 + $0xb0] sm:$0xff] }
 0x1e8   : > { %v3134_v22 = vrot.slane %v3132_v11, 3  ;;  %v294_v11 = vld [vmem:[%s13454_s5 + $0xb8] sm:$0xff] }
 0x1e9   : > { %v3127_v7 = vsel %vm3110_vm10, %v3118_v12, %v3126_v49  ;;  %v295_v12 = vld [vmem:[%s13454_s5 + $0xc0] sm:$0xff] }
 0x1ee   : > { %9953 = vmatmul.mubr.msk.bf16.gmra.mrb[16].mxu0 %vm581_vm2, %v2817_v14  ;;  %v3141_v14 = vshll.u32 %v11755_v38, 16 }
 0x1ef   : > { %9956 = vmatprep.mubr.msk.bf16.mxu0 %vm581_vm2, %v2819_v18  ;;  %v284_v18 = vld [vmem:[%s13454_s5 + $0x68] sm:$0xff] }
 0x1f0   : > { %4011 = vperm.xlu1 %10997, %v284_v18   ;;  %v3143_v20 = vrot.slane %v3141_v14, 3  ;;  %v3186_v14 = vshll.u32 %v11796_v9, 16 }
 0x1f2   : > { %v3144_v27 = vor.u32 %v3143_v20, %v3140_v16  ;;  %v3185_v16 = vrot.slane %v3183_v21, 2  ;;  %v3188_v20 = vrot.slane %v3186_v14, 3  ;;  %v3237_v14 = vshrl.u32 %v11845_v15, 16 }
 0x1f4   : > { %4021 = vperm.xlu1 %10997, %v286_v13   ;;  %v3154_v63 = vsel %vm3110_vm10, %v3144_v27, %v3153_v46 }
 0x1f6   : > { %9957 = vmatmul.mubr.msk.bf16.gmra.mrb[20].mxu0 %vm581_vm2, %v2821_v25  ;;  %v287_v25 = vld [vmem:[%s13454_s5 + $0x80] sm:$0xff] }
 0x1f7   : > { %9960 = vmatprep.mubr.msk.bf16.mxu0 %vm581_vm2, %v2823_v31  ;;  %v3135_v31 = vor.u32 %v3134_v22, %v3131_v61  ;;  %4026 = vperm.xlu0 %10996, %v287_v25   ;;  %v296_v61 = vld [vmem:[%s13454_s5 + $0xc8] sm:$0xff]  ;;  %v297_v22 = vld [vmem:[%s13454_s5 + $0xd0] sm:$0xff]  ;;  %v3194_v25 = vrot.slane %v3192_v60, 2 }
 0x1f8   : > { %4031 = vperm.xlu1 %10997, %v288_v58  }
 0x1f9   : > { %v3145_v50 = vsel %vm3110_vm10, %v3135_v31, %v3144_v27  ;;  %v3189_v27 = vor.u32 %v3188_v20, %v3185_v16 }
 0x1fc   : > { %4041 = vperm.xlu1 %10997, %v290_v40  }
 0x1fe   : > { %9961 = vmatmul.mubr.msk.bf16.gmra.mrb[24].mxu0 %vm581_vm2, %v2825_v0  ;;  %v289_v0 = vld [vmem:[%s13454_s5 + $0x90] sm:$0xff] }
 0x1ff   : > { %9964 = vmatprep.mubr.msk.bf16.mxu0 %vm581_vm2, %v2827_v6  ;;  %v3136_v6 = vsel %vm3110_vm10, %v3126_v49, %v3135_v31  ;;  %4036 = vperm.xlu0 %10996, %v289_v0   ;;  %v3171_v49 = vor.u32 %v3170_v3, %v3167_v2  ;;  %v3210_v0 = vshrl.u32 %v11812_v8, 16  ;;  %v305_v2 = vld [vmem:[%s13454_s5 + $0x110] sm:$0xff] }
 0x200   : > { %4051 = vperm.xlu1 %10997, %v292_v32   ;;  %v3228_v32 = vshrl.u32 %v11824_v19, 16 }
 0x201   : > { %v3212_v40 = vrot.slane %v3210_v0, 2 }
 0x203   : > { %4046 = vperm.xlu0 %10996, %v291_v42  }
 0x204   : > { %4061 = vperm.xlu1 %10997, %v294_v11   ;;  %v3230_v11 = vrot.slane %v3228_v32, 2 }
 0x206   : > { %9965 = vmatmul.mubr.msk.bf16.gmra.mrb[28].mxu0 %vm581_vm2, %v2829_v45  ;;  %v3162_v45 = vor.u32 %v3161_v56, %v3158_v37  ;;  %v3206_v37 = vrot.slane %v3204_v23, 3  ;;  %v3267_v23 = vshll.u32 %v11872_v17, 16 }
 0x207   : > { %9968 = vmatprep.mubr.msk.bf16.mxu0 %vm581_vm2, %v2831_v54  ;;  %v3174_v54 = vshrl.u32 %v11788_v62, 16  ;;  %4056 = vperm.xlu0 %10996, %v293_v59   ;;  %v3231_v59 = vshll.u32 %v11824_v19, 16 }
 0x208   : > { %v3163_v10 = vsel %vm3110_vm10, %v3153_v46, %v3162_v45  ;;  %4071 = vperm.xlu1 %10997, %v296_v61   ;;  %v302_v46 = vld [vmem:[%s13454_s5 + $0xf8] sm:$0xff]  ;;  %v3249_v61 = vshll.u32 %v11849_v26, 16 }
 0x209   : > { %v3176_v35 = vrot.slane %v3174_v54, 2  ;;  %v3222_v54 = vshll.u32 %v11820_v4, 16 }
 0x20b   : > { %v3180_v18 = vor.u32 %v3179_v33, %v3176_v35  ;;  %4066 = vperm.xlu0 %10996, %v295_v12   ;;  %v3224_v35 = vrot.slane %v3222_v54, 3  ;;  %v3233_v12 = vrot.slane %v3231_v59, 3 }
 0x20c   : > { %4081 = vperm.xlu1 %10997, %v298_v53   ;;  %v3255_v53 = vshrl.u32 %v11869_v30, 16 }
 0x20d   : > { %v3181_v13 = vsel %vm3110_vm10, %v3171_v49, %v3180_v18  ;;  %v3234_v60 = vor.u32 %v3233_v12, %v3230_v11  ;;  %v3567_v11 = vrot.slane %v11769_v52, 3  ;;  %v3575_v52 = vrot.slane %v11800_v5, 3 }
 0x20e   : > { %9969 = vmatmul.mubr.msk.bf16.gmra.mrb[32].mxu0 %vm581_vm2, %v2833_v1  ;;  %v3195_v1 = vshll.u32 %v11800_v5, 16  ;;  %v3257_v0 = vrot.slane %v3255_v53, 2  ;;  %v3583_v5 = vrot.slane %v11824_v19, 3  ;;  %v3591_v19 = vrot.slane %v11872_v17, 3  ;;  %v265_v53 = vld [vmem:[#allocation2 + $0x98] sm:$0xf] }
 0x20f   : > { %9974 = vmatprep.mubr.msk.bf16.mxu0 %vm581_vm2, %v3127_v7  ;;  %v3172_v7 = vsel %vm3110_vm10, %v3162_v45, %v3171_v49  ;;  %4076 = vperm.xlu0 %10996, %v297_v22   ;;  %v3219_v45 = vshrl.u32 %v11820_v4, 16  ;;  %v306_v49 = vld [vmem:[%s13454_s5 + $0x118] sm:$0x3f] }
 0x210   : > { %v3197_v31 = vrot.slane %v3195_v1, 3  ;;  %4091 = vperm.xlu1 %10997, %v300_v29   ;;  %v3246_v1 = vshrl.u32 %v11849_v26, 16  ;;  %v12039_v29 = vld [vmem:[%s11233_s30 + $0xa0] ss:$0 sps:$4 sm:$0x33]  }
 0x212   : > { %v3198_v58 = vor.u32 %v3197_v31, %v3194_v25  ;;  %v3251_v25 = vrot.slane %v3249_v61, 3 }
 0x213   : > { %4086 = vperm.xlu0 %10996, %v299_v44   ;;  %v3258_v44 = vshll.u32 %v11869_v30, 16 }
 0x214   : > { %v3199_v56 = vsel %vm3110_vm10, %v3189_v27, %v3198_v58  ;;  %4101 = vperm.xlu1 %10997, %v302_v46   ;;  %v3551_v46 = vld [vmem:[%s11233_s30 + $0x10] sm:$0x8] }
 0x216   : > { %9975 = vmatmul.mubr.msk.bf16.vlgmr.msra.gmra.mrb[0].mxu0 %vm581_vm2, %v3136_v6  ;;  %v3213_v6 = vshll.u32 %v11812_v8, 16 }
 0x217   : > { %10011 = vmatpush3.bf16.msra.mxu0 %v3650_v47  ;;  %9978 = vmatprep.mubr.msk.bf16.mxu0 %vm581_vm2, %v3145_v50  ;;  %v3190_v47 = vsel %vm3110_vm10, %v3180_v18, %v3189_v27  ;;  %v3203_v50 = vrot.slane %v3201_v28, 2  ;;  %v3240_v18 = vshll.u32 %v11845_v15, 16  ;;  %v3264_v28 = vshrl.u32 %v11872_v17, 16 }
 0x218   : > { %v3215_v42 = vrot.slane %v3213_v6, 3  ;;  %4096 = vperm.xlu0 %10996, %v301_v34   ;;  %v3260_v6 = vrot.slane %v3258_v44, 3  ;;  %v266_v44 = vsel %vm264_vm13, 0, %v265_v53  ;;  %vm4708_vm13 = vsmask.f32 256 }
 0x219   : > { %v3207_v48 = vor.u32 %v3206_v37, %v3203_v50  ;;  %v3242_v16 = vrot.slane %v3240_v18, 3  ;;  %v3269_v50 = vrot.slane %v3267_v23, 3  ;;  %267 = vst [vmem:[#allocation2 + $0x98] sm:$0xf] %v266_v44  ;;  %v4788_v23 = vld [vmem:[#allocation2 + $0x4] sm:$0xf]  ;;  %vm12472_vm14 = vmand %vm4707_vm7, %vm4708_vm13 }
 0x21a   : > { %v3216_v55 = vor.u32 %v3215_v42, %v3212_v40  ;;  %v3261_v37 = vor.u32 %v3260_v6, %v3257_v0  ;;  %v3276_v40 = vshll.u32 %v12039_v29, 16 }
 0x21b   : > { %v3208_v3 = vsel %vm3110_vm10, %v3198_v58, %v3207_v48 }
 0x21c   : > { %4106 = vperm.xlu0 %10996, %v303_v43   ;;  %v3217_v33 = vsel %vm3110_vm10, %v3207_v48, %v3216_v55 }
 0x21e   : > { %9979 = vmatmul.mubr.msk.bf16.gmra.mrb[4].mxu0 %vm581_vm2, %v3154_v63  ;;  %v304_v63 = vld [vmem:[%s13454_s5 + $0x108] sm:$0xff] }
 0x21f   : > { %9982 = vmatprep.mubr.msk.bf16.mxu0 %vm581_vm2, %v3163_v10  ;;  %v3221_v10 = vrot.slane %v3219_v45, 2  ;;  %4111 = vperm.xlu1 %10997, %v304_v63   ;;  %v3278_v45 = vrot.slane %v3276_v40, 3  ;;  %v3559_v63 = vrot.slane %v11742_v41, 3  ;;  %v3565_v41 = vrot.slane %v11763_v24, 3 }
 0x220   : > { %4116 = vperm.xlu0 %10996, %v305_v2   ;;  %v3573_v24 = vrot.slane %v11796_v9, 3  ;;  %v3581_v9 = vrot.slane %v11820_v4, 3  ;;  %v3589_v4 = vrot.slane %v11869_v30, 3  ;;  %v8991_v30 = vld [vmem:[%s13451_s2 + $0x4] sm:$0xf] }
 0x221   : > { %v3225_v21 = vor.u32 %v3224_v35, %v3221_v10  ;;  %v3561_v10 = vrot.slane %v11751_v51, 3  ;;  %v3569_v51 = vrot.slane %v11784_v57, 3  ;;  %v3577_v57 = vrot.slane %v11808_v36, 3  ;;  %10975 = vmatprep.subr.msk.bf16.mxu1 %vm636_vm0, %v8991_v30 }
 0x222   : > { %v3585_v36 = vrot.slane %v11845_v15, 3  ;;  %v3593_v15 = vrot.slane %v12039_v29, 3  ;;  %v5115_v17 = vsel %vm636_vm0, %v8991_v30, 0 }
 0x223   : > { %4121 = vperm.xlu1 %10997, %v306_v49   ;;  %v3226_v22 = vsel %vm3110_vm10, %v3216_v55, %v3225_v21  ;;  %v3235_v20 = vsel %vm3110_vm10, %v3225_v21, %v3234_v60  ;;  %v8935_v55 = vcombine.low %v3551_v46, %v11734_v39  ;;  %v3563_v39 = vrot.slane %v11755_v38, 3  ;;  %10049 = vmatpush3.bf16.msra.mxu1 %v5115_v17 }
 0x224   : > { %v3562_v35 = vsel %vm3557_vm11, %v3559_v63, %v3561_v10  ;;  %v3568_v49 = vsel %vm3557_vm11, %v3565_v41, %v3567_v11  ;;  %v3571_v38 = vrot.slane %v11788_v62, 3  ;;  %v3570_v21 = vsel %vm3557_vm11, %v3567_v11, %v3569_v51 }
 0x225   : > { %v3558_v59 = vrot.slane %v8935_v55, 3  ;;  %v3566_v12 = vsel %vm3557_vm11, %v3563_v39, %v3565_v41  ;;  %v3579_v62 = vrot.slane %v11812_v8, 3  ;;  %v3587_v8 = vrot.slane %v11849_v26, 3 }
 0x226   : > { %9983 = vmatmul.mubr.msk.bf16.gmra.mrb[8].mxu0 %vm581_vm2, %v3172_v7  ;;  %v3239_v7 = vrot.slane %v3237_v14, 2  ;;  %v3572_v14 = vsel %vm3557_vm11, %v3569_v51, %v3571_v38  ;;  %v3574_v18 = vsel %vm3557_vm11, %v3571_v38, %v3573_v24  ;;  %v3594_v26 = vsel %vm3557_vm11, %v3591_v19, %v3593_v15 }
 0x227   : > { %9986 = vmatprep.mubr.msk.bf16.mxu0 %vm581_vm2, %v3181_v13  ;;  %v3248_v13 = vrot.slane %v3246_v1, 2  ;;  %v3578_v1 = vsel %vm3557_vm11, %v3575_v52, %v3577_v57  ;;  %v3580_v61 = vsel %vm3557_vm11, %v3577_v57, %v3579_v62 }
 0x228   : > { %v3243_v31 = vor.u32 %v3242_v16, %v3239_v7  ;;  %v3584_v7 = vsel %vm3557_vm11, %v3581_v9, %v3583_v5  ;;  %v3586_v16 = vsel %vm3557_vm11, %v3583_v5, %v3585_v36 }
 0x229   : > { %v3252_v27 = vor.u32 %v3251_v25, %v3248_v13  ;;  %v3590_v13 = vsel %vm3557_vm11, %v3587_v8, %v3589_v4  ;;  %v3592_v25 = vsel %vm3557_vm11, %v3589_v4, %v3591_v19 }
 0x22a   : > { %v3244_v58 = vsel %vm3110_vm10, %v3234_v60, %v3243_v31  ;;  %v3576_v60 = vsel %vm3557_vm11, %v3573_v24, %v3575_v52 }
 0x22b   : > { %v3253_v34 = vsel %vm3110_vm10, %v3243_v31, %v3252_v27  ;;  %v3262_v43 = vsel %vm3110_vm10, %v3252_v27, %v3261_v37  ;;  %v4823_v31 = vld [vmem:[%s13451_s2] sm:$0xf]  ;;  %v3947_v27 = vpop.permute.xlu0 %3946 }
 0x22c   : > { %10976 = vmatprep.subr.msk.bf16.mxu1 %vm636_vm0, %v4823_v31  ;;  %v12136_v51 = vsel %vm636_vm0, %v4823_v31, 0 }
 0x22e   : > { %9987 = vmatmul.mubr.msk.bf16.gmra.mrb[12].mxu0 %vm581_vm2, %v3190_v47  ;;  %v3266_v47 = vrot.slane %v3264_v28, 2  ;;  %v4787_v28 = vld [vmem:[#allocation2] sm:$0xf] }
 0x22f   : > { %9990 = vmatprep.mubr.msk.bf16.mxu0 %vm581_vm2, %v3199_v56  ;;  %v3273_v56 = vshrl.u32 %v12039_v29, 16  ;;  %v12118_v0 = vcombine.low %v4787_v28, %v4788_v23  ;;  %v3952_v6 = vpop.permute.xlu0 %3951  ;;  %v12123_v29 = vld [vmem:[%s13452_s3] ss:$0 sm:$0xff] }
 0x230   : > { %v3270_v42 = vor.u32 %v3269_v50, %v3266_v47 }
 0x231   : > { %v3275_v48 = vrot.slane %v3273_v56, 2  ;;  %v4920_v47 = vshll.u32 %v12118_v0, 16 }
 0x232   : > { %v3271_v54 = vsel %vm3110_vm10, %v3261_v37, %v3270_v42 }
 0x233   : > { %v3279_v32 = vor.u32 %v3278_v45, %v3275_v48  ;;  %v3967_v45 = vpop.permute.xlu0 %3966 }
 0x235   : > { %v3280_v2 = vsel %vm3110_vm10, %v3270_v42, %v3279_v32  ;;  %v4918_v32 = vshrl.u32 %v12118_v0, 16 }
 0x236   : > { %9991 = vmatmul.mubr.msk.bf16.gmra.mrb[16].mxu0 %vm581_vm2, %v3208_v3  ;;  %v3560_v3 = vsel %vm3557_vm11, %v3558_v59, %v3559_v63  ;;  %v4922_v59 = vrot.slane %v4920_v47, 1 }
 0x237   : > { %9994 = vmatprep.mubr.msk.bf16.mxu0 %vm581_vm2, %v3217_v33  ;;  %v3564_v33 = vsel %vm3557_vm11, %v3561_v10, %v3563_v39 }
 0x23e   : > { %9995 = vmatmul.mubr.msk.bf16.gmra.mrb[20].mxu0 %vm581_vm2, %v3226_v22  ;;  %v3582_v22 = vsel %vm3557_vm11, %v3579_v62, %v3581_v9 }
 0x23f   : > { %9998 = vmatprep.mubr.msk.bf16.mxu0 %vm581_vm2, %v3235_v20  ;;  %v3588_v20 = vsel %vm3557_vm11, %v3585_v36, %v3587_v8 }
 0x246   : > { %9999 = vmatmul.mubr.msk.bf16.gmra.mrb[24].mxu0 %vm581_vm2, %v3244_v58  ;;  %v3957_v58 = vpop.permute.xlu1 %3956 }
 0x247   : > { %10002 = vmatprep.mubr.msk.bf16.mxu0 %vm581_vm2, %v3253_v34 }
 0x24a   : > { %v3962_v56 = vpop.permute.xlu1 %3961 }
 0x24e   : > { %10003 = vmatmul.mubr.msk.bf16.gmra.mrb[28].mxu0 %vm581_vm2, %v3262_v43 }
 0x24f   : > { %10006 = vmatprep.mubr.msk.bf16.mxu0 %vm581_vm2, %v3271_v54 }
 0x256   : > { %10007 = vmatmul.mubr.msk.bf16.gmra.mrb[32].mxu0 %vm581_vm2, %v3280_v2 }
 0x257   : > { %10012 = vmatprep.mubr.msk.bf16.mxu0 %vm581_vm2, %v3560_v3 }
 0x25e   : > { %10013 = vmatmul.mubr.msk.bf16.vlgmr.msra.gmra.mrb[0].mxu0 %vm581_vm2, %v3562_v35 }
 0x25f   : > { %10016 = vmatprep.mubr.msk.bf16.mxu0 %vm581_vm2, %v3564_v33  ;;  %v12131_v33 = vpop.permute.xlu1 %3971 }
 0x263   : > { %v3982_v31 = vpop.permute.xlu1 %3981 }
 0x266   : > { %10017 = vmatmul.mubr.msk.bf16.gmra.mrb[4].mxu0 %vm581_vm2, %v3566_v12 }
 0x267   : > { %10020 = vmatprep.mubr.msk.bf16.mxu0 %vm581_vm2, %v3568_v49  ;;  %v12133_v49 = vor.u32 %v4922_v59, %v4918_v32 }
 0x26e   : > { %10021 = vmatmul.mubr.msk.bf16.gmra.mrb[8].mxu0 %vm581_vm2, %v3570_v21 }
 0x26f   : > { %10024 = vmatprep.mubr.msk.bf16.mxu0 %vm581_vm2, %v3572_v14 }
 0x276   : > { %10025 = vmatmul.mubr.msk.bf16.gmra.mrb[12].mxu0 %vm581_vm2, %v3574_v18  ;;  %v3977_v18 = vpop.permute.xlu0 %3976 }
 0x277   : > { %10028 = vmatprep.mubr.msk.bf16.mxu0 %vm581_vm2, %v3576_v60 }
 0x27a   : > { %v12153_v47 = vpop.permute.xlu0 %3986 }
 0x27e   : > { %10029 = vmatmul.mubr.msk.bf16.gmra.mrb[16].mxu0 %vm581_vm2, %v3578_v1 }
 0x27f   : > { %10032 = vmatprep.mubr.msk.bf16.mxu0 %vm581_vm2, %v3580_v61 }
 0x286   : > { %10033 = vmatmul.mubr.msk.bf16.gmra.mrb[20].mxu0 %vm581_vm2, %v3582_v22 }
 0x287   : > { %10036 = vmatprep.mubr.msk.bf16.mxu0 %vm581_vm2, %v3584_v7 }
 0x28e   : > { %10037 = vmatmul.mubr.msk.bf16.gmra.mrb[24].mxu0 %vm581_vm2, %v3586_v16 }
 0x28f   : > { %10040 = vmatprep.mubr.msk.bf16.mxu0 %vm581_vm2, %v3588_v20 }
 0x296   : > { %10041 = vmatmul.mubr.msk.bf16.gmra.mrb[28].mxu0 %vm581_vm2, %v3590_v13 }
 0x297   : > { %10044 = vmatprep.mubr.msk.bf16.mxu0 %vm581_vm2, %v3592_v25  ;;  %v4669_v25 = vld [vmem:[#allocation2 + $0x8] sm:$0xe] }
 0x29e   : > { %10045 = vmatmul.mubr.msk.bf16.gmra.mrb[32].mxu0 %vm581_vm2, %v3594_v26 }
 0x331   : > { %v10014_v34 = vpop.f32.mrb[0].mxu0 }
 0x332   : > { %v3874_v50 = vadd.f32 %v10014_v34, %v12123_v29  ;;  %v3686_v37 = vpop.f32.mrb[1].mxu0 }
 0x333   : > { %v3872_v40 = vadd.f32 %v12123_v29, %v3686_v37  ;;  %v10015_v42 = vpop.f32.mrb[2].mxu0 }
 0x334   : > { %v3910_v46 = vmax.f32 %v3874_v50, 0.0  ;;  %v3875_v43 = vadd.f32 %v10015_v42, %v12123_v29  ;;  %v3689_v48 = vpop.f32.mrb[3].mxu0 }
 0x335   : > { %v3908_v54 = vmax.f32 %v3872_v40, 0.0  ;;  %v3873_v55 = vadd.f32 %v12123_v29, %v3689_v48 }
 0x336   : > { %v4126_v63 = vmul.f32 %v3957_v58, %v3910_v46  ;;  %v3911_v2 = vmax.f32 %v3875_v43, 0.0 }
 0x337   : > { %v4124_v3 = vmul.f32 %v3947_v27, %v3908_v54  ;;  %v3909_v10 = vmax.f32 %v3873_v55, 0.0 }
 0x338   : > { %v9245_v39 = vpack.c.bf16 %v4126_v63, %v4126_v63  ;;  %v4127_v35 = vmul.f32 %v3962_v56, %v3911_v2 }
 0x339   : > { %v9243_v41 = vpack.c.bf16 %v4124_v3, %v4124_v3  ;;  %v4125_v11 = vmul.f32 %v3952_v6, %v3909_v10  ;;  %v10018_v12 = vpop.f32.mrb[4].mxu0 }
 0x33a   : > { %v4290_v38 = vshrl.u32 %v9245_v39, 16  ;;  %v4293_v21 = vshll.u32 %v9245_v39, 16  ;;  %v9246_v14 = vpack.c.bf16 %v4127_v35, %v4127_v35  ;;  %v3878_v24 = vadd.f32 %v10018_v12, %v12123_v29  ;;  %v3702_v52 = vpop.f32.mrb[5].mxu0 }
 0x33b   : > { %v4271_v60 = vshrl.u32 %v9243_v41, 16  ;;  %v4274_v57 = vshll.u32 %v9243_v41, 16  ;;  %v9244_v62 = vpack.c.bf16 %v4125_v11, %v4125_v11  ;;  %v3876_v1 = vadd.f32 %v12123_v29, %v3702_v52  ;;  %v10019_v61 = vpop.f32.mrb[6].mxu0  ;;  %v12165_v11 = vpop.permute.xlu1 %3991 }
 0x33c   : > { %v4292_v9 = vrot.slane %v4290_v38, 6  ;;  %v4295_v5 = vrot.slane %v4293_v21, 7  ;;  %v4300_v22 = vshrl.u32 %v9246_v14, 16  ;;  %v4303_v7 = vshll.u32 %v9246_v14, 16  ;;  %v3705_v36 = vpop.f32.mrb[7].mxu0 }
 0x33d   : > { %v4273_v8 = vrot.slane %v4271_v60, 6  ;;  %v4276_v16 = vrot.slane %v4274_v57, 7  ;;  %v4280_v20 = vshrl.u32 %v9244_v62, 16  ;;  %v4283_v4 = vshll.u32 %v9244_v62, 16  ;;  %v3997_v57 = vpop.permute.xlu0 %3996 }
 0x33e   : > { %v4296_v19 = vor.u32 %v4295_v5, %v4292_v9  ;;  %v4302_v15 = vrot.slane %v4300_v22, 6  ;;  %v4305_v26 = vrot.slane %v4303_v7, 7  ;;  %v3914_v30 = vmax.f32 %v3878_v24, 0.0 }
 0x33f   : > { %v4277_v53 = vor.u32 %v4276_v16, %v4273_v8  ;;  %v4282_v44 = vrot.slane %v4280_v20, 6  ;;  %v4285_v27 = vrot.slane %v4283_v4, 7  ;;  %v3912_v28 = vmax.f32 %v3876_v1, 0.0 }
 0x340   : > { %v4298_v23 = vrot.slane %v4296_v19, 4  ;;  %v4306_v58 = vor.u32 %v4305_v26, %v4302_v15  ;;  %v4130_v6 = vmul.f32 %v3977_v18, %v3914_v30  ;;  %v3879_v34 = vadd.f32 %v10019_v61, %v12123_v29 }
 0x341   : > { %v4278_v50 = vrot.slane %v4277_v53, 4  ;;  %v4670_v37 = vsel %vm12142_vm8, %v4277_v53, %v4669_v25  ;;  %v4286_v56 = vor.u32 %v4285_v27, %v4282_v44  ;;  %v4128_v40 = vmul.f32 %v3967_v45, %v3912_v28  ;;  %v10022_v42 = vpop.f32.mrb[8].mxu0 }
 0x342   : > { %4671 = vst [vmem:[#allocation2 + $0x8] sm:$0xe] %v4670_v37  ;;  %v4307_v46 = vsel %vm12148_vm12, %v4298_v23, %v4306_v58  ;;  %v4308_v43 = vrot.slane %v4306_v58, 4  ;;  %v9249_v48 = vpack.c.bf16 %v4130_v6, %v4130_v6  ;;  %v3915_v54 = vmax.f32 %v3879_v34, 0.0  ;;  %v3718_v55 = vpop.f32.mrb[9].mxu0  ;;  %v4007_v37 = vpop.permute.xlu0 %4006 }
 0x343   : > { %4674 = vst.msk [vmem:[#allocation2 + $0x14] sm:$0xf] %vm253_vm9, %v4307_v46  ;;  %v4287_v32 = vsel %vm12148_vm12, %v4278_v50, %v4286_v56  ;;  %v4288_v59 = vrot.slane %v4286_v56, 4  ;;  %v9247_v63 = vpack.c.bf16 %v4128_v40, %v4128_v40  ;;  %v3877_v2 = vadd.f32 %v12123_v29, %v3705_v36  ;;  %v10023_v3 = vpop.f32.mrb[10].mxu0 }
 0x344   : > { %4672 = vst.msk [vmem:[#allocation2 + $0xc] sm:$0xf] %vm253_vm9, %v4287_v32  ;;  %v4330_v45 = vshrl.u32 %v9249_v48, 16  ;;  %v4333_v10 = vshll.u32 %v9249_v48, 16  ;;  %v4131_v39 = vmul.f32 %v3982_v31, %v3915_v54  ;;  %v3882_v35 = vadd.f32 %v10022_v42, %v12123_v29  ;;  %v3721_v41 = vpop.f32.mrb[11].mxu0  ;;  %v4002_v31 = vpop.permute.xlu1 %4001 }
 0x345   : > { %v4297_v12 = vsel %vm12148_vm12, %v4288_v59, %v4296_v19  ;;  %v4310_v38 = vshrl.u32 %v9247_v63, 16  ;;  %v4313_v21 = vshll.u32 %v9247_v63, 16  ;;  %v3913_v14 = vmax.f32 %v3877_v2, 0.0 }
 0x346   : > { %4673 = vst.msk [vmem:[#allocation2 + $0x10] sm:$0xf] %vm253_vm9, %v4297_v12  ;;  %v4332_v24 = vrot.slane %v4330_v45, 6  ;;  %v4335_v52 = vrot.slane %v4333_v10, 7  ;;  %v9250_v18 = vpack.c.bf16 %v4131_v39, %v4131_v39  ;;  %v3918_v60 = vmax.f32 %v3882_v35, 0.0 }
 0x347   : > { %v4312_v62 = vrot.slane %v4310_v38, 6  ;;  %v4315_v1 = vrot.slane %v4313_v21, 7  ;;  %v4129_v61 = vmul.f32 %v12131_v33, %v3913_v14  ;;  %v3880_v9 = vadd.f32 %v12123_v29, %v3718_v55 }
 0x348   : > { %v4336_v5 = vor.u32 %v4335_v52, %v4332_v24  ;;  %v4340_v22 = vshrl.u32 %v9250_v18, 16  ;;  %v4343_v7 = vshll.u32 %v9250_v18, 16  ;;  %v4134_v36 = vmul.f32 %v3997_v57, %v3918_v60  ;;  %v12186_v39 = vpop.permute.xlu1 %4011  ;;  %v4017_v57 = vpop.permute.xlu0 %4016 }
 0x349   : > { %v4316_v8 = vor.u32 %v4315_v1, %v4312_v62  ;;  %v9248_v16 = vpack.c.bf16 %v4129_v61, %v4129_v61  ;;  %v3916_v20 = vmax.f32 %v3880_v9, 0.0  ;;  %v3883_v4 = vadd.f32 %v10023_v3, %v12123_v29  ;;  %v10026_v19 = vpop.f32.mrb[12].mxu0 }
 0x34a   : > { %v4338_v13 = vrot.slane %v4336_v5, 4  ;;  %v4342_v25 = vrot.slane %v4340_v22, 6  ;;  %v4345_v15 = vrot.slane %v4343_v7, 7  ;;  %v9253_v26 = vpack.c.bf16 %v4134_v36, %v4134_v36  ;;  %v3734_v30 = vpop.f32.mrb[13].mxu0 }
 0x34b   : > { %v4317_v33 = vsel %vm12148_vm12, %v4308_v43, %v4316_v8  ;;  %v4318_v53 = vrot.slane %v4316_v8, 4  ;;  %v4320_v44 = vshrl.u32 %v9248_v16, 16  ;;  %v4323_v27 = vshll.u32 %v9248_v16, 16  ;;  %v10027_v28 = vpop.f32.mrb[14].mxu0 }
 0x34c   : > { %4675 = vst.msk [vmem:[#allocation2 + $0x18] sm:$0xf] %vm253_vm9, %v4317_v33  ;;  %v4346_v23 = vor.u32 %v4345_v15, %v4342_v25  ;;  %v4370_v58 = vshrl.u32 %v9253_v26, 16  ;;  %v4373_v6 = vshll.u32 %v9253_v26, 16  ;;  %v4132_v34 = vmul.f32 %v12153_v47, %v3916_v20  ;;  %v3737_v50 = vpop.f32.mrb[15].mxu0 }
 0x34d   : > { %v4322_v56 = vrot.slane %v4320_v44, 6  ;;  %v4325_v40 = vrot.slane %v4323_v27, 7  ;;  %v3919_v42 = vmax.f32 %v3883_v4, 0.0  ;;  %v3881_v46 = vadd.f32 %v12123_v29, %v3721_v41 }
 0x34e   : > { %v4347_v43 = vsel %vm12148_vm12, %v4338_v13, %v4346_v23  ;;  %v4348_v48 = vrot.slane %v4346_v23, 4  ;;  %v4372_v54 = vrot.slane %v4370_v58, 6  ;;  %v4375_v55 = vrot.slane %v4373_v6, 7 }
 0x34f   : > { %4678 = vst.msk [vmem:[#allocation2 + $0x24] sm:$0xf] %vm253_vm9, %v4347_v43  ;;  %v4326_v32 = vor.u32 %v4325_v40, %v4322_v56  ;;  %v9251_v59 = vpack.c.bf16 %v4132_v34, %v4132_v34  ;;  %v4135_v63 = vmul.f32 %v4002_v31, %v3919_v42  ;;  %v3917_v2 = vmax.f32 %v3881_v46, 0.0 }
 0x350   : > { %v12181_v47 = vor.u32 %v4375_v55, %v4372_v54  ;;  %v3886_v3 = vadd.f32 %v10026_v19, %v12123_v29  ;;  %v3884_v45 = vadd.f32 %v12123_v29, %v3734_v30  ;;  %v3887_v10 = vadd.f32 %v10027_v28, %v12123_v29  ;;  %v4022_v30 = vpop.permute.xlu1 %4021  ;;  %v4027_v54 = vpop.permute.xlu0 %4026 }
 0x351   : > { %v4327_v35 = vsel %vm12148_vm12, %v4318_v53, %v4326_v32  ;;  %v4328_v41 = vrot.slane %v4326_v32, 4  ;;  %v4350_v12 = vshrl.u32 %v9251_v59, 16  ;;  %v4353_v38 = vshll.u32 %v9251_v59, 16  ;;  %v12190_v21 = vpop.f32.mrb[16].mxu0 }
 0x352   : > { %4676 = vst.msk [vmem:[#allocation2 + $0x1c] sm:$0xf] %vm253_vm9, %v4327_v35  ;;  %v4378_v14 = vrot.slane %v12181_v47, 4  ;;  %v9254_v24 = vpack.c.bf16 %v4135_v63, %v4135_v63  ;;  %v4133_v52 = vmul.f32 %v12165_v11, %v3917_v2  ;;  %v3922_v18 = vmax.f32 %v3886_v3, 0.0  ;;  %v12195_v60 = vpop.f32.mrb[17].mxu0 }
 0x353   : > { %v4337_v62 = vsel %vm12148_vm12, %v4328_v41, %v4336_v5  ;;  %v4352_v1 = vrot.slane %v4350_v12, 6  ;;  %v4355_v61 = vrot.slane %v4353_v38, 7  ;;  %v3920_v9 = vmax.f32 %v3884_v45, 0.0  ;;  %v12199_v22 = vpop.f32.mrb[18].mxu0 }
 0x354   : > { %4677 = vst.msk [vmem:[#allocation2 + $0x20] sm:$0xf] %vm253_vm9, %v4337_v62  ;;  %v4380_v7 = vshrl.u32 %v9254_v24, 16  ;;  %v4383_v36 = vshll.u32 %v9254_v24, 16  ;;  %v9252_v8 = vpack.c.bf16 %v4133_v52, %v4133_v52  ;;  %v4138_v16 = vmul.f32 %v4017_v57, %v3922_v18  ;;  %v12202_v20 = vpop.f32.mrb[19].mxu0  ;;  %v11078_v52 = vld [vmem:[#allocation2 + $0x8] sm:$0xff]   ;;  %v4032_v18 = vpop.permute.xlu1 %4031 }
 0x355   : > { %v4356_v11 = vor.u32 %v4355_v61, %v4352_v1  ;;  %v4136_v4 = vmul.f32 %v4007_v37, %v3920_v9  ;;  %v3923_v19 = vmax.f32 %v3887_v10, 0.0  ;;  %v3885_v13 = vadd.f32 %v12123_v29, %v3737_v50  ;;  %v12233_v9 = vld [vmem:[#allocation2 + $0x10] sm:$0xff]  }
 0x356   : > { %v4382_v25 = vrot.slane %v4380_v7, 6  ;;  %v4385_v5 = vrot.slane %v4383_v36, 7  ;;  %v4360_v15 = vshrl.u32 %v9252_v8, 16  ;;  %v4363_v26 = vshll.u32 %v9252_v8, 16 }
 0x357   : > { %v4357_v31 = vsel %vm12148_vm12, %v4348_v48, %v4356_v11  ;;  %v4358_v33 = vrot.slane %v4356_v11, 4  ;;  %v9257_v53 = vpack.c.bf16 %v4138_v16, %v4138_v16  ;;  %v9255_v44 = vpack.c.bf16 %v4136_v4, %v4136_v4  ;;  %v4037_v4 = vpop.permute.xlu0 %4036 }
 0x358   : > { %4679 = vst.msk [vmem:[#allocation2 + $0x28] sm:$0xf] %vm253_vm9, %v4357_v31  ;;  %v4386_v27 = vor.u32 %v4385_v5, %v4382_v25  ;;  %v4362_v28 = vrot.slane %v4360_v15, 6  ;;  %v4365_v23 = vrot.slane %v4363_v26, 7  ;;  %v4139_v58 = vmul.f32 %v4022_v30, %v3923_v19 }
 0x359   : > { %v4410_v6 = vshrl.u32 %v9257_v53, 16  ;;  %v4413_v34 = vshll.u32 %v9257_v53, 16  ;;  %v4390_v50 = vshrl.u32 %v9255_v44, 16  ;;  %v4393_v37 = vshll.u32 %v9255_v44, 16  ;;  %v12208_v56 = vpop.f32.mrb[20].mxu0 }
 0x35a   : > { %v4387_v40 = vsel %vm12148_vm12, %v4378_v14, %v4386_v27  ;;  %v4388_v42 = vrot.slane %v4386_v27, 4  ;;  %v4366_v46 = vor.u32 %v4365_v23, %v4362_v28  ;;  %v9258_v43 = vpack.c.bf16 %v4139_v58, %v4139_v58  ;;  %v12212_v48 = vpop.f32.mrb[21].mxu0 }
 0x35b   : > { %4682 = vst.msk [vmem:[#allocation2 + $0x34] sm:$0xf] %vm253_vm9, %v4387_v40  ;;  %v4412_v55 = vrot.slane %v4410_v6, 6  ;;  %v4415_v32 = vrot.slane %v4413_v34, 7  ;;  %v4392_v59 = vrot.slane %v4390_v50, 6  ;;  %v4395_v63 = vrot.slane %v4393_v37, 7 }
 0x35c   : > { %v12215_v2 = vpop.f32.mrb[22].mxu0  ;;  %v4367_v3 = vsel %vm12148_vm12, %v4358_v33, %v4366_v46  ;;  %v4368_v45 = vrot.slane %v4366_v46, 4  ;;  %v4420_v10 = vshrl.u32 %v9258_v43, 16  ;;  %v4423_v35 = vshll.u32 %v9258_v43, 16 }
 0x35d   : > { %v12219_v41 = vpop.f32.mrb[23].mxu0  ;;  %4680 = vst.msk [vmem:[#allocation2 + $0x2c] sm:$0xf] %vm253_vm9, %v4367_v3  ;;  %v12222_v12 = vor.u32 %v4415_v32, %v4412_v55  ;;  %v12224_v38 = vor.u32 %v4395_v63, %v4392_v59  ;;  %v3921_v14 = vmax.f32 %v3885_v13, 0.0  ;;  %v3890_v24 = vadd.f32 %v12190_v21, %v12123_v29 }
 0x35e   : > { %v4377_v57 = vsel %vm12148_vm12, %v4368_v45, %v12181_v47  ;;  %v4422_v62 = vrot.slane %v4420_v10, 6  ;;  %v4425_v1 = vrot.slane %v4423_v35, 7  ;;  %v3888_v61 = vadd.f32 %v12123_v29, %v12195_v60  ;;  %v4047_v10 = vpop.permute.xlu0 %4046 }
 0x35f   : > { %4681 = vst.msk [vmem:[#allocation2 + $0x30] sm:$0xf] %vm253_vm9, %v4377_v57  ;;  %v4418_v7 = vrot.slane %v12222_v12, 4  ;;  %v4397_v21 = vsel %vm12148_vm12, %v4388_v42, %v12224_v38  ;;  %v4398_v36 = vrot.slane %v12224_v38, 4  ;;  %v4137_v8 = vmul.f32 %v12186_v39, %v3921_v14 }
 0x360   : > { %4683 = vst.msk [vmem:[#allocation2 + $0x38] sm:$0xf] %vm253_vm9, %v4397_v21  ;;  %v12243_v47 = vor.u32 %v4425_v1, %v4422_v62  ;;  %v3926_v16 = vmax.f32 %v3890_v24, 0.0  ;;  %v3924_v60 = vmax.f32 %v3888_v61, 0.0  ;;  %v3891_v11 = vadd.f32 %v12199_v22, %v12123_v29 }
 0x361   : > { %v9256_v19 = vpack.c.bf16 %v4137_v8, %v4137_v8  ;;  %v4925_v13 = vshll.u32 %v11078_v52, 16  ;;  %v4929_v25 = vshrl.u32 %v11078_v52, 16  ;;  %v3889_v5 = vadd.f32 %v12123_v29, %v12202_v20  ;;  %v12249_v15 = vpop.f32.mrb[24].mxu0  ;;  %v4042_v20 = vpop.permute.xlu1 %4041 }
 0x362   : > { %v4427_v39 = vsel %vm12148_vm12, %v4418_v7, %v12243_v47  ;;  %v4428_v26 = vrot.slane %v12243_v47, 4  ;;  %v4142_v30 = vmul.f32 %v4037_v4, %v3926_v16  ;;  %v4140_v31 = vmul.f32 %v4027_v54, %v3924_v60  ;;  %v12255_v33 = vpop.f32.mrb[25].mxu0  ;;  %v12282_v4 = vld [vmem:[#allocation2 + $0x18] sm:$0xff]  }
 0x363   : > { %4686 = vst.msk [vmem:[#allocation2 + $0x44] sm:$0xf] %vm253_vm9, %v4427_v39  ;;  %v4400_v22 = vshrl.u32 %v9256_v19, 16  ;;  %v4403_v53 = vshll.u32 %v9256_v19, 16  ;;  %v3927_v44 = vmax.f32 %v3891_v11, 0.0  ;;  %v4927_v27 = vrot.slane %v4925_v13, 1 }
 0x364   : > { %v12258_v28 = vpop.f32.mrb[26].mxu0  ;;  %v9261_v23 = vpack.c.bf16 %v4142_v30, %v4142_v30  ;;  %v9259_v58 = vpack.c.bf16 %v4140_v31, %v4140_v31  ;;  %v3925_v6 = vmax.f32 %v3889_v5, 0.0  ;;  %v4933_v34 = vshll.u32 %v12233_v9, 16  ;;  %v12289_v13 = vld [vmem:[%s13451_s2 + $0x8] sm:$0xf]  ;;  %v12295_v30 = vld [vmem:[#allocation2 + $0x20] sm:$0xff]  }
 0x365   : > { %v12261_v50 = vpop.f32.mrb[27].mxu0  ;;  %v4402_v37 = vrot.slane %v4400_v22, 6  ;;  %v4405_v40 = vrot.slane %v4403_v53, 7  ;;  %v4143_v42 = vmul.f32 %v4042_v20, %v3927_v44  ;;  %v4928_v46 = vsel %vm437_vm1, %v12133_v49, %v4927_v27  ;;  %v12275_v47 = vpop.permute.xlu1 %4051 }
 0x366   : > { %v4450_v43 = vshrl.u32 %v9261_v23, 16  ;;  %v4453_v54 = vshll.u32 %v9261_v23, 16  ;;  %v4430_v55 = vshrl.u32 %v9259_v58, 16  ;;  %v4433_v32 = vshll.u32 %v9259_v58, 16  ;;  %10050 = vmatprep.mubr.msk.bf16.mxu1 %vm581_vm2, %v4928_v46 }
 0x367   : > { %v4406_v59 = vor.u32 %v4405_v40, %v4402_v37  ;;  %v9262_v63 = vpack.c.bf16 %v4143_v42, %v4143_v42  ;;  %v4931_v3 = vor.u32 %v4929_v25, %v4927_v27  ;;  %v4141_v45 = vmul.f32 %v4032_v18, %v3925_v6  ;;  %v4057_v27 = vpop.permute.xlu0 %4056 }
 0x368   : > { %v4452_v35 = vrot.slane %v4450_v43, 6  ;;  %v4455_v38 = vrot.slane %v4453_v54, 7  ;;  %v4432_v14 = vrot.slane %v4430_v55, 6  ;;  %v4435_v24 = vrot.slane %v4433_v32, 7 }
 0x369   : > { %v4407_v52 = vsel %vm12148_vm12, %v4398_v36, %v4406_v59  ;;  %v4408_v57 = vrot.slane %v4406_v59, 4  ;;  %v4460_v49 = vshrl.u32 %v9262_v63, 16  ;;  %v4463_v62 = vshll.u32 %v9262_v63, 16  ;;  %v12268_v1 = vpop.f32.mrb[28].mxu0 }
 0x36a   : > { %4684 = vst.msk [vmem:[#allocation2 + $0x3c] sm:$0xf] %vm253_vm9, %v4407_v52  ;;  %v12271_v61 = vor.u32 %v4455_v38, %v4452_v35  ;;  %v4436_v7 = vor.u32 %v4435_v24, %v4432_v14  ;;  %v9260_v21 = vpack.c.bf16 %v4141_v45, %v4141_v45  ;;  %v4935_v18 = vrot.slane %v4933_v34, 1  ;;  %v12273_v8 = vpop.f32.mrb[29].mxu0 }
 0x36b   : > { %v4417_v36 = vsel %vm12148_vm12, %v4408_v57, %v12222_v12  ;;  %v4462_v16 = vrot.slane %v4460_v49, 6  ;;  %v4465_v60 = vrot.slane %v4463_v62, 7  ;;  %v3894_v11 = vadd.f32 %v12208_v56, %v12123_v29  ;;  %v12284_v19 = vpop.f32.mrb[30].mxu0  ;;  %v4067_v57 = vpop.permute.xlu0 %4066 }
 0x36c   : > { %4685 = vst.msk [vmem:[#allocation2 + $0x40] sm:$0xf] %vm253_vm9, %v4417_v36  ;;  %v4458_v25 = vrot.slane %v12271_v61, 4  ;;  %v4437_v12 = vsel %vm12148_vm12, %v4428_v26, %v4436_v7  ;;  %v4438_v5 = vrot.slane %v4436_v7, 4  ;;  %v4440_v39 = vshrl.u32 %v9260_v21, 16  ;;  %v12297_v56 = vpop.f32.mrb[31].mxu0 }
 0x36d   : > { %4687 = vst.msk [vmem:[#allocation2 + $0x48] sm:$0xf] %vm253_vm9, %v4437_v12  ;;  %v12300_v31 = vor.u32 %v4465_v60, %v4462_v16  ;;  %v4443_v22 = vshll.u32 %v9260_v21, 16  ;;  %v4936_v53 = vsel %vm437_vm1, %v4931_v3, %v4935_v18  ;;  %v3930_v44 = vmax.f32 %v3894_v11, 0.0 }
 0x36e   : > { %v4442_v20 = vrot.slane %v4440_v39, 6  ;;  %10051 = vmatmul.mubr.msk.bf16.vlgmr.msra.gmra.mrb[0].mxu1 %vm581_vm2, %v4936_v53  ;;  %v3892_v26 = vadd.f32 %v12123_v29, %v12212_v48  ;;  %v3895_v23 = vadd.f32 %v12215_v2, %v12123_v29  ;;  %v4937_v58 = vshrl.u32 %v12233_v9, 16  ;;  %v4062_v2 = vpop.permute.xlu1 %4061 }
 0x36f   : > { %v4467_v6 = vsel %vm12148_vm12, %v4458_v25, %v12300_v31  ;;  %v4468_v34 = vrot.slane %v12300_v31, 4  ;;  %v4445_v37 = vrot.slane %v4443_v22, 7  ;;  %10087 = vmatpush3.bf16.msra.mxu1 %v12136_v51  ;;  %v4146_v40 = vmul.f32 %v4057_v27, %v3930_v44 }
 0x370   : > { %4690 = vst.msk [vmem:[#allocation2 + $0x54] sm:$0xf] %vm253_vm9, %v4467_v6  ;;  %v3928_v42 = vmax.f32 %v3892_v26, 0.0  ;;  %v3931_v46 = vmax.f32 %v3895_v23, 0.0  ;;  %v4939_v48 = vor.u32 %v4937_v58, %v4935_v18  ;;  %v4941_v43 = vshll.u32 %v12282_v4, 16  ;;  %10977 = vmatprep.subr.msk.bf16.mxu1 %vm636_vm0, %v12289_v13 }
 0x371   : > { %v4446_v9 = vor.u32 %v4445_v37, %v4442_v20  ;;  %v9265_v54 = vpack.c.bf16 %v4146_v40, %v4146_v40  ;;  %v3893_v55 = vadd.f32 %v12123_v29, %v12219_v41  ;;  %v4945_v32 = vshrl.u32 %v12282_v4, 16  ;;  %v12321_v51 = vpop.f32.mrb[32].mxu0 }
 0x372   : > { %v4144_v59 = vmul.f32 %v4047_v10, %v3928_v42  ;;  %v4147_v63 = vmul.f32 %v4062_v2, %v3931_v46  ;;  %v4943_v3 = vrot.slane %v4941_v43, 1  ;;  %v4949_v45 = vshll.u32 %v12295_v30, 16  ;;  %v12324_v35 = vpop.f32.mrb[33].mxu0  ;;  %v4072_v23 = vpop.permute.xlu1 %4071  ;;  %v12350_v43 = vld [vmem:[#allocation2 + $0x28] sm:$0xff]  }
 0x373   : > { %v4447_v38 = vsel %vm12148_vm12, %v4438_v5, %v4446_v9  ;;  %v4448_v14 = vrot.slane %v4446_v9, 4  ;;  %v4490_v24 = vshrl.u32 %v9265_v54, 16  ;;  %v4493_v52 = vshll.u32 %v9265_v54, 16  ;;  %v12330_v7 = vpop.f32.mrb[34].mxu0  ;;  %v4077_v42 = vpop.permute.xlu0 %4076 }
 0x374   : > { %4688 = vst.msk [vmem:[#allocation2 + $0x4c] sm:$0xf] %vm253_vm9, %v4447_v38  ;;  %v9263_v41 = vpack.c.bf16 %v4144_v59, %v4144_v59  ;;  %v9266_v49 = vpack.c.bf16 %v4147_v63, %v4147_v63  ;;  %v4944_v62 = vsel %vm437_vm1, %v4939_v48, %v4943_v3  ;;  %v3929_v10 = vmax.f32 %v3893_v55, 0.0  ;;  %v12336_v60 = vpop.f32.mrb[35].mxu0 }
 0x375   : > { %v4457_v21 = vsel %vm12148_vm12, %v4448_v14, %v12271_v61  ;;  %v4492_v18 = vrot.slane %v4490_v24, 6  ;;  %v4495_v36 = vrot.slane %v4493_v52, 7  ;;  %10054 = vmatprep.mubr.msk.bf16.mxu1 %vm581_vm2, %v4944_v62  ;;  %v4947_v16 = vor.u32 %v4945_v32, %v4943_v3  ;;  %v12366_v52 = vld [vmem:[#allocation2 + $0x30] sm:$0xff]  }
 0x376   : > { %4689 = vst.msk [vmem:[#allocation2 + $0x50] sm:$0xf] %vm253_vm9, %v4457_v21  ;;  %v4470_v11 = vshrl.u32 %v9263_v41, 16  ;;  %v4473_v25 = vshll.u32 %v9263_v41, 16  ;;  %v4500_v12 = vshrl.u32 %v9266_v49, 16  ;;  %v4503_v5 = vshll.u32 %v9266_v49, 16  ;;  %v4082_v41 = vpop.permute.xlu1 %4081 }
 0x377   : > { %v4496_v39 = vor.u32 %v4495_v36, %v4492_v18  ;;  %v4145_v22 = vmul.f32 %v12275_v47, %v3929_v10  ;;  %v4951_v53 = vrot.slane %v4949_v45, 1  ;;  %v3898_v61 = vadd.f32 %v12249_v15, %v12123_v29 }
 0x378   : > { %v4472_v44 = vrot.slane %v4470_v11, 6  ;;  %v4475_v27 = vrot.slane %v4473_v25, 7  ;;  %v4502_v20 = vrot.slane %v4500_v12, 6  ;;  %v4505_v26 = vrot.slane %v4503_v5, 7 }
 0x379   : > { %v4498_v58 = vrot.slane %v4496_v39, 4  ;;  %v9264_v6 = vpack.c.bf16 %v4145_v22, %v4145_v22  ;;  %v4952_v37 = vsel %vm437_vm1, %v4947_v16, %v4951_v53  ;;  %v3934_v40 = vmax.f32 %v3898_v61, 0.0 }
 0x37a   : > { %v4476_v46 = vor.u32 %v4475_v27, %v4472_v44  ;;  %v12343_v48 = vor.u32 %v4505_v26, %v4502_v20  ;;  %10055 = vmatmul.mubr.msk.bf16.gmra.mrb[4].mxu1 %vm581_vm2, %v4952_v37  ;;  %v3896_v47 = vadd.f32 %v12123_v29, %v12255_v33  ;;  %v3899_v15 = vadd.f32 %v12258_v28, %v12123_v29 }
 0x37b   : > { %v4480_v2 = vshrl.u32 %v9264_v6, 16  ;;  %v4483_v9 = vshll.u32 %v9264_v6, 16  ;;  %v4150_v54 = vmul.f32 %v4077_v42, %v3934_v40  ;;  %v4953_v55 = vshrl.u32 %v12295_v30, 16 }
 0x37c   : > { %v4477_v32 = vsel %vm12148_vm12, %v4468_v34, %v4476_v46  ;;  %v4478_v59 = vrot.slane %v4476_v46, 4  ;;  %v4507_v33 = vsel %vm12148_vm12, %v4498_v58, %v12343_v48  ;;  %v4508_v63 = vrot.slane %v12343_v48, 4 }
 0x37d   : > { %4691 = vst.msk [vmem:[#allocation2 + $0x58] sm:$0xf] %vm253_vm9, %v4477_v32  ;;  %4694 = vst.msk [vmem:[#allocation2 + $0x64] sm:$0xf] %vm253_vm9, %v4507_v33  ;;  %v4482_v28 = vrot.slane %v4480_v2, 6  ;;  %v4485_v3 = vrot.slane %v4483_v9, 7  ;;  %v9269_v45 = vpack.c.bf16 %v4150_v54, %v4150_v54  ;;  %v4955_v31 = vor.u32 %v4953_v55, %v4951_v53  ;;  %v4087_v53 = vpop.permute.xlu0 %4086  ;;  %v4092_v55 = vpop.permute.xlu1 %4091 }
 0x37e   : > { %v3932_v38 = vmax.f32 %v3896_v47, 0.0  ;;  %v3935_v14 = vmax.f32 %v3899_v15, 0.0  ;;  %v4957_v24 = vshll.u32 %v12350_v43, 16  ;;  %v3897_v34 = vadd.f32 %v12123_v29, %v12261_v50 }
 0x37f   : > { %v4486_v49 = vor.u32 %v4485_v3, %v4482_v28  ;;  %v4530_v62 = vshrl.u32 %v9269_v45, 16  ;;  %v4533_v10 = vshll.u32 %v9269_v45, 16  ;;  %v4961_v11 = vshrl.u32 %v12350_v43, 16  ;;  %v12381_v3 = vld [vmem:[#allocation2 + $0x38] sm:$0xff]  }
 0x380   : > { %v4148_v21 = vmul.f32 %v4067_v57, %v3932_v38  ;;  %v4151_v18 = vmul.f32 %v4082_v41, %v3935_v14  ;;  %v4959_v36 = vrot.slane %v4957_v24, 1  ;;  %v3933_v16 = vmax.f32 %v3897_v34, 0.0 }
 0x381   : > { %v4487_v25 = vsel %vm12148_vm12, %v4478_v59, %v4486_v49  ;;  %v4488_v12 = vrot.slane %v4486_v49, 4  ;;  %v4532_v5 = vrot.slane %v4530_v62, 6  ;;  %v4535_v22 = vrot.slane %v4533_v10, 7  ;;  %v4097_v45 = vpop.permute.xlu0 %4096 }
 0x382   : > { %4692 = vst.msk [vmem:[#allocation2 + $0x5c] sm:$0xf] %vm253_vm9, %v4487_v25  ;;  %v9267_v50 = vpack.c.bf16 %v4148_v21, %v4148_v21  ;;  %v9270_v61 = vpack.c.bf16 %v4151_v18, %v4151_v18  ;;  %v4960_v44 = vsel %vm437_vm1, %v4955_v31, %v4959_v36  ;;  %v4149_v27 = vmul.f32 %v4072_v23, %v3933_v16  ;;  %v12405_v16 = vld [vmem:[#allocation2 + $0x40] sm:$0xff]  }
 0x383   : > { %v4497_v57 = vsel %vm12148_vm12, %v4488_v12, %v4496_v39  ;;  %v4536_v20 = vor.u32 %v4535_v22, %v4532_v5  ;;  %10058 = vmatprep.mubr.msk.bf16.mxu1 %vm581_vm2, %v4960_v44  ;;  %v4963_v26 = vor.u32 %v4961_v11, %v4959_v36  ;;  %v4965_v58 = vshll.u32 %v12366_v52, 16  ;;  %v4102_v12 = vpop.permute.xlu1 %4101 }
 0x384   : > { %4693 = vst.msk [vmem:[#allocation2 + $0x60] sm:$0xf] %vm253_vm9, %v4497_v57  ;;  %v4510_v6 = vshrl.u32 %v9267_v50, 16  ;;  %v4513_v37 = vshll.u32 %v9267_v50, 16  ;;  %v4540_v40 = vshrl.u32 %v9270_v61, 16  ;;  %v4543_v42 = vshll.u32 %v9270_v61, 16 }
 0x385   : > { %v4538_v46 = vrot.slane %v4536_v20, 4  ;;  %v9268_v47 = vpack.c.bf16 %v4149_v27, %v4149_v27  ;;  %v4967_v15 = vrot.slane %v4965_v58, 1  ;;  %v3902_v23 = vadd.f32 %v12268_v1, %v12123_v29  ;;  %v12389_v29 = vld [vmem:[%s13452_s3] ss:$0 sm:$0xff]  ;;  %v4107_v44 = vpop.permute.xlu0 %4106 }
 0x386   : > { %v4512_v2 = vrot.slane %v4510_v6, 6  ;;  %v4515_v39 = vrot.slane %v4513_v37, 7  ;;  %v4542_v9 = vrot.slane %v4540_v40, 6  ;;  %v4545_v54 = vrot.slane %v4543_v42, 7 }
 0x387   : > { %v4520_v32 = vshrl.u32 %v9268_v47, 16  ;;  %v4523_v59 = vshll.u32 %v9268_v47, 16  ;;  %v4968_v33 = vsel %vm437_vm1, %v4963_v26, %v4967_v15  ;;  %v3938_v28 = vmax.f32 %v3902_v23, 0.0 }
 0x388   : > { %v4516_v38 = vor.u32 %v4515_v39, %v4512_v2  ;;  %v12383_v14 = vor.u32 %v4545_v54, %v4542_v9  ;;  %10059 = vmatmul.mubr.msk.bf16.gmra.mrb[8].mxu1 %vm581_vm2, %v4968_v33  ;;  %v3900_v1 = vadd.f32 %v12389_v29, %v12273_v8  ;;  %v3903_v31 = vadd.f32 %v12389_v29, %v12284_v19 }
 0x389   : > { %v4522_v24 = vrot.slane %v4520_v32, 6  ;;  %v4525_v34 = vrot.slane %v4523_v59, 7  ;;  %v4154_v41 = vmul.f32 %v4097_v45, %v3938_v28  ;;  %v4969_v21 = vshrl.u32 %v12366_v52, 16 }
 0x38a   : > { %v4517_v49 = vsel %vm12148_vm12, %v4508_v63, %v4516_v38  ;;  %v4518_v62 = vrot.slane %v4516_v38, 4  ;;  %v4547_v10 = vsel %vm12148_vm12, %v4538_v46, %v12383_v14  ;;  %v3936_v18 = vmax.f32 %v3900_v1, 0.0  ;;  %v4117_v38 = vpop.permute.xlu0 %4116 }
 0x38b   : > { %4695 = vst.msk [vmem:[#allocation2 + $0x68] sm:$0xf] %vm253_vm9, %v4517_v49  ;;  %4698 = vst.msk [vmem:[#allocation2 + $0x74] sm:$0xf] %vm253_vm9, %v4547_v10  ;;  %v4526_v8 = vor.u32 %v4525_v34, %v4522_v24  ;;  %v9273_v19 = vpack.c.bf16 %v4154_v41, %v4154_v41  ;;  %v3939_v36 = vmax.f32 %v3903_v31, 0.0  ;;  %v4971_v48 = vor.u32 %v4969_v21, %v4967_v15  ;;  %v4112_v34 = vpop.permute.xlu1 %4111 }
 0x38c   : > { %v4973_v63 = vshll.u32 %v12381_v3, 16  ;;  %v3901_v11 = vadd.f32 %v12389_v29, %v12297_v56  ;;  %v4977_v25 = vshrl.u32 %v12381_v3, 16  ;;  %v4152_v27 = vmul.f32 %v4087_v53, %v3936_v18  ;;  %v12431_v18 = vld [vmem:[#allocation2 + $0x48] sm:$0xff]  }
 0x38d   : > { %v4527_v5 = vsel %vm12148_vm12, %v4518_v62, %v4526_v8  ;;  %v4528_v22 = vrot.slane %v4526_v8, 4  ;;  %v4570_v50 = vshrl.u32 %v9273_v19, 16  ;;  %v4573_v61 = vshll.u32 %v9273_v19, 16 }
 0x38e   : > { %4696 = vst.msk [vmem:[#allocation2 + $0x6c] sm:$0xf] %vm253_vm9, %v4527_v5  ;;  %v4155_v57 = vmul.f32 %v4102_v12, %v3939_v36  ;;  %v4975_v26 = vrot.slane %v4973_v63, 1  ;;  %v3937_v58 = vmax.f32 %v3901_v11, 0.0  ;;  %v4981_v40 = vshll.u32 %v12405_v16, 16  ;;  %v12439_v5 = vld [vmem:[#allocation2 + $0x50] sm:$0xff]  }
 0x38f   : > { %v4537_v6 = vsel %vm12148_vm12, %v4528_v22, %v4536_v20  ;;  %v4572_v56 = vrot.slane %v4570_v50, 6  ;;  %v4575_v37 = vrot.slane %v4573_v61, 7  ;;  %v9271_v42 = vpack.c.bf16 %v4152_v27, %v4152_v27 }
 0x390   : > { %4697 = vst.msk [vmem:[#allocation2 + $0x70] sm:$0xf] %vm253_vm9, %v4537_v6  ;;  %v9274_v46 = vpack.c.bf16 %v4155_v57, %v4155_v57  ;;  %v4976_v47 = vsel %vm437_vm1, %v4971_v48, %v4975_v26  ;;  %v4153_v15 = vmul.f32 %v4092_v55, %v3937_v58  ;;  %v4979_v53 = vor.u32 %v4977_v25, %v4975_v26  ;;  %v4122_v6 = vpop.permute.xlu1 %4121 }
 0x391   : > { %v4576_v23 = vor.u32 %v4575_v37, %v4572_v56  ;;  %10062 = vmatprep.mubr.msk.bf16.mxu1 %vm581_vm2, %v4976_v47  ;;  %v4983_v2 = vrot.slane %v4981_v40, 1  ;;  %v3906_v39 = vadd.f32 %v12389_v29, %v12321_v51  ;;  %v4550_v20 = vshrl.u32 %v9271_v42, 16 }
 0x392   : > { %v4553_v9 = vshll.u32 %v9271_v42, 16  ;;  %v4580_v54 = vshrl.u32 %v9274_v46, 16  ;;  %v4583_v32 = vshll.u32 %v9274_v46, 16  ;;  %v9272_v33 = vpack.c.bf16 %v4153_v15, %v4153_v15 }
 0x393   : > { %v4578_v59 = vrot.slane %v4576_v23, 4  ;;  %v4984_v28 = vsel %vm437_vm1, %v4979_v53, %v4983_v2  ;;  %v3942_v45 = vmax.f32 %v3906_v39, 0.0  ;;  %v4552_v1 = vrot.slane %v4550_v20, 6  ;;  %v12455_v39 = vld [vmem:[#allocation2 + $0x58] sm:$0xff]  }
 0x394   : > { %v4555_v55 = vrot.slane %v4553_v9, 7  ;;  %v4582_v31 = vrot.slane %v4580_v54, 6  ;;  %v4585_v24 = vrot.slane %v4583_v32, 7  ;;  %10063 = vmatmul.mubr.msk.bf16.gmra.mrb[12].mxu1 %vm581_vm2, %v4984_v28  ;;  %v4560_v41 = vshrl.u32 %v9272_v33, 16 }
 0x395   : > { %v4563_v49 = vshll.u32 %v9272_v33, 16  ;;  %v4158_v51 = vmul.f32 %v4117_v38, %v3942_v45  ;;  %v3904_v62 = vadd.f32 %v12389_v29, %v12324_v35  ;;  %v4548_v10 = vrot.slane %v12383_v14, 4 }
 0x396   : > { %v4556_v21 = vor.u32 %v4555_v55, %v4552_v1  ;;  %v12427_v8 = vor.u32 %v4585_v24, %v4582_v31  ;;  %v3907_v19 = vadd.f32 %v12389_v29, %v12330_v7  ;;  %v4562_v36 = vrot.slane %v4560_v41, 6  ;;  %v12461_v31 = vld [vmem:[#allocation2 + $0x60] sm:$0xff]   ;;  %v4710_v24 = vld [vmem:[#allocation2 + $0x98] sm:$0x1] }
 0x397   : > { %v4565_v48 = vrot.slane %v4563_v49, 7  ;;  %v9277_v63 = vpack.c.bf16 %v4158_v51, %v4158_v51  ;;  %v3940_v11 = vmax.f32 %v3904_v62, 0.0  ;;  %v4985_v14 = vshrl.u32 %v12405_v16, 16 }
 0x398   : > { %v4557_v25 = vsel %vm12148_vm12, %v4548_v10, %v4556_v21  ;;  %v4558_v12 = vrot.slane %v4556_v21, 4  ;;  %v4587_v35 = vsel %vm12148_vm12, %v4578_v59, %v12427_v8  ;;  %v3943_v27 = vmax.f32 %v3907_v19, 0.0  ;;  %v12468_v19 = vld [vmem:[#allocation2 + $0x68] sm:$0xff]  }
 0x399   : > { %4699 = vst.msk [vmem:[#allocation2 + $0x78] sm:$0xf] %vm253_vm9, %v4557_v25  ;;  %4702 = vst.msk [vmem:[#allocation2 + $0x84] sm:$0xf] %vm253_vm9, %v4587_v35  ;;  %v4566_v7 = vor.u32 %v4565_v48, %v4562_v36  ;;  %v4610_v22 = vshrl.u32 %v9277_v63, 16  ;;  %v4613_v50 = vshll.u32 %v9277_v63, 16  ;;  %v4156_v61 = vmul.f32 %v4107_v44, %v3940_v11 }
 0x39a   : > { %v4987_v57 = vor.u32 %v4985_v14, %v4983_v2  ;;  %v4989_v26 = vshll.u32 %v12431_v18, 16  ;;  %v3905_v58 = vadd.f32 %v12389_v29, %v12336_v60  ;;  %v4159_v47 = vmul.f32 %v4122_v6, %v3943_v27 }
 0x39b   : > { %v4567_v56 = vsel %vm12148_vm12, %v4558_v12, %v4566_v7  ;;  %v4568_v37 = vrot.slane %v4566_v7, 4  ;;  %v4612_v40 = vrot.slane %v4610_v22, 6  ;;  %v4615_v42 = vrot.slane %v4613_v50, 7  ;;  %v12476_v12 = vld [vmem:[#allocation2 + $0x70] sm:$0xff]  }
 0x39c   : > { %4700 = vst.msk [vmem:[#allocation2 + $0x7c] sm:$0xf] %vm253_vm9, %v4567_v56  ;;  %v9275_v46 = vpack.c.bf16 %v4156_v61, %v4156_v61  ;;  %v4991_v15 = vrot.slane %v4989_v26, 1  ;;  %v3941_v44 = vmax.f32 %v3905_v58, 0.0  ;;  %v4993_v60 = vshrl.u32 %v12431_v18, 16 }
 0x39d   : > { %v4577_v53 = vsel %vm12148_vm12, %v4568_v37, %v4576_v23  ;;  %v12451_v2 = vor.u32 %v4615_v42, %v4612_v40  ;;  %v4997_v29 = vshll.u32 %v12439_v5, 16  ;;  %v9278_v54 = vpack.c.bf16 %v4159_v47, %v4159_v47 }
 0x39e   : > { %4701 = vst.msk [vmem:[#allocation2 + $0x80] sm:$0xf] %vm253_vm9, %v4577_v53  ;;  %v4590_v20 = vshrl.u32 %v9275_v46, 16  ;;  %v4593_v9 = vshll.u32 %v9275_v46, 16  ;;  %v4992_v32 = vsel %vm437_vm1, %v4987_v57, %v4991_v15  ;;  %v4588_v59 = vrot.slane %v12427_v8, 4 }
 0x39f   : > { %10066 = vmatprep.mubr.msk.bf16.mxu1 %vm581_vm2, %v4992_v32  ;;  %v4157_v23 = vmul.f32 %v4112_v34, %v3941_v44  ;;  %v4995_v33 = vor.u32 %v4993_v60, %v4991_v15  ;;  %v4999_v28 = vrot.slane %v4997_v29, 1  ;;  %v4620_v1 = vshrl.u32 %v9278_v54, 16 }
 0x3a0   : > { %v4592_v45 = vrot.slane %v4590_v20, 6  ;;  %v4595_v38 = vrot.slane %v4593_v9, 7  ;;  %v4623_v55 = vshll.u32 %v9278_v54, 16  ;;  %v5001_v51 = vshrl.u32 %v12439_v5, 16 }
 0x3a1   : > { %v9276_v41 = vpack.c.bf16 %v4157_v23, %v4157_v23  ;;  %v5000_v49 = vsel %vm437_vm1, %v4995_v33, %v4999_v28  ;;  %v5005_v62 = vshll.u32 %v12455_v39, 16  ;;  %v4618_v10 = vrot.slane %v12451_v2, 4 }
 0x3a2   : > { %v4596_v21 = vor.u32 %v4595_v38, %v4592_v45  ;;  %v4622_v34 = vrot.slane %v4620_v1, 6  ;;  %v4625_v8 = vrot.slane %v4623_v55, 7  ;;  %10067 = vmatmul.mubr.msk.bf16.gmra.mrb[16].mxu1 %vm581_vm2, %v5000_v49  ;;  %v5003_v11 = vor.u32 %v5001_v51, %v4999_v28 }
 0x3a3   : > { %v4600_v48 = vshrl.u32 %v9276_v41, 16  ;;  %v4603_v63 = vshll.u32 %v9276_v41, 16  ;;  %v5007_v25 = vrot.slane %v5005_v62, 1  ;;  %v5009_v22 = vshrl.u32 %v12455_v39, 16  ;;  %v12483_v26 = vld [vmem:[#allocation2 + $0x78] sm:$0xff]  }
 0x3a4   : > { %v4597_v35 = vsel %vm12148_vm12, %v4588_v59, %v4596_v21  ;;  %v4626_v14 = vor.u32 %v4625_v8, %v4622_v34  ;;  %v4628_v7 = vrot.slane %v4622_v34, 4  ;;  %v4598_v50 = vrot.slane %v4596_v21, 4 }
 0x3a5   : > { %4703 = vst.msk [vmem:[#allocation2 + $0x88] sm:$0xf] %vm253_vm9, %v4597_v35  ;;  %v4602_v61 = vrot.slane %v4600_v48, 6  ;;  %v4605_v27 = vrot.slane %v4603_v63, 7  ;;  %v5008_v57 = vsel %vm437_vm1, %v5003_v11, %v5007_v25  ;;  %v5011_v56 = vor.u32 %v5009_v22, %v5007_v25  ;;  %v12505_v23 = vld [vmem:[#allocation2 + $0x80] sm:$0xff]   ;;  %v12543_v22 = vld [vmem:[#allocation2 + $0x10] sm:$0xff]  }
 0x3a6   : > { %v4627_v58 = vsel %vm12148_vm12, %v4618_v10, %v4626_v14  ;;  %v4711_v6 = vsel %vm12472_vm14, %v4628_v7, %v4710_v24  ;;  %10070 = vmatprep.mubr.msk.bf16.mxu1 %vm581_vm2, %v5008_v57  ;;  %v5013_v37 = vshll.u32 %v12461_v31, 16  ;;  %v5021_v42 = vshll.u32 %v12468_v19, 16  ;;  %v12537_v14 = vld [vmem:[%s13451_s2 + $0xc] sm:$0xf] }
 0x3a7   : > { %4706 = vst.msk [vmem:[#allocation2 + $0x94] sm:$0xf] %vm253_vm9, %v4627_v58  ;;  %4712 = vst [vmem:[#allocation2 + $0x98] sm:$0x1] %v4711_v6  ;;  %v4606_v40 = vor.u32 %v4605_v27, %v4602_v61  ;;  %v5029_v46 = vshll.u32 %v12476_v12, 16  ;;  %v5017_v15 = vshrl.u32 %v12461_v31, 16 }
 0x3a8   : > { %v5015_v47 = vrot.slane %v5013_v37, 1  ;;  %v5023_v60 = vrot.slane %v5021_v42, 1  ;;  %v5037_v29 = vshll.u32 %v12483_v26, 16  ;;  %v5025_v54 = vshrl.u32 %v12468_v19, 16  ;;  %v12539_v7 = vld [vmem:[#allocation2 + $0x8] sm:$0xff]   ;;  %v12557_v61 = vld [vmem:[#allocation2 + $0x18] sm:$0xff]  }
 0x3a9   : > { %v4607_v44 = vsel %vm12148_vm12, %v4598_v50, %v4606_v40  ;;  %v4608_v53 = vrot.slane %v4606_v40, 4  ;;  %v5031_v59 = vrot.slane %v5029_v46, 1  ;;  %v5033_v45 = vshrl.u32 %v12476_v12, 16  ;;  %v6826_v50 = vld [vmem:[#allocation2 + $0x8] sm:$0xc]  ;;  %v12559_v27 = vld [vmem:[#allocation2 + $0x20] sm:$0xff]  }
 0x3aa   : > { %4704 = vst.msk [vmem:[#allocation2 + $0x8c] sm:$0xf] %vm253_vm9, %v4607_v44  ;;  %v5016_v20 = vsel %vm437_vm1, %v5011_v56, %v5015_v47  ;;  %v5019_v9 = vor.u32 %v5017_v15, %v5015_v47  ;;  %v5027_v28 = vor.u32 %v5025_v54, %v5023_v60  ;;  %v5039_v38 = vrot.slane %v5037_v29, 1  ;;  %v12561_v57 = vld [vmem:[#allocation2 + $0x28] sm:$0xff]   ;;  %v12563_v58 = vld [vmem:[#allocation2 + $0x30] sm:$0xff]   ;;  %v12565_v6 = vld [vmem:[#allocation2 + $0x38] sm:$0xff]  }
 0x3ab   : > { %v4617_v32 = vsel %vm12148_vm12, %v4608_v53, %v12451_v2  ;;  %10071 = vmatmul.mubr.msk.bf16.gmra.mrb[20].mxu1 %vm581_vm2, %v5016_v20  ;;  %v5035_v1 = vor.u32 %v5033_v45, %v5031_v59  ;;  %v5045_v55 = vshll.u32 %v12505_v23, 16  ;;  %v5041_v49 = vshrl.u32 %v12483_v26, 16  ;;  %v12575_v37 = vld [vmem:[#allocation2 + $0x48] sm:$0xff]   ;;  %v12577_v42 = vld [vmem:[#allocation2 + $0x50] sm:$0xff]   ;;  %v12579_v46 = vld [vmem:[#allocation2 + $0x58] sm:$0xff]  }
 0x3ac   : > { %4705 = vst.msk [vmem:[#allocation2 + $0x90] sm:$0xf] %vm253_vm9, %v4617_v32  ;;  %v5024_v33 = vsel %vm437_vm1, %v5019_v9, %v5023_v60  ;;  %v5032_v17 = vsel %vm437_vm1, %v5027_v28, %v5031_v59  ;;  %v12514_v24 = vld [vmem:[#allocation2 + $0x88] sm:$0xf]  ;;  %v5049_v34 = vshrl.u32 %v12505_v23, 16  ;;  %v5610_v35 = vsel %vm636_vm0, %v12289_v13, 0 }
 0x3ad   : > { %10074 = vmatprep.mubr.msk.bf16.mxu1 %vm581_vm2, %v5024_v33  ;;  %v5040_v2 = vsel %vm437_vm1, %v5035_v1, %v5039_v38  ;;  %v5047_v62 = vrot.slane %v5045_v55, 1  ;;  %v5043_v10 = vor.u32 %v5041_v49, %v5039_v38  ;;  %v12555_v13 = vld [vmem:[#allocation2 + $0x10] sm:$0xff]   ;;  %13482 = vst [vmem:[#allocation3_spill] sm:$0xff] %v12577_v42  ;;  %13483 = vst [vmem:[#allocation4_spill] sm:$0xff] %v12579_v46  ;;  %v12581_v47 = vld [vmem:[#allocation2 + $0x60] sm:$0xff]   ;;  %v6835_v15 = vrot.slane %v12557_v61, 2 }
 0x3ae   : > { %v6833_v56 = vrot.slane %v12555_v13, 2  ;;  %13484 = vst [vmem:[#allocation5_spill] sm:$0xff] %v12581_v47  ;;  %v6839_v44 = vrot.slane %v12561_v57, 2  ;;  %v12586_v53 = vld [vmem:[#allocation2 + $0x68] sm:$0xff]   ;;  %v12588_v60 = vld [vmem:[#allocation2 + $0x70] sm:$0xff]   ;;  %v6841_v20 = vrot.slane %v12563_v58, 2 }
 0x3af   : > { %v5051_v36 = vor.u32 %v5049_v34, %v5047_v62  ;;  %v5048_v48 = vsel %vm437_vm1, %v5043_v10, %v5047_v62  ;;  %13485 = vst [vmem:[#allocation6_spill] sm:$0xff] %v12586_v53  ;;  %13486 = vst [vmem:[#allocation7_spill] sm:$0xff] %v12588_v60  ;;  %v6843_v9 = vrot.slane %v12565_v6, 2  ;;  %v12597_v54 = vld [vmem:[#allocation2 + $0x80] sm:$0xff]   ;;  %v6849_v49 = vrot.slane %v12577_v42, 2 }
 0x3b0   : > { %13489 = vst [vmem:[#allocation10_spill] sm:$0xff] %v12597_v54  ;;  %v12600_v32 = vsel %vm2357_vm5, %v6833_v56, %v6835_v15  ;;  %v12609_v45 = vld [vmem:[#allocation2 + $0x98] ss:$0 sps:$4 sm:$0x11]   ;;  %v12612_v38 = vsel %vm2357_vm5, %v6839_v44, %v6841_v20  ;;  %v6851_v62 = vrot.slane %v12579_v46, 2  ;;  %v6853_v10 = vrot.slane %v12581_v47, 2 }
 0x3b1   : > { %v4824_v41 = vld [vmem:[#allocation2 + $0x8c] sm:$0xf]  ;;  %13490 = vst [vmem:[#allocation11_spill] sm:$0xff] %v12600_v32  ;;  %13493 = vst [vmem:[#allocation14_spill] sm:$0xff] %v12609_v45  ;;  %v12615_v1 = vsel %vm2357_vm5, %v6841_v20, %v6843_v9  ;;  %v6857_v34 = vrot.slane %v12588_v60, 2 }
 0x3b2   : > { %v12518_v51 = vcombine.low %v12514_v24, %v4824_v41  ;;  %13494 = vst [vmem:[#allocation15_spill] sm:$0xff] %v12612_v38  ;;  %13495 = vst [vmem:[#allocation16_spill] sm:$0xff] %v12615_v1  ;;  %v12617_v55 = vld [vmem:[#allocation2 + $0x88] sm:$0xff]   ;;  %v6847_v41 = vrot.slane %v12575_v37, 2  ;;  %v5514_v20 = vld [vmem:[#allocation2] sm:$0xe] }
 0x3b3   : > { %10075 = vmatmul.mubr.msk.bf16.gmra.mrb[24].mxu1 %vm581_vm2, %v5032_v17  ;;  %13496 = vst [vmem:[#allocation17_spill] sm:$0xff] %v12617_v55  ;;  %v12619_v17 = vld [vmem:[#allocation2 + $0x90] sm:$0xff]  }
 0x3b4   : > { %10078 = vmatprep.mubr.msk.bf16.mxu1 %vm581_vm2, %v5040_v2  ;;  %v5053_v21 = vshll.u32 %v12518_v51, 16  ;;  %v5057_v11 = vshrl.u32 %v12518_v51, 16  ;;  %13497 = vst [vmem:[#allocation18_spill] sm:$0xff] %v12619_v17  ;;  %v8024_v46 = vld [vmem:[#allocation2 + $0x10] sm:$0x8] }
 0x3b6   : > { %v5055_v8 = vrot.slane %v5053_v21, 1  ;;  %v6855_v21 = vrot.slane %v12586_v53, 2 }
 0x3b8   : > { %v5056_v63 = vsel %vm437_vm1, %v5051_v36, %v5055_v8  ;;  %v5059_v25 = vor.u32 %v5057_v11, %v5055_v8  ;;  %v6861_v11 = vrot.slane %v12597_v54, 2  ;;  %vm8638_vm1 = vcmask 62464  }
 0x3bb   : > { %10079 = vmatmul.mubr.msk.bf16.gmra.mrb[28].mxu1 %vm581_vm2, %v5048_v48  ;;  %v12637_v48 = vsel %vm2357_vm5, %v6847_v41, %v6849_v49 }
 0x3bc   : > { %10082 = vmatprep.mubr.msk.bf16.mxu1 %vm581_vm2, %v5056_v63  ;;  %13500 = vst [vmem:[#allocation21_spill] sm:$0xff] %v12637_v48  ;;  %v12640_v63 = vsel %vm2357_vm5, %v6849_v49, %v6851_v62 }
 0x3bd   : > { %13501 = vst [vmem:[#allocation22_spill] sm:$0xff] %v12640_v63 }
 0x3c3   : > { %10083 = vmatmul.mubr.msk.bf16.gmra.mrb[32].mxu1 %vm581_vm2, %v5059_v25  ;;  %v12646_v25 = vsel %vm2357_vm5, %v6851_v62, %v6853_v10 }
 0x3c4   : > { %10088 = vmatprep.mubr.msk.bf16.mxu1 %vm581_vm2, %v12118_v0  ;;  %v12553_v0 = vld [vmem:[#allocation2 + $0xc] sm:$0xf]  ;;  %13502 = vst [vmem:[#allocation23_spill] sm:$0xff] %v12646_v25 }
 0x3cb   : > { %10089 = vmatmul.mubr.msk.bf16.vlgmr.msra.gmra.mrb[0].mxu1 %vm581_vm2, %v12539_v7 }
 0x3cc   : > { %10125 = vmatpush3.bf16.msra.mxu1 %v5610_v35  ;;  %10092 = vmatprep.mubr.msk.bf16.mxu1 %vm581_vm2, %v12543_v22  ;;  %v12649_v35 = vsel %vm2357_vm5, %v6853_v10, %v6855_v21  ;;  %v12681_v10 = vld [vmem:[#allocation2 + $0x18] sm:$0xff]  }
 0x3cd   : > { %10978 = vmatprep.subr.msk.bf16.mxu1 %vm636_vm0, %v12537_v14  ;;  %13503 = vst [vmem:[#allocation24_spill] sm:$0xff] %v12649_v35 }
 0x3d3   : > { %10093 = vmatmul.mubr.msk.bf16.gmra.mrb[4].mxu1 %vm581_vm2, %v12282_v4  ;;  %v9143_v4 = vcombine.low %v6826_v50, %v12553_v0 }
 0x3d4   : > { %10096 = vmatprep.mubr.msk.bf16.mxu1 %vm581_vm2, %v12295_v30  ;;  %v12570_v30 = vld [vmem:[#allocation2 + $0x40] sm:$0xff]  }
 0x3d5   : > { %v6832_v40 = vrot.slane %v9143_v4, 2  ;;  %v6845_v28 = vrot.slane %v12570_v30, 2 }
 0x3d7   : > { %v12593_v29 = vsel %vm2357_vm5, %v6832_v40, %v6833_v56  ;;  %v12622_v2 = vsel %vm2357_vm5, %v6843_v9, %v6845_v28  ;;  %v12634_v36 = vsel %vm2357_vm5, %v6845_v28, %v6847_v41  ;;  %v6863_v56 = vrot.slane %v12617_v55, 2  ;;  %v7139_v9 = vld [vmem:[#allocation2 + $0x10] sm:$0xc]  ;;  %v12672_v28 = vld [vmem:[#allocation2 + $0x14] sm:$0xf] }
 0x3d8   : > { %13488 = vst [vmem:[#allocation9_spill] sm:$0xff] %v12593_v29  ;;  %13498 = vst [vmem:[#allocation19_spill] sm:$0xff] %v12622_v2  ;;  %v6865_v40 = vrot.slane %v12619_v17, 2  ;;  %v11158_v41 = vld [vmem:[#allocation2 + $0x4] sm:$0xf]  ;;  %v12677_v62 = vcombine.low %v7139_v9, %v12672_v28  ;;  %v7593_v9 = vshrl.u32 %v12681_v10, 16 }
 0x3d9   : > { %13499 = vst [vmem:[#allocation20_spill] sm:$0xff] %v12634_v36  ;;  %v9048_v49 = vcombine.low %v5514_v20, %v11158_v41  ;;  %v12696_v41 = vld [vmem:[#allocation2 + $0x38] sm:$0xff]   ;;  %v12713_v2 = vld [vmem:[#allocation2 + $0x50] sm:$0xff]  }
 0x3da   : > { %13510 = vst [vmem:[#allocation31_spill] sm:$0xff] %v12677_v62  ;;  %v7588_v20 = vshll.u32 %v12677_v62, 16  ;;  %v7632_v32 = vshll.u32 %v12696_v41, 16  ;;  %v12752_v29 = vld [vmem:[#allocation2 + $0x78] sm:$0xff]  }
 0x3db   : > { %10097 = vmatmul.mubr.msk.bf16.gmra.mrb[8].mxu1 %vm581_vm2, %v12350_v43  ;;  %v6837_v43 = vrot.slane %v12559_v27, 2 }
 0x3dc   : > { %10100 = vmatprep.mubr.msk.bf16.mxu1 %vm581_vm2, %v12366_v52  ;;  %v12590_v52 = vld [vmem:[#allocation2 + $0x78] sm:$0xff]  }
 0x3dd   : > { %13487 = vst [vmem:[#allocation8_spill] sm:$0xff] %v12590_v52  ;;  %v12603_v59 = vsel %vm2357_vm5, %v6835_v15, %v6837_v43  ;;  %v12606_v33 = vsel %vm2357_vm5, %v6837_v43, %v6839_v44  ;;  %v6859_v8 = vrot.slane %v12590_v52, 2  ;;  %v12664_v15 = vsel %vm2357_vm5, %v6861_v11, %v6863_v56 }
 0x3de   : > { %13491 = vst [vmem:[#allocation12_spill] sm:$0xff] %v12603_v59  ;;  %13492 = vst [vmem:[#allocation13_spill] sm:$0xff] %v12606_v33  ;;  %v12667_v43 = vsel %vm2357_vm5, %v6863_v56, %v6865_v40  ;;  %v7585_v56 = vshrl.u32 %v12677_v62, 16 }
 0x3df   : > { %v12655_v50 = vsel %vm2357_vm5, %v6857_v34, %v6859_v8  ;;  %v12658_v4 = vsel %vm2357_vm5, %v6859_v8, %v6861_v11  ;;  %13507 = vst [vmem:[#allocation28_spill] sm:$0xff] %v12664_v15  ;;  %13508 = vst [vmem:[#allocation29_spill] sm:$0xff] %v12667_v43  ;;  %v12687_v8 = vrot.slane %v9048_v49, 1  ;;  %v12689_v11 = vld [vmem:[#allocation2 + $0x30] sm:$0xff]   ;;  %v7596_v43 = vshll.u32 %v12681_v10, 16 }
 0x3e0   : > { %13505 = vst [vmem:[#allocation26_spill] sm:$0xff] %v12655_v50  ;;  %13506 = vst [vmem:[#allocation27_spill] sm:$0xff] %v12658_v4  ;;  %v12701_v4 = vld [vmem:[#allocation2 + $0x40] sm:$0xff]   ;;  %v7590_v50 = vrot.slane %v7588_v20, 3  ;;  %v7620_v25 = vshrl.u32 %v12689_v11, 16  ;;  %v7623_v20 = vshll.u32 %v12689_v11, 16 }
 0x3e1   : > { %v7598_v62 = vrot.slane %v7596_v43, 3  ;;  %v7629_v43 = vshrl.u32 %v12696_v41, 16 }
 0x3e2   : > { %v7622_v33 = vrot.slane %v7620_v25, 2  ;;  %v7625_v59 = vrot.slane %v7623_v20, 3 }
 0x3e3   : > { %10101 = vmatmul.mubr.msk.bf16.gmra.mrb[12].mxu1 %vm581_vm2, %v12381_v3  ;;  %v12652_v3 = vsel %vm2357_vm5, %v6855_v21, %v6857_v34  ;;  %v12683_v21 = vld [vmem:[#allocation2 + $0x20] sm:$0xff]   ;;  %v12685_v34 = vld [vmem:[#allocation2 + $0x28] sm:$0xff]  }
 0x3e4   : > { %10104 = vmatprep.mubr.msk.bf16.mxu1 %vm581_vm2, %v12405_v16  ;;  %13504 = vst [vmem:[#allocation25_spill] sm:$0xff] %v12652_v3  ;;  %v6867_v16 = vrot.slane %v12609_v45, 2  ;;  %v7602_v49 = vshrl.u32 %v12683_v21, 16  ;;  %v7605_v15 = vshll.u32 %v12683_v21, 16  ;;  %v7595_v3 = vrot.slane %v7593_v9, 2  ;;  %v12711_v9 = vld [vmem:[#allocation2 + $0x48] sm:$0xff]  }
 0x3e5   : > { %v7647_v20 = vshrl.u32 %v12711_v9, 16 }
 0x3e6   : > { %v12670_v44 = vsel %vm2357_vm5, %v6865_v40, %v6867_v16  ;;  %v7611_v40 = vshrl.u32 %v12685_v34, 16  ;;  %v7614_v16 = vshll.u32 %v12685_v34, 16  ;;  %v7604_v35 = vrot.slane %v7602_v49, 2 }
 0x3e7   : > { %13509 = vst [vmem:[#allocation30_spill] sm:$0xff] %v12670_v44  ;;  %v7587_v44 = vrot.slane %v7585_v56, 2  ;;  %v7607_v56 = vrot.slane %v7605_v15, 3  ;;  %v7599_v1 = vor.u32 %v7598_v62, %v7595_v3  ;;  %v12716_v15 = vld [vmem:[#allocation2 + $0x58] sm:$0xff]   ;;  %v7626_v3 = vor.u32 %v7625_v59, %v7622_v33  ;;  %v12744_v59 = vld [vmem:[#allocation2 + $0x70] sm:$0xff]  }
 0x3e8   : > { %v7613_v48 = vrot.slane %v7611_v40, 2  ;;  %v7616_v36 = vrot.slane %v7614_v16, 3  ;;  %v7631_v16 = vrot.slane %v7629_v43, 2  ;;  %v7634_v62 = vrot.slane %v7632_v32, 3 }
 0x3e9   : > { %v7591_v63 = vor.u32 %v7590_v50, %v7587_v44  ;;  %v7608_v38 = vor.u32 %v7607_v56, %v7604_v35  ;;  %v7638_v50 = vshrl.u32 %v12701_v4, 16  ;;  %v7641_v35 = vshll.u32 %v12701_v4, 16 }
 0x3ea   : > { %v7617_v49 = vor.u32 %v7616_v36, %v7613_v48  ;;  %v12730_v48 = vld [vmem:[#allocation2 + $0x60] sm:$0xff]   ;;  %v7665_v32 = vshrl.u32 %v12716_v15, 16  ;;  %v7695_v60 = vshll.u32 %v12744_v59, 16 }
 0x3eb   : > { %10105 = vmatmul.mubr.msk.bf16.gmra.mrb[16].mxu1 %vm581_vm2, %v12431_v18  ;;  %v12721_v44 = vsel %vm3110_vm10, %v7591_v63, %v7599_v1  ;;  %v12724_v40 = vsel %vm3110_vm10, %v7599_v1, %v7608_v38  ;;  %v7640_v36 = vrot.slane %v7638_v50, 2  ;;  %v7643_v56 = vrot.slane %v7641_v35, 3  ;;  %v12735_v1 = vld [vmem:[#allocation2 + $0x68] sm:$0xff]  }
 0x3ec   : > { %10108 = vmatprep.mubr.msk.bf16.mxu1 %vm581_vm2, %v12439_v5  ;;  %13511 = vst [vmem:[#allocation32_spill] sm:$0xff] %v12721_v44  ;;  %13512 = vst [vmem:[#allocation33_spill] sm:$0xff] %v12724_v40  ;;  %v12728_v25 = vsel %vm3110_vm10, %v7608_v38, %v7617_v49  ;;  %v7650_v63 = vshll.u32 %v12711_v9, 16  ;;  %v7656_v44 = vshrl.u32 %v12713_v2, 16  ;;  %v12738_v43 = vsel %vm3110_vm10, %v7617_v49, %v7626_v3 }
 0x3ed   : > { %13513 = vst [vmem:[#allocation34_spill] sm:$0xff] %v12728_v25  ;;  %13514 = vst [vmem:[#allocation35_spill] sm:$0xff] %v12738_v43  ;;  %v7635_v40 = vor.u32 %v7634_v62, %v7631_v16  ;;  %v7659_v38 = vshll.u32 %v12713_v2, 16  ;;  %v7644_v33 = vor.u32 %v7643_v56, %v7640_v36  ;;  %v7649_v50 = vrot.slane %v7647_v20, 2  ;;  %v12759_v56 = vld [vmem:[#allocation2 + $0x80] sm:$0xff]  }
 0x3ee   : > { %v7652_v35 = vrot.slane %v7650_v63, 3  ;;  %v7658_v25 = vrot.slane %v7656_v44, 2  ;;  %v7667_v62 = vrot.slane %v7665_v32, 2  ;;  %v7668_v43 = vshll.u32 %v12716_v15, 16 }
 0x3ef   : > { %v12749_v49 = vsel %vm3110_vm10, %v7626_v3, %v7635_v40  ;;  %v7661_v16 = vrot.slane %v7659_v38, 3  ;;  %v12755_v45 = vsel %vm3110_vm10, %v7635_v40, %v7644_v33  ;;  %v7674_v36 = vshrl.u32 %v12730_v48, 16 }
 0x3f0   : > { %13515 = vst [vmem:[#allocation36_spill] sm:$0xff] %v12749_v49  ;;  %13516 = vst [vmem:[#allocation37_spill] sm:$0xff] %v12755_v45  ;;  %v7653_v17 = vor.u32 %v7652_v35, %v7649_v50  ;;  %v7677_v44 = vshll.u32 %v12730_v48, 16  ;;  %v7670_v63 = vrot.slane %v7668_v43, 3  ;;  %v7683_v3 = vshrl.u32 %v12735_v1, 16  ;;  %v12767_v50 = vld [vmem:[#allocation2 + $0x88] sm:$0xff]  }
 0x3f1   : > { %v7662_v20 = vor.u32 %v7661_v16, %v7658_v25  ;;  %v7686_v38 = vshll.u32 %v12735_v1, 16  ;;  %v7676_v49 = vrot.slane %v7674_v36, 2  ;;  %v7692_v40 = vshrl.u32 %v12744_v59, 16  ;;  %v12772_v43 = vld [vmem:[#allocation2 + $0x90] sm:$0xff]   ;;  %v12776_v36 = vld [vmem:[#allocation2 + $0x98] sm:$0xff]  }
 0x3f2   : > { %v12764_v32 = vsel %vm3110_vm10, %v7644_v33, %v7653_v17  ;;  %v7679_v55 = vrot.slane %v7677_v44, 3  ;;  %v7671_v45 = vor.u32 %v7670_v63, %v7667_v62  ;;  %v7685_v54 = vrot.slane %v7683_v3, 2 }
 0x3f3   : > { %10109 = vmatmul.mubr.msk.bf16.gmra.mrb[20].mxu1 %vm581_vm2, %v12455_v39  ;;  %13517 = vst [vmem:[#allocation38_spill] sm:$0xff] %v12764_v32  ;;  %v12770_v35 = vsel %vm3110_vm10, %v7653_v17, %v7662_v20  ;;  %v7688_v25 = vrot.slane %v7686_v38, 3  ;;  %v7694_v52 = vrot.slane %v7692_v40, 2  ;;  %v7701_v33 = vshrl.u32 %v12752_v29, 16 }
 0x3f4   : > { %10112 = vmatprep.mubr.msk.bf16.mxu1 %vm581_vm2, %v12461_v31  ;;  %13518 = vst [vmem:[#allocation39_spill] sm:$0xff] %v12770_v35  ;;  %v7680_v16 = vor.u32 %v7679_v55, %v7676_v49  ;;  %v12779_v44 = vsel %vm3110_vm10, %v7662_v20, %v7671_v45  ;;  %v7704_v17 = vshll.u32 %v12752_v29, 16  ;;  %v7710_v62 = vshrl.u32 %v12759_v56, 16 }
 0x3f5   : > { %13519 = vst [vmem:[#allocation40_spill] sm:$0xff] %v12779_v44  ;;  %v7689_v32 = vor.u32 %v7688_v25, %v7685_v54  ;;  %v7697_v49 = vrot.slane %v7695_v60, 3  ;;  %v7703_v63 = vrot.slane %v7701_v33, 2  ;;  %v7713_v3 = vshll.u32 %v12759_v56, 16  ;;  %v4822_v60 = vld [vmem:[#allocation2 + $0x8c] sm:$0x7] }
 0x3f6   : > { %v12786_v55 = vsel %vm3110_vm10, %v7671_v45, %v7680_v16  ;;  %v7706_v54 = vrot.slane %v7704_v17, 3  ;;  %v7712_v38 = vrot.slane %v7710_v62, 2  ;;  %v7719_v40 = vshrl.u32 %v12767_v50, 16 }
 0x3f7   : > { %13520 = vst [vmem:[#allocation41_spill] sm:$0xff] %v12786_v55  ;;  %v12792_v20 = vsel %vm3110_vm10, %v7680_v16, %v7689_v32  ;;  %v7698_v25 = vor.u32 %v7697_v49, %v7694_v52  ;;  %v7715_v44 = vrot.slane %v7713_v3, 3  ;;  %v7722_v35 = vshll.u32 %v12767_v50, 16 }
 0x3f8   : > { %13521 = vst [vmem:[#allocation42_spill] sm:$0xff] %v12792_v20  ;;  %v7728_v45 = vshrl.u32 %v12772_v43, 16  ;;  %v7707_v33 = vor.u32 %v7706_v54, %v7703_v63  ;;  %v7721_v55 = vrot.slane %v7719_v40, 2  ;;  %v7731_v53 = vshll.u32 %v12772_v43, 16 }
 0x3f9   : > { %v7737_v47 = vshrl.u32 %v12776_v36, 16  ;;  %v12800_v16 = vsel %vm3110_vm10, %v7689_v32, %v7698_v25  ;;  %v7716_v17 = vor.u32 %v7715_v44, %v7712_v38  ;;  %v7724_v62 = vrot.slane %v7722_v35, 3 }
 0x3fa   : > { %v7730_v20 = vrot.slane %v7728_v45, 2  ;;  %v12803_v52 = vsel %vm3110_vm10, %v7698_v25, %v7707_v33  ;;  %v7733_v49 = vrot.slane %v7731_v53, 3  ;;  %v7740_v42 = vshll.u32 %v12776_v36, 16  ;;  %v11159_v53 = vld [vmem:[#allocation2 + $0x18] sm:$0xff]  }
 0x3fb   : > { %10113 = vmatmul.mubr.msk.bf16.gmra.mrb[24].mxu1 %vm581_vm2, %v12468_v19  ;;  %v7739_v3 = vrot.slane %v7737_v47, 2  ;;  %v9028_v63 = vcombine.low %v12514_v24, %v4822_v60  ;;  %v6043_v54 = vsel %vm636_vm0, %v12537_v14, 0  ;;  %v12810_v40 = vsel %vm3110_vm10, %v7707_v33, %v7716_v17 }
 0x3fc   : > { %10116 = vmatprep.mubr.msk.bf16.mxu1 %vm581_vm2, %v12476_v12  ;;  %v7725_v32 = vor.u32 %v7724_v62, %v7721_v55  ;;  %v7734_v44 = vor.u32 %v7733_v49, %v7730_v20  ;;  %v7742_v35 = vrot.slane %v7740_v42, 3  ;;  %v9221_v38 = vcombine.low %v8024_v46, %v12672_v28 }
 0x3fd   : > { %v8031_v25 = vrot.slane %v12681_v10, 3  ;;  %v13522_v47 = vrot.slane %v12539_v7, 1  ;;  %v5525_v45 = vrot.slane %v11159_v53, 1  ;;  %v8033_v55 = vrot.slane %v12683_v21, 3 }
 0x3fe   : > { %v12820_v14 = vsel %vm3110_vm10, %v7716_v17, %v7725_v32  ;;  %v12825_v42 = vsel %vm3110_vm10, %v7725_v32, %v7734_v44  ;;  %v12827_v46 = vor.u32 %v7742_v35, %v7739_v3  ;;  %v8030_v28 = vrot.slane %v9221_v38, 3  ;;  %v12861_v53 = vld [vmem:[#allocation2 + $0xa0] ss:$0 sps:$4 sm:$0x33]  }
 0x3ff   : > { %v5522_v24 = vsel %vm1043_vm3, %v12687_v8, %v13522_v47  ;;  %v8035_v20 = vrot.slane %v12685_v34, 3  ;;  %v13523_v60 = vrot.slane %v12543_v22, 1  ;;  %v13524_v8 = vmov %v13522_v47 }
 0x400   : > { %v12836_v17 = vsel %vm3557_vm11, %v8031_v25, %v8033_v55  ;;  %v8037_v62 = vrot.slane %v12689_v11, 3  ;;  %v8039_v49 = vrot.slane %v12696_v41, 3  ;;  %v12842_v3 = vsel %vm3110_vm10, %v7734_v44, %v12827_v46 }
 0x401   : > { %v5524_v33 = vsel %vm1043_vm3, %v13524_v8, %v13523_v60  ;;  %v12848_v32 = vsel %vm3557_vm11, %v8033_v55, %v8035_v20  ;;  %v8041_v7 = vrot.slane %v12701_v4, 3  ;;  %v13526_v35 = vmov %v13523_v60 }
 0x402   : > { %13525 = vst [vmem:[#allocation43_spill] sm:$0xff] %v12848_v32  ;;  %v5526_v38 = vsel %vm1043_vm3, %v13526_v35, %v5525_v45  ;;  %v12855_v47 = vsel %vm3557_vm11, %v8035_v20, %v8037_v62  ;;  %v8043_v44 = vrot.slane %v12711_v9, 3  ;;  %v8045_v55 = vrot.slane %v12713_v2, 3 }
 0x403   : > { %10117 = vmatmul.mubr.msk.bf16.gmra.mrb[28].mxu1 %vm581_vm2, %v12483_v26  ;;  %13527 = vst [vmem:[#allocation44_spill] sm:$0xff] %v12855_v47  ;;  %v8049_v22 = vrot.slane %v12730_v48, 3  ;;  %v8051_v20 = vrot.slane %v12735_v1, 3  ;;  %v8053_v8 = vrot.slane %v12744_v59, 3 }
 0x404   : > { %10120 = vmatprep.mubr.msk.bf16.mxu1 %vm581_vm2, %v12505_v23  ;;  %v12870_v60 = vsel %vm3557_vm11, %v8041_v7, %v8043_v44  ;;  %v12881_v35 = vsel %vm3557_vm11, %v8043_v44, %v8045_v55  ;;  %v8059_v44 = vrot.slane %v12767_v50, 3 }
 0x405   : > { %13530 = vst [vmem:[#allocation47_spill] sm:$0xff] %v12870_v60  ;;  %v8057_v60 = vrot.slane %v12759_v56, 3  ;;  %v12895_v47 = vsel %vm3557_vm11, %v8051_v20, %v8053_v8 }
 0x406   : > { %13532 = vst [vmem:[#allocation49_spill] sm:$0xff] %v12895_v47 }
 0x40b   : > { %10121 = vmatmul.mubr.msk.bf16.gmra.mrb[32].mxu1 %vm581_vm2, %v9028_v63  ;;  %v12845_v63 = vsel %vm3557_vm11, %v8030_v28, %v8031_v25  ;;  %v12864_v25 = vsel %vm3557_vm11, %v8039_v49, %v8041_v7  ;;  %v8047_v28 = vrot.slane %v12716_v15, 3 }
 0x40c   : > { %10126 = vmatprep.mubr.msk.bf16.mxu1 %vm581_vm2, %v5522_v24  ;;  %v12858_v24 = vsel %vm3557_vm11, %v8037_v62, %v8039_v49  ;;  %13529 = vst [vmem:[#allocation46_spill] sm:$0xff] %v12864_v25  ;;  %v8055_v62 = vrot.slane %v12752_v29, 3  ;;  %v12878_v49 = vld [vmem:[%s13451_s2 + $0x10] sm:$0xf] }
 0x40d   : > { %13528 = vst [vmem:[#allocation45_spill] sm:$0xff] %v12858_v24  ;;  %v12884_v25 = vsel %vm3557_vm11, %v8045_v55, %v8047_v28  ;;  %v12887_v7 = vsel %vm3557_vm11, %v8047_v28, %v8049_v22  ;;  %v12892_v24 = vsel %vm3557_vm11, %v8049_v22, %v8051_v20  ;;  %v8061_v28 = vrot.slane %v12772_v43, 3 }
 0x40e   : > { %13531 = vst [vmem:[#allocation48_spill] sm:$0xff] %v12892_v24  ;;  %v12898_v32 = vsel %vm3557_vm11, %v8053_v8, %v8055_v62  ;;  %v12903_v55 = vsel %vm3557_vm11, %v8055_v62, %v8057_v60  ;;  %v8065_v22 = vrot.slane %v12861_v53, 3  ;;  %v12911_v20 = vsel %vm3557_vm11, %v8057_v60, %v8059_v44  ;;  %v11160_v8 = vld [vmem:[#allocation2 + $0x20] sm:$0xff]  }
 0x40f   : > { %13533 = vst [vmem:[#allocation50_spill] sm:$0xff] %v12898_v32  ;;  %13534 = vst [vmem:[#allocation51_spill] sm:$0xff] %v12903_v55  ;;  %v5527_v32 = vrot.slane %v11160_v8, 1  ;;  %v11161_v55 = vld [vmem:[#allocation2 + $0x28] sm:$0xff]   ;;  %v11162_v8 = vld [vmem:[#allocation2 + $0x30] sm:$0xff]  }
 0x410   : > { %13535 = vst [vmem:[#allocation52_spill] sm:$0xff] %v12911_v20  ;;  %v5529_v47 = vrot.slane %v11161_v55, 1  ;;  %v5531_v20 = vrot.slane %v11162_v8, 1  ;;  %v11164_v55 = vld [vmem:[#allocation2 + $0x40] sm:$0xff]  }
 0x411   : > { %v5528_v24 = vsel %vm1043_vm3, %v5525_v45, %v5527_v32  ;;  %v5535_v45 = vrot.slane %v11164_v55, 1  ;;  %v5553_v55 = vrot.slane %v12518_v51, 1 }
 0x412   : > { %v5530_v60 = vsel %vm1043_vm3, %v5527_v32, %v5529_v47 }
 0x413   : > { %10127 = vmatmul.mubr.msk.bf16.vlgmr.msra.gmra.mrb[0].mxu1 %vm581_vm2, %v5524_v33  ;;  %v8063_v33 = vrot.slane %v12776_v36, 3 }
 0x414   : > { %10163 = vmatpush3.bf16.msra.mxu1 %v6043_v54  ;;  %10130 = vmatprep.mubr.msk.bf16.mxu1 %vm581_vm2, %v5526_v38  ;;  %v12914_v54 = vsel %vm3557_vm11, %v8059_v44, %v8061_v28  ;;  %v11163_v44 = vld [vmem:[#allocation2 + $0x38] sm:$0xff]  }
 0x415   : > { %10979 = vmatprep.subr.msk.bf16.mxu1 %vm636_vm0, %v12878_v49  ;;  %13536 = vst [vmem:[#allocation53_spill] sm:$0xff] %v12914_v54  ;;  %v12917_v38 = vsel %vm3557_vm11, %v8061_v28, %v8063_v33  ;;  %v12920_v62 = vsel %vm3557_vm11, %v8063_v33, %v8065_v22  ;;  %v5533_v54 = vrot.slane %v11163_v44, 1  ;;  %v5532_v28 = vsel %vm1043_vm3, %v5529_v47, %v5531_v20 }
 0x416   : > { %v5539_v47 = vrot.slane %v12439_v5, 1 }
 0x417   : > { %v5534_v33 = vsel %vm1043_vm3, %v5531_v20, %v5533_v54  ;;  %v5536_v32 = vsel %vm1043_vm3, %v5533_v54, %v5535_v45  ;;  %v5545_v54 = vrot.slane %v12468_v19, 1  ;;  %v5551_v19 = vrot.slane %v12505_v23, 1  ;;  %v11099_v23 = vld [vmem:[#allocation2 + $0x20] sm:$0xff]  }
 0x41b   : > { %10131 = vmatmul.mubr.msk.bf16.gmra.mrb[4].mxu1 %vm581_vm2, %v5528_v24  ;;  %v5537_v24 = vrot.slane %v12431_v18, 1  ;;  %v5543_v18 = vrot.slane %v12461_v31, 1 }
 0x41c   : > { %10134 = vmatprep.mubr.msk.bf16.mxu1 %vm581_vm2, %v5530_v60  ;;  %v5541_v60 = vrot.slane %v12455_v39, 1  ;;  %v5547_v39 = vrot.slane %v12476_v12, 1  ;;  %v5554_v12 = vsel %vm1043_vm3, %v5551_v19, %v5553_v55 }
 0x41d   : > { %v5538_v22 = vsel %vm1043_vm3, %v5535_v45, %v5537_v24  ;;  %v5540_v20 = vsel %vm1043_vm3, %v5537_v24, %v5539_v47  ;;  %v5546_v5 = vsel %vm1043_vm3, %v5543_v18, %v5545_v54  ;;  %v11097_v24 = vld [vmem:[#allocation2 + $0x10] sm:$0xff]  }
 0x41e   : > { %v5542_v8 = vsel %vm1043_vm3, %v5539_v47, %v5541_v60  ;;  %v5544_v44 = vsel %vm1043_vm3, %v5541_v60, %v5543_v18  ;;  %v11098_v47 = vld [vmem:[#allocation2 + $0x18] sm:$0xff]  }
 0x41f   : > { %v5956_v51 = vrot.slane %v11098_v47, 1 }
 0x423   : > { %10135 = vmatmul.mubr.msk.bf16.gmra.mrb[8].mxu1 %vm581_vm2, %v5532_v28  ;;  %v5549_v28 = vrot.slane %v12483_v26, 1  ;;  %v11096_v26 = vld [vmem:[#allocation2 + $0x8] sm:$0xfe]  }
 0x424   : > { %10138 = vmatprep.mubr.msk.bf16.mxu1 %vm581_vm2, %v5534_v33  ;;  %v5548_v33 = vsel %vm1043_vm3, %v5545_v54, %v5547_v39  ;;  %v11100_v54 = vld [vmem:[#allocation2 + $0x28] sm:$0xff]  }
 0x425   : > { %v5550_v31 = vsel %vm1043_vm3, %v5547_v39, %v5549_v28  ;;  %v5552_v45 = vsel %vm1043_vm3, %v5549_v28, %v5551_v19  ;;  %v11101_v39 = vld [vmem:[#allocation2 + $0x30] sm:$0xff]  }
 0x426   : > { %v5962_v28 = vrot.slane %v11101_v39, 1  ;;  %v11108_v39 = vld [vmem:[#allocation2 + $0x68] sm:$0xff]  }
 0x42b   : > { %10139 = vmatmul.mubr.msk.bf16.gmra.mrb[12].mxu1 %vm581_vm2, %v5536_v32  ;;  %v5954_v32 = vrot.slane %v11097_v24, 1 }
 0x42c   : > { %10142 = vmatprep.mubr.msk.bf16.mxu1 %vm581_vm2, %v5538_v22  ;;  %v5953_v22 = vrot.slane %v11096_v26, 1  ;;  %v11104_v26 = vld [vmem:[#allocation2 + $0x48] sm:$0xff]  }
 0x42d   : > { %v5957_v18 = vsel %vm1043_vm3, %v5954_v32, %v5956_v51  ;;  %v5968_v47 = vrot.slane %v11104_v26, 1 }
 0x42e   : > { %v5955_v60 = vsel %vm1043_vm3, %v5953_v22, %v5954_v32  ;;  %v11105_v22 = vld [vmem:[#allocation2 + $0x50] sm:$0xff]  }
 0x433   : > { %10143 = vmatmul.mubr.msk.bf16.gmra.mrb[16].mxu1 %vm581_vm2, %v5540_v20  ;;  %v5958_v20 = vrot.slane %v11099_v23, 1 }
 0x434   : > { %10146 = vmatprep.mubr.msk.bf16.mxu1 %vm581_vm2, %v5542_v8  ;;  %v6611_v8 = vsel %vm636_vm0, %v12878_v49, 0  ;;  %v5960_v49 = vrot.slane %v11100_v54, 1 }
 0x436   : > { %v5963_v19 = vsel %vm1043_vm3, %v5960_v49, %v5962_v28 }
 0x43b   : > { %10147 = vmatmul.mubr.msk.bf16.gmra.mrb[20].mxu1 %vm581_vm2, %v5544_v44  ;;  %v12968_v44 = vld [vmem:[%s13451_s2 + $0x14] sm:$0xf] }
 0x43c   : > { %10150 = vmatprep.mubr.msk.bf16.mxu1 %vm581_vm2, %v5546_v5  ;;  %v5959_v5 = vsel %vm1043_vm3, %v5956_v51, %v5958_v20  ;;  %v11106_v51 = vld [vmem:[#allocation2 + $0x58] sm:$0xff]  }
 0x443   : > { %10151 = vmatmul.mubr.msk.bf16.gmra.mrb[24].mxu1 %vm581_vm2, %v5548_v33  ;;  %v5961_v33 = vsel %vm1043_vm3, %v5958_v20, %v5960_v49 }
 0x444   : > { %10154 = vmatprep.mubr.msk.bf16.mxu1 %vm581_vm2, %v5550_v31  ;;  %v11102_v31 = vld [vmem:[#allocation2 + $0x38] sm:$0xff]  }
 0x44b   : > { %10155 = vmatmul.mubr.msk.bf16.gmra.mrb[28].mxu1 %vm581_vm2, %v5552_v45  ;;  %v5964_v45 = vrot.slane %v11102_v31, 1 }
 0x44c   : > { %10158 = vmatprep.mubr.msk.bf16.mxu1 %vm581_vm2, %v5554_v12 }
 0x44d   : > { %v5965_v24 = vsel %vm1043_vm3, %v5962_v28, %v5964_v45  ;;  %v11109_v28 = vld [vmem:[#allocation2 + $0x70] sm:$0xff]  }
 0x44e   : > { %v5978_v31 = vrot.slane %v11109_v28, 1 }
 0x453   : > { %10159 = vmatmul.mubr.msk.bf16.gmra.mrb[32].mxu1 %vm581_vm2, %v5553_v55  ;;  %v11103_v55 = vld [vmem:[#allocation2 + $0x40] sm:$0xff]  }
 0x454   : > { %10164 = vmatprep.mubr.msk.bf16.mxu1 %vm581_vm2, %v5955_v60  ;;  %v5966_v12 = vrot.slane %v11103_v55, 1  ;;  %v5970_v60 = vrot.slane %v11105_v22, 1  ;;  %v11110_v55 = vld [vmem:[#allocation2 + $0x78] sm:$0xff]   ;;  %v11112_v22 = vld [vmem:[#allocation2 + $0x88] sm:$0xff]  }
 0x456   : > { %v5967_v32 = vsel %vm1043_vm3, %v5964_v45, %v5966_v12  ;;  %v5969_v23 = vsel %vm1043_vm3, %v5966_v12, %v5968_v47  ;;  %v5971_v20 = vsel %vm1043_vm3, %v5968_v47, %v5970_v60  ;;  %v11111_v12 = vld [vmem:[#allocation2 + $0x80] sm:$0xff]   ;;  %v11113_v47 = vld [vmem:[#allocation2 + $0x90] sm:$0xff]  }
 0x457   : > { %v5982_v26 = vrot.slane %v11111_v12, 1 }
 0x45b   : > { %10165 = vmatmul.mubr.msk.bf16.vlgmr.msra.gmra.mrb[0].mxu1 %vm581_vm2, %v5957_v18  ;;  %v5972_v18 = vrot.slane %v11106_v51, 1 }
 0x45c   : > { %10201 = vmatpush3.bf16.msra.mxu1 %v6611_v8  ;;  %10168 = vmatprep.mubr.msk.bf16.mxu1 %vm581_vm2, %v5959_v5  ;;  %v11107_v8 = vld [vmem:[#allocation2 + $0x60] sm:$0xff]  }
 0x45d   : > { %10980 = vmatprep.subr.msk.bf16.mxu1 %vm636_vm0, %v12968_v44  ;;  %v5974_v54 = vrot.slane %v11107_v8, 1  ;;  %v5973_v5 = vsel %vm1043_vm3, %v5970_v60, %v5972_v18  ;;  %v6258_v60 = vld [vmem:[#allocation2 + $0x8] sm:$0xe]  ;;  %v5986_v8 = vrot.slane %v11113_v47, 1 }
 0x45e   : > { %v9105_v51 = vcombine.low %v6258_v60, %v12553_v0 }
 0x45f   : > { %v5975_v49 = vsel %vm1043_vm3, %v5972_v18, %v5974_v54 }
 0x460   : > { %v6391_v18 = vshrl.u32 %v9105_v51, 16 }
 0x463   : > { %10169 = vmatmul.mubr.msk.bf16.gmra.mrb[4].mxu1 %vm581_vm2, %v5961_v33  ;;  %v5976_v33 = vrot.slane %v11108_v39, 1  ;;  %v6402_v39 = vshll.u32 %v12555_v13, 16 }
 0x464   : > { %10172 = vmatprep.mubr.msk.bf16.mxu1 %vm581_vm2, %v5963_v19 }
 0x465   : > { %v5977_v19 = vsel %vm1043_vm3, %v5974_v54, %v5976_v33  ;;  %v5979_v45 = vsel %vm1043_vm3, %v5976_v33, %v5978_v31  ;;  %v6394_v54 = vshll.u32 %v9105_v51, 16  ;;  %v6393_v33 = vrot.slane %v6391_v18, 1 }
 0x466   : > { %v6404_v0 = vrot.slane %v6402_v39, 2 }
 0x46b   : > { %10173 = vmatmul.mubr.msk.bf16.gmra.mrb[8].mxu1 %vm581_vm2, %v5965_v24  ;;  %v5980_v24 = vrot.slane %v11110_v55, 1  ;;  %v6408_v55 = vshrl.u32 %v12557_v61, 16 }
 0x46c   : > { %10176 = vmatprep.mubr.msk.bf16.mxu1 %vm581_vm2, %v5967_v32 }
 0x46d   : > { %v5981_v32 = vsel %vm1043_vm3, %v5978_v31, %v5980_v24  ;;  %v6396_v31 = vrot.slane %v6394_v54, 2  ;;  %v6435_v54 = vshrl.u32 %v12563_v58, 16 }
 0x46f   : > { %v6397_v12 = vor.u32 %v6396_v31, %v6393_v33  ;;  %v6437_v33 = vrot.slane %v6435_v54, 1 }
 0x473   : > { %10177 = vmatmul.mubr.msk.bf16.gmra.mrb[12].mxu1 %vm581_vm2, %v5969_v23  ;;  %v5983_v23 = vsel %vm1043_vm3, %v5980_v24, %v5982_v26 }
 0x474   : > { %10180 = vmatprep.mubr.msk.bf16.mxu1 %vm581_vm2, %v5971_v20  ;;  %v5984_v20 = vrot.slane %v11112_v22, 1 }
 0x476   : > { %v5987_v28 = vsel %vm1043_vm3, %v5984_v20, %v5986_v8 }
 0x47b   : > { %10181 = vmatmul.mubr.msk.bf16.gmra.mrb[16].mxu1 %vm581_vm2, %v5973_v5  ;;  %v6399_v5 = vshrl.u32 %v12555_v13, 16  ;;  %v6417_v13 = vshrl.u32 %v12559_v27, 16 }
 0x47c   : > { %10184 = vmatprep.mubr.msk.bf16.mxu1 %vm581_vm2, %v5975_v49  ;;  %v5985_v49 = vsel %vm1043_vm3, %v5982_v26, %v5984_v20  ;;  %v6420_v26 = vshll.u32 %v12559_v27, 16  ;;  %v6426_v20 = vshrl.u32 %v12561_v57, 16  ;;  %v6438_v27 = vshll.u32 %v12563_v58, 16 }
 0x47d   : > { %v6419_v60 = vrot.slane %v6417_v13, 1 }
 0x47e   : > { %v6428_v39 = vrot.slane %v6426_v20, 1  ;;  %v6440_v31 = vrot.slane %v6438_v27, 2 }
 0x483   : > { %10185 = vmatmul.mubr.msk.bf16.gmra.mrb[20].mxu1 %vm581_vm2, %v5977_v19  ;;  %v6401_v19 = vrot.slane %v6399_v5, 1  ;;  %v6924_v5 = vsel %vm636_vm0, %v12968_v44, 0  ;;  %v6444_v44 = vshrl.u32 %v12565_v6, 16 }
 0x484   : > { %10188 = vmatprep.mubr.msk.bf16.mxu1 %vm581_vm2, %v5979_v45  ;;  %v6411_v45 = vshll.u32 %v12557_v61, 16  ;;  %v6429_v61 = vshll.u32 %v12561_v57, 16 }
 0x485   : > { %v6405_v24 = vor.u32 %v6404_v0, %v6401_v19  ;;  %v6447_v19 = vshll.u32 %v12565_v6, 16  ;;  %v6441_v0 = vor.u32 %v6440_v31, %v6437_v33  ;;  %v6462_v6 = vshrl.u32 %v12575_v37, 16  ;;  %v13539_v31 = vld [vmem:[#allocation5_spill] sm:$0xff] }
 0x486   : > { %v6413_v22 = vrot.slane %v6411_v45, 2  ;;  %v6456_v45 = vshll.u32 %v12570_v30, 16 }
 0x487   : > { %v6406_v47 = vsel %vm1914_vm4, %v6397_v12, %v6405_v24  ;;  %v6449_v13 = vrot.slane %v6447_v19, 2 }
 0x48b   : > { %10189 = vmatmul.mubr.msk.bf16.gmra.mrb[24].mxu1 %vm581_vm2, %v5981_v32  ;;  %v6410_v32 = vrot.slane %v6408_v55, 1  ;;  %v6453_v55 = vshrl.u32 %v12570_v30, 16 }
 0x48c   : > { %10192 = vmatprep.mubr.msk.bf16.mxu1 %vm581_vm2, %v5983_v23  ;;  %v6422_v23 = vrot.slane %v6420_v26, 2 }
 0x48d   : > { %v6414_v51 = vor.u32 %v6413_v22, %v6410_v32  ;;  %v6455_v32 = vrot.slane %v6453_v55, 1  ;;  %v6458_v22 = vrot.slane %v6456_v45, 2 }
 0x48e   : > { %v6423_v18 = vor.u32 %v6422_v23, %v6419_v60  ;;  %v6465_v60 = vshll.u32 %v12575_v37, 16 }
 0x48f   : > { %v6459_v23 = vor.u32 %v6458_v22, %v6455_v32 }
 0x490   : > { %v6424_v57 = vsel %vm1914_vm4, %v6414_v51, %v6423_v18  ;;  %v6467_v54 = vrot.slane %v6465_v60, 2 }
 0x493   : > { %10193 = vmatmul.mubr.msk.bf16.gmra.mrb[28].mxu1 %vm581_vm2, %v5985_v49  ;;  %v6431_v49 = vrot.slane %v6429_v61, 2 }
 0x494   : > { %10196 = vmatprep.mubr.msk.bf16.mxu1 %vm581_vm2, %v5987_v28  ;;  %v13023_v28 = vld [vmem:[%s13451_s2 + $0x18] sm:$0xf] }
 0x495   : > { %v6432_v58 = vor.u32 %v6431_v49, %v6428_v39  ;;  %v13538_v49 = vld [vmem:[#allocation4_spill] sm:$0xff] }
 0x496   : > { %v6480_v37 = vshrl.u32 %v13538_v49, 16 }
 0x497   : > { %v6433_v12 = vsel %vm1914_vm4, %v6423_v18, %v6432_v58  ;;  %v6442_v26 = vsel %vm1914_vm4, %v6432_v58, %v6441_v0  ;;  %v6464_v18 = vrot.slane %v6462_v6, 1  ;;  %v6489_v58 = vshrl.u32 %v13539_v31, 16  ;;  %v13541_v6 = vld [vmem:[#allocation7_spill] sm:$0xff] }
 0x498   : > { %v6507_v60 = vshrl.u32 %v13541_v6, 16 }
 0x499   : > { %v6468_v39 = vor.u32 %v6467_v54, %v6464_v18 }
 0x49a   : > { %v6509_v18 = vrot.slane %v6507_v60, 1 }
 0x49b   : > { %10197 = vmatmul.mubr.msk.bf16.gmra.mrb[32].mxu1 %vm581_vm2, %v5986_v8  ;;  %v6415_v8 = vsel %vm1914_vm4, %v6405_v24, %v6414_v51  ;;  %v6446_v24 = vrot.slane %v6444_v44, 1  ;;  %v13537_v51 = vld [vmem:[#allocation3_spill] sm:$0xff]  ;;  %v6492_v44 = vshll.u32 %v13539_v31, 16  ;;  %v6469_v19 = vsel %vm1914_vm4, %v6459_v23, %v6468_v39 }
 0x49c   : > { %10202 = vmatprep.mubr.msk.bf16.mxu1 %vm581_vm2, %v6406_v47  ;;  %v6471_v30 = vshrl.u32 %v13537_v51, 16  ;;  %v6474_v20 = vshll.u32 %v13537_v51, 16 }
 0x49d   : > { %v6450_v47 = vor.u32 %v6449_v13, %v6446_v24  ;;  %v6494_v24 = vrot.slane %v6492_v44, 2 }
 0x49f   : > { %v6451_v61 = vsel %vm1914_vm4, %v6441_v0, %v6450_v47  ;;  %v6460_v27 = vsel %vm1914_vm4, %v6450_v47, %v6459_v23  ;;  %v6482_v0 = vrot.slane %v6480_v37, 1  ;;  %v6510_v23 = vshll.u32 %v13541_v6, 16  ;;  %v13543_v37 = vld [vmem:[#allocation10_spill] sm:$0xff] }
 0x4a1   : > { %v6512_v54 = vrot.slane %v6510_v23, 2 }
 0x4a3   : > { %10203 = vmatmul.mubr.msk.bf16.vlgmr.msra.gmra.mrb[0].mxu1 %vm581_vm2, %v6415_v8  ;;  %v6476_v8 = vrot.slane %v6474_v20, 2 }
 0x4a4   : > { %10239 = vmatpush3.bf16.msra.mxu1 %v6924_v5  ;;  %10206 = vmatprep.mubr.msk.bf16.mxu1 %vm581_vm2, %v6424_v57  ;;  %v6473_v5 = vrot.slane %v6471_v30, 1  ;;  %v6483_v57 = vshll.u32 %v13538_v49, 16  ;;  %v6513_v49 = vor.u32 %v6512_v54, %v6509_v18 }
 0x4a5   : > { %10981 = vmatprep.subr.msk.bf16.mxu1 %vm636_vm0, %v13023_v28 }
 0x4a6   : > { %v6477_v33 = vor.u32 %v6476_v8, %v6473_v5  ;;  %v6485_v55 = vrot.slane %v6483_v57, 2  ;;  %v13542_v5 = vld [vmem:[#allocation8_spill] sm:$0xff]  ;;  %v6525_v57 = vshrl.u32 %v13543_v37, 16 }
 0x4a7   : > { %v6516_v8 = vshrl.u32 %v13542_v5, 16 }
 0x4a8   : > { %v6478_v45 = vsel %vm1914_vm4, %v6468_v39, %v6477_v33  ;;  %v6486_v13 = vor.u32 %v6485_v55, %v6482_v0  ;;  %v6519_v39 = vshll.u32 %v13542_v5, 16  ;;  %v6527_v0 = vrot.slane %v6525_v57, 1  ;;  %v13546_v5 = vld [vmem:[#allocation14_spill] sm:$0xff] }
 0x4a9   : > { %v7363_v57 = vsel %vm636_vm0, %v13023_v28, 0  ;;  %v13552_v28 = vld [vmem:[#allocation16_spill] sm:$0xff] }
 0x4aa   : > { %v6487_v51 = vsel %vm1914_vm4, %v6477_v33, %v6486_v13  ;;  %v6528_v33 = vshll.u32 %v13543_v37, 16  ;;  %v6521_v44 = vrot.slane %v6519_v39, 2  ;;  %v13547_v37 = vld [vmem:[#allocation9_spill] sm:$0xff] }
 0x4ab   : > { %10207 = vmatmul.mubr.msk.bf16.gmra.mrb[4].mxu1 %vm581_vm2, %v6433_v12  ;;  %v6491_v12 = vrot.slane %v6489_v58, 1  ;;  %v6518_v58 = vrot.slane %v6516_v8, 1  ;;  %v6552_v8 = vshll.u32 %v13546_v5, 16 }
 0x4ac   : > { %10210 = vmatprep.mubr.msk.bf16.mxu1 %vm581_vm2, %v6442_v26  ;;  %v13540_v26 = vld [vmem:[#allocation6_spill] sm:$0xff]  ;;  %v6530_v55 = vrot.slane %v6528_v33, 2 }
 0x4ad   : > { %v6498_v32 = vshrl.u32 %v13540_v26, 16  ;;  %v6501_v22 = vshll.u32 %v13540_v26, 16  ;;  %v6495_v47 = vor.u32 %v6494_v24, %v6491_v12  ;;  %v13544_v12 = vld [vmem:[#allocation17_spill] sm:$0xff]  ;;  %v6554_v39 = vrot.slane %v6552_v8, 2  ;;  %v9200_v33 = vld [vmem:[%s13451_s2 + $0x1c] sm:$0xf] }
 0x4ae   : > { %v6534_v24 = vshrl.u32 %v13544_v12, 16  ;;  %v6531_v26 = vor.u32 %v6530_v55, %v6527_v0  ;;  %v13553_v0 = vld [vmem:[#allocation19_spill] sm:$0xff]  ;;  %v13554_v55 = vld [vmem:[#allocation20_spill] sm:$0xff] }
 0x4af   : > { %v6500_v30 = vrot.slane %v6498_v32, 1  ;;  %v6503_v20 = vrot.slane %v6501_v22, 2  ;;  %v13545_v32 = vld [vmem:[#allocation18_spill] sm:$0xff] }
 0x4b0   : > { %v6543_v22 = vshrl.u32 %v13545_v32, 16  ;;  %v6536_v60 = vrot.slane %v6534_v24, 1  ;;  %v13557_v24 = vld [vmem:[#allocation23_spill] sm:$0xff] }
 0x4b3   : > { %10211 = vmatmul.mubr.msk.bf16.gmra.mrb[8].mxu1 %vm581_vm2, %v6451_v61  ;;  %v6496_v61 = vsel %vm1914_vm4, %v6486_v13, %v6495_v47  ;;  %v6537_v13 = vshll.u32 %v13544_v12, 16  ;;  %v13556_v12 = vld [vmem:[#allocation22_spill] sm:$0xff] }
 0x4b4   : > { %10214 = vmatprep.mubr.msk.bf16.mxu1 %vm581_vm2, %v6460_v27  ;;  %v6504_v27 = vor.u32 %v6503_v20, %v6500_v30  ;;  %v6545_v30 = vrot.slane %v6543_v22, 1  ;;  %v13561_v22 = vld [vmem:[#allocation27_spill] sm:$0xff] }
 0x4b5   : > { %v6539_v23 = vrot.slane %v6537_v13, 2  ;;  %v13558_v13 = vld [vmem:[#allocation24_spill] sm:$0xff] }
 0x4b6   : > { %v6505_v31 = vsel %vm1914_vm4, %v6495_v47, %v6504_v27  ;;  %v6546_v47 = vshll.u32 %v13545_v32, 16  ;;  %v13560_v32 = vld [vmem:[#allocation26_spill] sm:$0xff] }
 0x4b8   : > { %v6548_v20 = vrot.slane %v6546_v47, 2  ;;  %v13562_v47 = vld [vmem:[#allocation28_spill] sm:$0xff] }
 0x4ba   : > { %v6549_v18 = vor.u32 %v6548_v20, %v6545_v30  ;;  %v13565_v30 = vld [vmem:[#allocation30_spill] sm:$0xff] }
 0x4bb   : > { %10215 = vmatmul.mubr.msk.bf16.gmra.mrb[12].mxu1 %vm581_vm2, %v6469_v19  ;;  %v6514_v19 = vsel %vm1914_vm4, %v6504_v27, %v6513_v49 }
 0x4bc   : > { %10218 = vmatprep.mubr.msk.bf16.mxu1 %vm581_vm2, %v6478_v45  ;;  %v6522_v45 = vor.u32 %v6521_v44, %v6518_v58  ;;  %v13549_v58 = vld [vmem:[#allocation12_spill] sm:$0xff]  ;;  %v13550_v44 = vld [vmem:[#allocation13_spill] sm:$0xff] }
 0x4be   : > { %v6523_v6 = vsel %vm1914_vm4, %v6513_v49, %v6522_v45  ;;  %v6555_v49 = vsel %vm1914_vm4, %v6549_v18, %v6554_v39 }
 0x4c3   : > { %10219 = vmatmul.mubr.msk.bf16.gmra.mrb[16].mxu1 %vm581_vm2, %v6487_v51  ;;  %v6532_v51 = vsel %vm1914_vm4, %v6522_v45, %v6531_v26  ;;  %v13555_v45 = vld [vmem:[#allocation21_spill] sm:$0xff] }
 0x4c4   : > { %10222 = vmatprep.mubr.msk.bf16.mxu1 %vm581_vm2, %v6496_v61  ;;  %v6540_v61 = vor.u32 %v6539_v23, %v6536_v60  ;;  %v7272_v60 = vrot.slane %v12681_v10, 2  ;;  %v13564_v23 = vld [vmem:[#allocation31_spill] sm:$0xff]  ;;  %v9220_v10 = vld [vmem:[%s13451_s2 + $0x20] sm:$0xf] }
 0x4c6   : > { %v6541_v54 = vsel %vm1914_vm4, %v6531_v26, %v6540_v61  ;;  %v6550_v27 = vsel %vm1914_vm4, %v6540_v61, %v6549_v18  ;;  %v13559_v26 = vld [vmem:[#allocation25_spill] sm:$0xff]  ;;  %v7274_v61 = vrot.slane %v12683_v21, 2  ;;  %v7276_v18 = vrot.slane %v12685_v34, 2 }
 0x4c7   : > { %v7278_v21 = vrot.slane %v12689_v11, 2  ;;  %v7280_v34 = vrot.slane %v12696_v41, 2  ;;  %v7286_v41 = vrot.slane %v12713_v2, 2 }
 0x4c8   : > { %v7277_v5 = vsel %vm2357_vm5, %v7274_v61, %v7276_v18 }
 0x4c9   : > { %v7279_v8 = vsel %vm2357_vm5, %v7276_v18, %v7278_v21  ;;  %v7281_v39 = vsel %vm2357_vm5, %v7278_v21, %v7280_v34  ;;  %v7749_v18 = vshll.u32 %v12861_v53, 16  ;;  %v9348_v21 = vld [vmem:[%s11233_s30 + $0x18] sm:$0xff]  }
 0x4cb   : > { %10223 = vmatmul.mubr.msk.bf16.gmra.mrb[20].mxu1 %vm581_vm2, %v6505_v31  ;;  %v13548_v31 = vld [vmem:[#allocation11_spill] sm:$0xff] }
 0x4cc   : > { %10226 = vmatprep.mubr.msk.bf16.mxu1 %vm581_vm2, %v6514_v19  ;;  %v13551_v19 = vld [vmem:[#allocation15_spill] sm:$0xff] }
 0x4d3   : > { %10227 = vmatmul.mubr.msk.bf16.gmra.mrb[24].mxu1 %vm581_vm2, %v6523_v6  ;;  %v13563_v6 = vld [vmem:[#allocation29_spill] sm:$0xff] }
 0x4d4   : > { %10230 = vmatprep.mubr.msk.bf16.mxu1 %vm581_vm2, %v6532_v51  ;;  %v7271_v51 = vrot.slane %v13564_v23, 2  ;;  %v13573_v23 = vld [vmem:[#allocation39_spill] sm:$0xff] }
 0x4d6   : > { %v7273_v20 = vsel %vm2357_vm5, %v7271_v51, %v7272_v60  ;;  %v13574_v51 = vld [vmem:[#allocation40_spill] sm:$0xff] }
 0x4db   : > { %10231 = vmatmul.mubr.msk.bf16.gmra.mrb[28].mxu1 %vm581_vm2, %v6541_v54  ;;  %v7809_v54 = vsel %vm636_vm0, %v9200_v33, 0 }
 0x4dc   : > { %10234 = vmatprep.mubr.msk.bf16.mxu1 %vm581_vm2, %v6550_v27  ;;  %v7275_v27 = vsel %vm2357_vm5, %v7272_v60, %v7274_v61  ;;  %v13572_v60 = vld [vmem:[#allocation38_spill] sm:$0xff]  ;;  %v7746_v61 = vshrl.u32 %v12861_v53, 16 }
 0x4dd   : > { %v13584_v53 = vld [vmem:[#allocation50_spill] sm:$0xff] }
 0x4e3   : > { %10235 = vmatmul.mubr.msk.bf16.gmra.mrb[32].mxu1 %vm581_vm2, %v6555_v49  ;;  %v7282_v49 = vrot.slane %v12701_v4, 2 }
 0x4e4   : > { %10240 = vmatprep.mubr.msk.bf16.mxu1 %vm581_vm2, %v13547_v37  ;;  %v7284_v37 = vrot.slane %v12711_v9, 2  ;;  %v7290_v9 = vrot.slane %v12730_v48, 2 }
 0x4e6   : > { %v7285_v11 = vsel %vm2357_vm5, %v7282_v49, %v7284_v37 }
 0x4eb   : > { %10241 = vmatmul.mubr.msk.bf16.vlgmr.msra.gmra.mrb[0].mxu1 %vm581_vm2, %v13548_v31  ;;  %v7287_v31 = vsel %vm2357_vm5, %v7284_v37, %v7286_v41  ;;  %v9285_v37 = vunpack.c.l.bf16 %v9348_v21 }
 0x4ec   : > { %10277 = vmatpush3.bf16.msra.mxu1 %v7363_v57  ;;  %10244 = vmatprep.mubr.msk.bf16.mxu1 %vm581_vm2, %v13549_v58  ;;  %v7283_v57 = vsel %vm2357_vm5, %v7280_v34, %v7282_v49  ;;  %v7292_v58 = vrot.slane %v12735_v1, 2  ;;  %v7298_v1 = vrot.slane %v12759_v56, 2 }
 0x4ed   : > { %10982 = vmatprep.subr.msk.bf16.mxu1 %vm636_vm0, %v9200_v33  ;;  %v7288_v33 = vrot.slane %v12716_v15, 2  ;;  %v7294_v15 = vrot.slane %v12744_v59, 2 }
 0x4ee   : > { %v7293_v2 = vsel %vm2357_vm5, %v7290_v9, %v7292_v58 }
 0x4ef   : > { %v7289_v4 = vsel %vm2357_vm5, %v7286_v41, %v7288_v33 }
 0x4f3   : > { %10245 = vmatmul.mubr.msk.bf16.gmra.mrb[4].mxu1 %vm581_vm2, %v13550_v44  ;;  %v7291_v44 = vsel %vm2357_vm5, %v7288_v33, %v7290_v9  ;;  %v8425_v9 = vrot.slane %v9285_v37, 3 }
 0x4f4   : > { %10248 = vmatprep.mubr.msk.bf16.mxu1 %vm581_vm2, %v13551_v19  ;;  %v7296_v19 = vrot.slane %v12752_v29, 2  ;;  %v7302_v29 = vrot.slane %v12772_v43, 2  ;;  %v8122_v43 = vsel %vm636_vm0, %v9220_v10, 0 }
 0x4f6   : > { %v7297_v48 = vsel %vm2357_vm5, %v7294_v15, %v7296_v19 }
 0x4fb   : > { %10249 = vmatmul.mubr.msk.bf16.gmra.mrb[8].mxu1 %vm581_vm2, %v13552_v28  ;;  %v7295_v28 = vsel %vm2357_vm5, %v7292_v58, %v7294_v15  ;;  %v9350_v58 = vld [vmem:[%s11233_s30 + $0x28] sm:$0xff]  }
 0x4fc   : > { %10252 = vmatprep.mubr.msk.bf16.mxu1 %vm581_vm2, %v13553_v0  ;;  %v7300_v0 = vrot.slane %v12767_v50, 2 }
 0x4fe   : > { %v7301_v59 = vsel %vm2357_vm5, %v7298_v1, %v7300_v0 }
 0x503   : > { %10253 = vmatmul.mubr.msk.bf16.gmra.mrb[12].mxu1 %vm581_vm2, %v13554_v55  ;;  %v7299_v55 = vsel %vm2357_vm5, %v7296_v19, %v7298_v1 }
 0x504   : > { %10256 = vmatprep.mubr.msk.bf16.mxu1 %vm581_vm2, %v13555_v45  ;;  %v7304_v45 = vrot.slane %v12776_v36, 2  ;;  %v13567_v36 = vld [vmem:[#allocation33_spill] sm:$0xff] }
 0x506   : > { %v7305_v56 = vsel %vm2357_vm5, %v7302_v29, %v7304_v45 }
 0x50b   : > { %10257 = vmatmul.mubr.msk.bf16.gmra.mrb[16].mxu1 %vm581_vm2, %v13556_v12  ;;  %v7303_v12 = vsel %vm2357_vm5, %v7300_v0, %v7302_v29  ;;  %v9286_v0 = vunpack.c.h.bf16 %v9348_v21 }
 0x50c   : > { %10260 = vmatprep.mubr.msk.bf16.mxu1 %vm581_vm2, %v13557_v24  ;;  %v11152_v24 = vld [vmem:[#allocation2 + $0xa0] ss:$0 sps:$4 sm:$0x11]  }
 0x50d   : > { %v7306_v50 = vrot.slane %v11152_v24, 2 }
 0x513   : > { %10261 = vmatmul.mubr.msk.bf16.gmra.mrb[20].mxu1 %vm581_vm2, %v13558_v13  ;;  %v7307_v13 = vsel %vm2357_vm5, %v7304_v45, %v7306_v50  ;;  %v9293_v45 = vunpack.c.l.bf16 %v9350_v58 }
 0x514   : > { %10264 = vmatprep.mubr.msk.bf16.mxu1 %vm581_vm2, %v13559_v26  ;;  %v13566_v26 = vld [vmem:[#allocation32_spill] sm:$0xff] }
 0x51b   : > { %10265 = vmatmul.mubr.msk.bf16.gmra.mrb[24].mxu1 %vm581_vm2, %v13560_v32  ;;  %v13568_v32 = vld [vmem:[#allocation34_spill] sm:$0xff] }
 0x51c   : > { %10268 = vmatprep.mubr.msk.bf16.mxu1 %vm581_vm2, %v13561_v22  ;;  %v13569_v22 = vld [vmem:[#allocation35_spill] sm:$0xff] }
 0x523   : > { %10269 = vmatmul.mubr.msk.bf16.gmra.mrb[28].mxu1 %vm581_vm2, %v13562_v47  ;;  %v13570_v47 = vld [vmem:[#allocation36_spill] sm:$0xff] }
 0x524   : > { %10272 = vmatprep.mubr.msk.bf16.mxu1 %vm581_vm2, %v13563_v6  ;;  %v13571_v6 = vld [vmem:[#allocation37_spill] sm:$0xff] }
 0x52b   : > { %10273 = vmatmul.mubr.msk.bf16.gmra.mrb[32].mxu1 %vm581_vm2, %v13565_v30  ;;  %v13575_v30 = vld [vmem:[#allocation41_spill] sm:$0xff] }
 0x52c   : > { %10278 = vmatprep.mubr.msk.bf16.mxu1 %vm581_vm2, %v7273_v20  ;;  %v13576_v20 = vld [vmem:[#allocation42_spill] sm:$0xff] }
 0x533   : > { %10279 = vmatmul.mubr.msk.bf16.vlgmr.msra.gmra.mrb[0].mxu1 %vm581_vm2, %v7275_v27  ;;  %v7751_v27 = vrot.slane %v7749_v18, 3 }
 0x534   : > { %10315 = vmatpush3.bf16.msra.mxu1 %v7809_v54  ;;  %10282 = vmatprep.mubr.msk.bf16.mxu1 %vm581_vm2, %v7277_v5  ;;  %v7748_v54 = vrot.slane %v7746_v61, 2  ;;  %v4714_v5 = vld [vmem:[%s11233_s30 + $0xc] sm:$0xf] }
 0x535   : > { %10983 = vmatprep.subr.msk.bf16.mxu1 %vm636_vm0, %v9220_v10  ;;  %v13585_v10 = vld [vmem:[#allocation51_spill] sm:$0xff]  ;;  %vm8565_vm0 = vcmask 59392   ;;  %v4751_v49 = vunpack.c.l.bf16 %v4714_v5 }
 0x537   : > { %v8419_v33 = vrot.slane %v4751_v49, 3 }
 0x53b   : > { %10283 = vmatmul.mubr.msk.bf16.gmra.mrb[4].mxu1 %vm581_vm2, %v7279_v8 }
 0x53c   : > { %10286 = vmatprep.mubr.msk.bf16.mxu1 %vm581_vm2, %v7281_v39 }
 0x543   : > { %10287 = vmatmul.mubr.msk.bf16.gmra.mrb[8].mxu1 %vm581_vm2, %v7283_v57 }
 0x544   : > { %10290 = vmatprep.mubr.msk.bf16.mxu1 %vm581_vm2, %v7285_v11 }
 0x54b   : > { %10291 = vmatmul.mubr.msk.bf16.gmra.mrb[12].mxu1 %vm581_vm2, %v7287_v31  ;;  %v9349_v31 = vld [vmem:[%s11233_s30 + $0x20] sm:$0xff]  }
 0x54c   : > { %10294 = vmatprep.mubr.msk.bf16.mxu1 %vm581_vm2, %v7289_v4  ;;  %v13286_v4 = vld [vmem:[%s13453_s4] ss:$0 sm:$0xff]  ;;  %v9289_v15 = vunpack.c.l.bf16 %v9349_v31  ;;  %v9290_v19 = vunpack.c.h.bf16 %v9349_v31 }
 0x553   : > { %10295 = vmatmul.mubr.msk.bf16.gmra.mrb[16].mxu1 %vm581_vm2, %v7291_v44 }
 0x554   : > { %10298 = vmatprep.mubr.msk.bf16.mxu1 %vm581_vm2, %v7293_v2 }
 0x55b   : > { %10299 = vmatmul.mubr.msk.bf16.gmra.mrb[20].mxu1 %vm581_vm2, %v7295_v28 }
 0x55c   : > { %10302 = vmatprep.mubr.msk.bf16.mxu1 %vm581_vm2, %v7297_v48 }
 0x563   : > { %10303 = vmatmul.mubr.msk.bf16.gmra.mrb[24].mxu1 %vm581_vm2, %v7299_v55 }
 0x564   : > { %10306 = vmatprep.mubr.msk.bf16.mxu1 %vm581_vm2, %v7301_v59 }
 0x56b   : > { %10307 = vmatmul.mubr.msk.bf16.gmra.mrb[28].mxu1 %vm581_vm2, %v7303_v12 }
 0x56c   : > { %10310 = vmatprep.mubr.msk.bf16.mxu1 %vm581_vm2, %v7305_v56 }
 0x573   : > { %10311 = vmatmul.mubr.msk.bf16.gmra.mrb[32].mxu1 %vm581_vm2, %v7307_v13 }
 0x574   : > { %10316 = vmatprep.mubr.msk.bf16.mxu1 %vm581_vm2, %v13566_v26 }
 0x57b   : > { %10317 = vmatmul.mubr.msk.bf16.vlgmr.msra.gmra.mrb[0].mxu1 %vm581_vm2, %v13567_v36  ;;  %v8431_v36 = vrot.slane %v9290_v19, 3 }
 0x57c   : > { %10353 = vmatpush3.bf16.msra.mxu1 %v8122_v43  ;;  %10320 = vmatprep.mubr.msk.bf16.mxu1 %vm581_vm2, %v13568_v32  ;;  %v8429_v43 = vrot.slane %v9289_v15, 3 }
 0x583   : > { %10321 = vmatmul.mubr.msk.bf16.gmra.mrb[4].mxu1 %vm581_vm2, %v13569_v22 }
 0x584   : > { %10324 = vmatprep.mubr.msk.bf16.mxu1 %vm581_vm2, %v13570_v47  ;;  %v8427_v47 = vrot.slane %v9286_v0, 3 }
 0x58b   : > { %10325 = vmatmul.mubr.msk.bf16.gmra.mrb[8].mxu1 %vm581_vm2, %v13571_v6  ;;  %v9351_v6 = vld [vmem:[%s11233_s30 + $0x30] sm:$0xff]  }
 0x58c   : > { %10328 = vmatprep.mubr.msk.bf16.mxu1 %vm581_vm2, %v13572_v60 }
 0x593   : > { %10329 = vmatmul.mubr.msk.bf16.gmra.mrb[12].mxu1 %vm581_vm2, %v13573_v23 }
 0x594   : > { %10332 = vmatprep.mubr.msk.bf16.mxu1 %vm581_vm2, %v13574_v51  ;;  %v8433_v51 = vrot.slane %v9293_v45, 3 }
 0x59b   : > { %10333 = vmatmul.mubr.msk.bf16.gmra.mrb[16].mxu1 %vm581_vm2, %v13575_v30 }
 0x59c   : > { %10336 = vmatprep.mubr.msk.bf16.mxu1 %vm581_vm2, %v13576_v20  ;;  %v9352_v20 = vld [vmem:[%s11233_s30 + $0x38] sm:$0xff]  }
 0x5a3   : > { %10337 = vmatmul.mubr.msk.bf16.gmra.mrb[20].mxu1 %vm581_vm2, %v12800_v16  ;;  %v7752_v16 = vor.u32 %v7751_v27, %v7748_v54  ;;  %v8432_v54 = vsel %vm3557_vm11, %v8429_v43, %v8431_v36  ;;  %v9297_v27 = vunpack.c.l.bf16 %v9351_v6 }
 0x5a4   : > { %10340 = vmatprep.mubr.msk.bf16.mxu1 %vm581_vm2, %v12803_v52 }
 0x5a5   : > { %v7753_v52 = vsel %vm3110_vm10, %v12827_v46, %v7752_v16  ;;  %v13581_v46 = vld [vmem:[#allocation47_spill] sm:$0xff]  ;;  %v9298_v16 = vunpack.c.h.bf16 %v9351_v6 }
 0x5a7   : > { %v8439_v5 = vrot.slane %v9298_v16, 3 }
 0x5ab   : > { %10341 = vmatmul.mubr.msk.bf16.gmra.mrb[24].mxu1 %vm581_vm2, %v12810_v40  ;;  %v13577_v40 = vld [vmem:[#allocation43_spill] sm:$0xff] }
 0x5ac   : > { %10344 = vmatprep.mubr.msk.bf16.mxu1 %vm581_vm2, %v12820_v14  ;;  %v13578_v14 = vld [vmem:[#allocation44_spill] sm:$0xff] }
 0x5b3   : > { %10345 = vmatmul.mubr.msk.bf16.gmra.mrb[28].mxu1 %vm581_vm2, %v12825_v42  ;;  %v13579_v42 = vld [vmem:[#allocation45_spill] sm:$0xff] }
 0x5b4   : > { %10348 = vmatprep.mubr.msk.bf16.mxu1 %vm581_vm2, %v12842_v3  ;;  %v13580_v3 = vld [vmem:[#allocation46_spill] sm:$0xff] }
 0x5bb   : > { %10349 = vmatmul.mubr.msk.bf16.gmra.mrb[32].mxu1 %vm581_vm2, %v7753_v52 }
 0x5bc   : > { %10354 = vmatprep.mubr.msk.bf16.mxu1 %vm581_vm2, %v12845_v63  ;;  %v13583_v63 = vld [vmem:[#allocation49_spill] sm:$0xff] }
 0x5c3   : > { %10355 = vmatmul.mubr.msk.bf16.vlgmr.msra.gmra.mrb[0].mxu1 %vm581_vm2, %v12836_v17  ;;  %v13582_v17 = vld [vmem:[#allocation48_spill] sm:$0xff] }
 0x5c4   : > { %10358 = vmatprep.mubr.msk.bf16.mxu1 %vm581_vm2, %v13577_v40 }
 0x5cb   : > { %10359 = vmatmul.mubr.msk.bf16.gmra.mrb[4].mxu1 %vm581_vm2, %v13578_v14  ;;  %v8428_v14 = vsel %vm3557_vm11, %v8425_v9, %v8427_v47 }
 0x5cc   : > { %10362 = vmatprep.mubr.msk.bf16.mxu1 %vm581_vm2, %v13579_v42  ;;  %v9294_v42 = vunpack.c.h.bf16 %v9350_v58 }
 0x5d3   : > { %10363 = vmatmul.mubr.msk.bf16.gmra.mrb[8].mxu1 %vm581_vm2, %v13580_v3 }
 0x5d4   : > { %10366 = vmatprep.mubr.msk.bf16.mxu1 %vm581_vm2, %v13581_v46 }
 0x5db   : > { %10367 = vmatmul.mubr.msk.bf16.gmra.mrb[12].mxu1 %vm581_vm2, %v12881_v35  ;;  %v13586_v35 = vld [vmem:[#allocation52_spill] sm:$0xff] }
 0x5dc   : > { %10370 = vmatprep.mubr.msk.bf16.mxu1 %vm581_vm2, %v12884_v25  ;;  %v13587_v25 = vld [vmem:[#allocation53_spill] sm:$0xff] }
 0x5e3   : > { %10371 = vmatmul.mubr.msk.bf16.gmra.mrb[16].mxu1 %vm581_vm2, %v12887_v7  ;;  %v11174_v7 = vmov 0.0  }
 0x5e4   : > { %10374 = vmatprep.mubr.msk.bf16.mxu1 %vm581_vm2, %v13582_v17  ;;  %8563 = vst.msk [vmem:[%s13266_s13] sm:$0xff] %vm581_vm2, %v11174_v7  ;;  %8564 = vst.msk [vmem:[%s13266_s13 + $0x8] sm:$0xff] %vm581_vm2, %v11174_v7  ;;  %v8434_v17 = vsel %vm3557_vm11, %v8431_v36, %v8433_v51 }
 0x5e5   : > { %8566 = vst.msk [vmem:[%s13266_s13 + $0x10] sm:$0x7] %vm8565_vm0, %v11174_v7  ;;  %8642 = vst.msk [vmem:[%s13266_s13 + $0x141] sm:$0x7] %vm8565_vm0, %v11174_v7 }
 0x5e6   : > { %8640 = vst.msk [vmem:[%s13266_s13 + $0x131] sm:$0xff] %vm581_vm2, %v11174_v7  ;;  %8641 = vst.msk [vmem:[%s13266_s13 + $0x139] sm:$0xff] %vm581_vm2, %v11174_v7 }
 0x5eb   : > { %10375 = vmatmul.mubr.msk.bf16.gmra.mrb[20].mxu1 %vm581_vm2, %v13583_v63  ;;  %v9301_v63 = vunpack.c.l.bf16 %v9352_v20 }
 0x5ec   : > { %10378 = vmatprep.mubr.msk.bf16.mxu1 %vm581_vm2, %v13584_v53 }
 0x5f3   : > { %10379 = vmatmul.mubr.msk.bf16.gmra.mrb[24].mxu1 %vm581_vm2, %v13585_v10 }
 0x5f4   : > { %10382 = vmatprep.mubr.msk.bf16.mxu1 %vm581_vm2, %v13586_v35 }
 0x5fb   : > { %10383 = vmatmul.mubr.msk.bf16.gmra.mrb[28].mxu1 %vm581_vm2, %v13587_v25  ;;  %v8430_v25 = vsel %vm3557_vm11, %v8427_v47, %v8429_v43 }
 0x5fc   : > { %10386 = vmatprep.mubr.msk.bf16.mxu1 %vm581_vm2, %v12917_v38  ;;  %v9347_v38 = vld [vmem:[%s11233_s30 + $0x10] sm:$0xff]  }
 0x5fd   : > { %v9281_v34 = vunpack.c.l.bf16 %v9347_v38  ;;  %v9282_v8 = vunpack.c.h.bf16 %v9347_v38 }
 0x5ff   : > { %v8421_v57 = vrot.slane %v9281_v34, 3  ;;  %v8423_v11 = vrot.slane %v9282_v8, 3  ;;  %v8435_v8 = vrot.slane %v9294_v42, 3 }
 0x601   : > { %v8424_v2 = vsel %vm3557_vm11, %v8421_v57, %v8423_v11  ;;  %v8426_v29 = vsel %vm3557_vm11, %v8423_v11, %v8425_v9  ;;  %v8422_v50 = vsel %vm3557_vm11, %v8419_v33, %v8421_v57  ;;  %v8441_v57 = vrot.slane %v9301_v63, 3 }
 0x602   : > { %v8436_v19 = vsel %vm3557_vm11, %v8433_v51, %v8435_v8 }
 0x603   : > { %10387 = vmatmul.mubr.msk.bf16.gmra.mrb[32].mxu1 %vm581_vm2, %v12920_v62  ;;  %v4713_v62 = vld [vmem:[%s11233_s30 + $0x8] sm:$0xe]  ;;  %v8442_v0 = vsel %vm3557_vm11, %v8439_v5, %v8441_v57 }
 0x604   : > { %v4750_v39 = vunpack.c.l.bf16 %v4713_v62  ;;  %v8437_v62 = vrot.slane %v9297_v27, 3 }
 0x606   : > { %v8418_v41 = vrot.slane %v4750_v39, 3  ;;  %v9353_v39 = vld [vmem:[%s11233_s30 + $0x40] sm:$0xff]   ;;  %v8440_v9 = vsel %vm3557_vm11, %v8437_v62, %v8439_v5 }
 0x607   : > { %v9305_v58 = vunpack.c.l.bf16 %v9353_v39 }
 0x608   : > { %v8420_v1 = vsel %vm3557_vm11, %v8418_v41, %v8419_v33  ;;  %v9354_v41 = vld [vmem:[%s11233_s30 + $0x48] sm:$0xff]  }
 0x696   : > { %v10356_v44 = vpop.f32.mrb[0].mxu1 }
 0x697   : > { %v8346_v28 = vadd.f32 %v10356_v44, %v13286_v4  ;;  %v8158_v48 = vpop.f32.mrb[1].mxu1  ;;  %v9306_v44 = vunpack.c.h.bf16 %v9353_v39 }
 0x698   : > { %v8344_v55 = vadd.f32 %v13286_v4, %v8158_v48  ;;  %v10357_v59 = vpop.f32.mrb[2].mxu1 }
 0x699   : > { %v8529_v12 = vadd.f32 %v8424_v2, %v8346_v28  ;;  %v8347_v24 = vadd.f32 %v10357_v59, %v13286_v4  ;;  %v8161_v56 = vpop.f32.mrb[3].mxu1  ;;  %v9302_v28 = vunpack.c.h.bf16 %v9352_v20 }
 0x69a   : > { %v8527_v13 = vadd.f32 %v8420_v1, %v8344_v55  ;;  %v8345_v26 = vadd.f32 %v13286_v4, %v8161_v56  ;;  %v9309_v55 = vunpack.c.l.bf16 %v9354_v41 }
 0x69b   : > { %v8569_v32 = vmax.f32 %v8529_v12, 0.0  ;;  %v8530_v22 = vadd.f32 %v8426_v29, %v8347_v24  ;;  %v8438_v12 = vsel %vm3557_vm11, %v8435_v8, %v8437_v62  ;;  %v8443_v36 = vrot.slane %v9302_v28, 3 }
 0x69c   : > { %v8567_v60 = vmax.f32 %v8527_v13, 0.0  ;;  %v8528_v23 = vadd.f32 %v8422_v50, %v8345_v26  ;;  %v8445_v50 = vrot.slane %v9305_v58, 3  ;;  %v8447_v13 = vrot.slane %v9306_v44, 3 }
 0x69d   : > { %8605 = vst.msk [vmem:[%s13266_s13 + $0x23] sm:$0xff] %vm581_vm2, %v8569_v32  ;;  %v8570_v30 = vmax.f32 %v8530_v22, 0.0  ;;  %v9355_v32 = vld [vmem:[%s11233_s30 + $0x50] sm:$0xff]   ;;  %v8449_v6 = vrot.slane %v9309_v55, 3  ;;  %v8444_v16 = vsel %vm3557_vm11, %v8441_v57, %v8443_v36 }
 0x69e   : > { %8603 = vst.msk [vmem:[%s13266_s13 + $0x13] sm:$0xff] %vm581_vm2, %v8567_v60  ;;  %v8568_v61 = vmax.f32 %v8528_v23, 0.0  ;;  %v10360_v18 = vpop.f32.mrb[4].mxu1  ;;  %v9356_v23 = vld [vmem:[%s11233_s30 + $0x58] sm:$0xff]   ;;  %v8448_v20 = vsel %vm3557_vm11, %v8445_v50, %v8447_v13 }
 0x69f   : > { %8606 = vst.msk [vmem:[%s13266_s13 + $0x2b] sm:$0xff] %vm581_vm2, %v8570_v30  ;;  %v8350_v52 = vadd.f32 %v10360_v18, %v13286_v4  ;;  %v8174_v40 = vpop.f32.mrb[5].mxu1  ;;  %v9314_v18 = vunpack.c.h.bf16 %v9355_v32  ;;  %v8450_v42 = vsel %vm3557_vm11, %v8447_v13, %v8449_v6 }
 0x6a0   : > { %8604 = vst.msk [vmem:[%s13266_s13 + $0x1b] sm:$0xff] %vm581_vm2, %v8568_v61  ;;  %v8348_v3 = vadd.f32 %v13286_v4, %v8174_v40  ;;  %v10361_v46 = vpop.f32.mrb[6].mxu1  ;;  %v9313_v61 = vunpack.c.l.bf16 %v9355_v32 }
 0x6a1   : > { %v8533_v53 = vadd.f32 %v8432_v54, %v8350_v52  ;;  %v8351_v10 = vadd.f32 %v10361_v46, %v13286_v4  ;;  %v8177_v35 = vpop.f32.mrb[7].mxu1  ;;  %v9310_v52 = vunpack.c.h.bf16 %v9354_v41 }
 0x6a2   : > { %v8531_v7 = vadd.f32 %v8428_v14, %v8348_v3  ;;  %v8349_v38 = vadd.f32 %v13286_v4, %v8177_v35  ;;  %v9317_v3 = vunpack.c.l.bf16 %v9356_v23 }
 0x6a3   : > { %v8573_v21 = vmax.f32 %v8533_v53, 0.0  ;;  %v8534_v34 = vadd.f32 %v8434_v17, %v8351_v10  ;;  %v8446_v53 = vsel %vm3557_vm11, %v8443_v36, %v8445_v50  ;;  %v8451_v5 = vrot.slane %v9310_v52, 3 }
 0x6a4   : > { %v8571_v49 = vmax.f32 %v8531_v7, 0.0  ;;  %v8532_v37 = vadd.f32 %v8430_v25, %v8349_v38  ;;  %v8453_v25 = vrot.slane %v9313_v61, 3  ;;  %v8455_v7 = vrot.slane %v9314_v18, 3 }
 0x6a5   : > { %8609 = vst.msk [vmem:[%s13266_s13 + $0x43] sm:$0xff] %vm581_vm2, %v8573_v21  ;;  %v8574_v11 = vmax.f32 %v8534_v34, 0.0  ;;  %v9357_v21 = vld [vmem:[%s11233_s30 + $0x60] sm:$0xff]   ;;  %v8457_v39 = vrot.slane %v9317_v3, 3  ;;  %v8452_v44 = vsel %vm3557_vm11, %v8449_v6, %v8451_v5 }
 0x6a6   : > { %8607 = vst.msk [vmem:[%s13266_s13 + $0x33] sm:$0xff] %vm581_vm2, %v8571_v49  ;;  %v8572_v33 = vmax.f32 %v8532_v37, 0.0  ;;  %v10364_v31 = vpop.f32.mrb[8].mxu1  ;;  %v9358_v37 = vld [vmem:[%s11233_s30 + $0x68] sm:$0xff]   ;;  %v8456_v41 = vsel %vm3557_vm11, %v8453_v25, %v8455_v7 }
 0x6a7   : > { %8610 = vst.msk [vmem:[%s13266_s13 + $0x4b] sm:$0xff] %vm581_vm2, %v8574_v11  ;;  %v8354_v2 = vadd.f32 %v10364_v31, %v13286_v4  ;;  %v8190_v15 = vpop.f32.mrb[9].mxu1  ;;  %v9322_v31 = vunpack.c.h.bf16 %v9357_v21  ;;  %v8458_v28 = vsel %vm3557_vm11, %v8455_v7, %v8457_v39 }
 0x6a8   : > { %8608 = vst.msk [vmem:[%s13266_s13 + $0x3b] sm:$0xff] %vm581_vm2, %v8572_v33  ;;  %v8352_v48 = vadd.f32 %v13286_v4, %v8190_v15  ;;  %v10365_v1 = vpop.f32.mrb[10].mxu1  ;;  %v9321_v33 = vunpack.c.l.bf16 %v9357_v21 }
 0x6a9   : > { %v8537_v59 = vadd.f32 %v8440_v9, %v8354_v2  ;;  %v8355_v29 = vadd.f32 %v10365_v1, %v13286_v4  ;;  %v8193_v45 = vpop.f32.mrb[11].mxu1  ;;  %v9318_v2 = vunpack.c.h.bf16 %v9356_v23 }
 0x6aa   : > { %v8535_v24 = vadd.f32 %v8436_v19, %v8352_v48  ;;  %v8353_v56 = vadd.f32 %v13286_v4, %v8193_v45  ;;  %v9325_v48 = vunpack.c.l.bf16 %v9358_v37 }
 0x6ab   : > { %v8577_v26 = vmax.f32 %v8537_v59, 0.0  ;;  %v8538_v43 = vadd.f32 %v8442_v0, %v8355_v29  ;;  %v8454_v59 = vsel %vm3557_vm11, %v8451_v5, %v8453_v25  ;;  %v8459_v13 = vrot.slane %v9318_v2, 3 }
 0x6ac   : > { %v8575_v22 = vmax.f32 %v8535_v24, 0.0  ;;  %v8536_v47 = vadd.f32 %v8438_v12, %v8353_v56  ;;  %v8461_v12 = vrot.slane %v9321_v33, 3  ;;  %v8463_v24 = vrot.slane %v9322_v31, 3 }
 0x6ad   : > { %8613 = vst.msk [vmem:[%s13266_s13 + $0x63] sm:$0xff] %vm581_vm2, %v8577_v26  ;;  %v8578_v60 = vmax.f32 %v8538_v43, 0.0  ;;  %v9359_v26 = vld [vmem:[%s11233_s30 + $0x70] sm:$0xff]   ;;  %v8465_v32 = vrot.slane %v9325_v48, 3  ;;  %v8460_v18 = vsel %vm3557_vm11, %v8457_v39, %v8459_v13 }
 0x6ae   : > { %8611 = vst.msk [vmem:[%s13266_s13 + $0x53] sm:$0xff] %vm581_vm2, %v8575_v22  ;;  %v8576_v51 = vmax.f32 %v8536_v47, 0.0  ;;  %v10368_v30 = vpop.f32.mrb[12].mxu1  ;;  %v9360_v47 = vld [vmem:[%s11233_s30 + $0x78] sm:$0xff]   ;;  %v8464_v23 = vsel %vm3557_vm11, %v8461_v12, %v8463_v24 }
 0x6af   : > { %8614 = vst.msk [vmem:[%s13266_s13 + $0x6b] sm:$0xff] %vm581_vm2, %v8578_v60  ;;  %v8358_v54 = vadd.f32 %v10368_v30, %v13286_v4  ;;  %v8206_v27 = vpop.f32.mrb[13].mxu1  ;;  %v9330_v30 = vunpack.c.h.bf16 %v9359_v26  ;;  %v8466_v52 = vsel %vm3557_vm11, %v8463_v24, %v8465_v32 }
 0x6b0   : > { %8612 = vst.msk [vmem:[%s13266_s13 + $0x5b] sm:$0xff] %vm581_vm2, %v8576_v51  ;;  %v8356_v40 = vadd.f32 %v13286_v4, %v8206_v27  ;;  %v10369_v14 = vpop.f32.mrb[14].mxu1  ;;  %v9329_v51 = vunpack.c.l.bf16 %v9359_v26 }
 0x6b1   : > { %v8541_v46 = vadd.f32 %v8448_v20, %v8358_v54  ;;  %v8359_v17 = vadd.f32 %v10369_v14, %v13286_v4  ;;  %v8209_v63 = vpop.f32.mrb[15].mxu1  ;;  %v9326_v54 = vunpack.c.h.bf16 %v9358_v37 }
 0x6b2   : > { %v8539_v10 = vadd.f32 %v8444_v16, %v8356_v40  ;;  %v8357_v35 = vadd.f32 %v13286_v4, %v8209_v63  ;;  %v9333_v40 = vunpack.c.l.bf16 %v9360_v47 }
 0x6b3   : > { %v8581_v38 = vmax.f32 %v8541_v46, 0.0  ;;  %v8542_v62 = vadd.f32 %v8450_v42, %v8359_v17  ;;  %v8462_v46 = vsel %vm3557_vm11, %v8459_v13, %v8461_v12  ;;  %v8467_v7 = vrot.slane %v9326_v54, 3 }
 0x6b4   : > { %v8579_v34 = vmax.f32 %v8539_v10, 0.0  ;;  %v8540_v8 = vadd.f32 %v8446_v53, %v8357_v35  ;;  %v8469_v53 = vrot.slane %v9329_v51, 3  ;;  %v8471_v10 = vrot.slane %v9330_v30, 3 }
 0x6b5   : > { %8617 = vst.msk [vmem:[%s13266_s13 + $0x83] sm:$0xff] %vm581_vm2, %v8581_v38  ;;  %v8582_v49 = vmax.f32 %v8542_v62, 0.0  ;;  %v9361_v38 = vld [vmem:[%s11233_s30 + $0x80] sm:$0xff]   ;;  %v8473_v21 = vrot.slane %v9333_v40, 3  ;;  %v8468_v31 = vsel %vm3557_vm11, %v8465_v32, %v8467_v7 }
 0x6b6   : > { %8615 = vst.msk [vmem:[%s13266_s13 + $0x73] sm:$0xff] %vm581_vm2, %v8579_v34  ;;  %v8580_v57 = vmax.f32 %v8540_v8, 0.0  ;;  %v10372_v11 = vpop.f32.mrb[16].mxu1  ;;  %v9362_v8 = vld [vmem:[%s11233_s30 + $0x88] sm:$0xff]   ;;  %v8472_v37 = vsel %vm3557_vm11, %v8469_v53, %v8471_v10 }
 0x6b7   : > { %8618 = vst.msk [vmem:[%s13266_s13 + $0x8b] sm:$0xff] %vm581_vm2, %v8582_v49  ;;  %v8362_v9 = vadd.f32 %v10372_v11, %v13286_v4  ;;  %v8222_v58 = vpop.f32.mrb[17].mxu1  ;;  %v9338_v11 = vunpack.c.h.bf16 %v9361_v38  ;;  %v8474_v2 = vsel %vm3557_vm11, %v8471_v10, %v8473_v21 }
 0x6b8   : > { %8616 = vst.msk [vmem:[%s13266_s13 + $0x7b] sm:$0xff] %vm581_vm2, %v8580_v57  ;;  %v8360_v15 = vadd.f32 %v13286_v4, %v8222_v58  ;;  %v10373_v19 = vpop.f32.mrb[18].mxu1  ;;  %v9337_v57 = vunpack.c.l.bf16 %v9361_v38 }
 0x6b9   : > { %v8545_v1 = vadd.f32 %v8456_v41, %v8362_v9  ;;  %v8363_v0 = vadd.f32 %v10373_v19, %v13286_v4  ;;  %v8225_v55 = vpop.f32.mrb[19].mxu1  ;;  %v9334_v9 = vunpack.c.h.bf16 %v9360_v47 }
 0x6ba   : > { %v8543_v29 = vadd.f32 %v8452_v44, %v8360_v15  ;;  %v8361_v45 = vadd.f32 %v13286_v4, %v8225_v55  ;;  %v9341_v15 = vunpack.c.l.bf16 %v9362_v8 }
 0x6bb   : > { %v8585_v56 = vmax.f32 %v8545_v1, 0.0  ;;  %v8546_v50 = vadd.f32 %v8458_v28, %v8363_v0  ;;  %v8470_v1 = vsel %vm3557_vm11, %v8467_v7, %v8469_v53  ;;  %v8475_v24 = vrot.slane %v9334_v9, 3 }
 0x6bc   : > { %v8583_v43 = vmax.f32 %v8543_v29, 0.0  ;;  %v8544_v36 = vadd.f32 %v8454_v59, %v8361_v45  ;;  %v8477_v59 = vrot.slane %v9337_v57, 3  ;;  %v8479_v29 = vrot.slane %v9338_v11, 3 }
 0x6bd   : > { %8621 = vst.msk [vmem:[%s13266_s13 + $0xa3] sm:$0xff] %vm581_vm2, %v8585_v56  ;;  %v8586_v22 = vmax.f32 %v8546_v50, 0.0  ;;  %v9363_v56 = vld [vmem:[%s11233_s30 + $0x90] sm:$0xff]   ;;  %v8481_v26 = vrot.slane %v9341_v15, 3  ;;  %v8476_v30 = vsel %vm3557_vm11, %v8473_v21, %v8475_v24 }
 0x6be   : > { %8619 = vst.msk [vmem:[%s13266_s13 + $0x93] sm:$0xff] %vm581_vm2, %v8583_v43  ;;  %v8584_v6 = vmax.f32 %v8544_v36, 0.0  ;;  %v10376_v60 = vpop.f32.mrb[20].mxu1  ;;  %v4749_v36 = vld [vmem:[%s11233_s30 + $0x98] sm:$0x1]  ;;  %v8480_v47 = vsel %vm3557_vm11, %v8477_v59, %v8479_v29 }
 0x6bf   : > { %8622 = vst.msk [vmem:[%s13266_s13 + $0xab] sm:$0xff] %vm581_vm2, %v8586_v22  ;;  %v8366_v20 = vadd.f32 %v10376_v60, %v13286_v4  ;;  %v8238_v61 = vpop.f32.mrb[21].mxu1  ;;  %v9346_v60 = vunpack.c.h.bf16 %v9363_v56  ;;  %v8482_v54 = vsel %vm3557_vm11, %v8479_v29, %v8481_v26 }
 0x6c0   : > { %8620 = vst.msk [vmem:[%s13266_s13 + $0x9b] sm:$0xff] %vm581_vm2, %v8584_v6  ;;  %v8364_v27 = vadd.f32 %v13286_v4, %v8238_v61  ;;  %v10377_v16 = vpop.f32.mrb[22].mxu1  ;;  %v9345_v6 = vunpack.c.l.bf16 %v9363_v56 }
 0x6c1   : > { %v8549_v14 = vadd.f32 %v8464_v23, %v8366_v20  ;;  %v8367_v42 = vadd.f32 %v10377_v16, %v13286_v4  ;;  %v8241_v3 = vpop.f32.mrb[23].mxu1  ;;  %v9342_v20 = vunpack.c.h.bf16 %v9362_v8 }
 0x6c2   : > { %v8547_v17 = vadd.f32 %v8460_v18, %v8364_v27  ;;  %v8365_v63 = vadd.f32 %v13286_v4, %v8241_v3  ;;  %v4786_v27 = vunpack.c.l.bf16 %v4749_v36 }
 0x6c3   : > { %v8589_v35 = vmax.f32 %v8549_v14, 0.0  ;;  %v8550_v25 = vadd.f32 %v8466_v52, %v8367_v42  ;;  %v8478_v14 = vsel %vm3557_vm11, %v8475_v24, %v8477_v59  ;;  %v8483_v10 = vrot.slane %v9342_v20, 3 }
 0x6c4   : > { %v8587_v62 = vmax.f32 %v8547_v17, 0.0  ;;  %v8548_v5 = vadd.f32 %v8462_v46, %v8365_v63  ;;  %v8485_v46 = vrot.slane %v9345_v6, 3  ;;  %v8487_v17 = vrot.slane %v9346_v60, 3 }
 0x6c5   : > { %8625 = vst.msk [vmem:[%s13266_s13 + $0xc3] sm:$0xff] %vm581_vm2, %v8589_v35  ;;  %v8590_v34 = vmax.f32 %v8550_v25, 0.0  ;;  %v8489_v7 = vrot.slane %v4786_v27, 3 }
 0x6c6   : > { %8623 = vst.msk [vmem:[%s13266_s13 + $0xb3] sm:$0xff] %vm581_vm2, %v8587_v62  ;;  %v8588_v39 = vmax.f32 %v8548_v5, 0.0  ;;  %v10380_v49 = vpop.f32.mrb[24].mxu1  ;;  %v8488_v21 = vsel %vm3557_vm11, %v8485_v46, %v8487_v17 }
 0x6c7   : > { %8626 = vst.msk [vmem:[%s13266_s13 + $0xcb] sm:$0xff] %vm581_vm2, %v8590_v34  ;;  %v8370_v41 = vadd.f32 %v10380_v49, %v13286_v4  ;;  %v8254_v33 = vpop.f32.mrb[25].mxu1  ;;  %v8490_v57 = vsel %vm3557_vm11, %v8487_v17, %v8489_v7 }
 0x6c8   : > { %8624 = vst.msk [vmem:[%s13266_s13 + $0xbb] sm:$0xff] %vm581_vm2, %v8588_v39  ;;  %v8368_v58 = vadd.f32 %v13286_v4, %v8254_v33  ;;  %v10381_v44 = vpop.f32.mrb[26].mxu1  ;;  %v8484_v39 = vsel %vm3557_vm11, %v8481_v26, %v8483_v10 }
 0x6c9   : > { %v8553_v19 = vadd.f32 %v8472_v37, %v8370_v41  ;;  %v8371_v28 = vadd.f32 %v10381_v44, %v13286_v4  ;;  %v8257_v48 = vpop.f32.mrb[27].mxu1 }
 0x6ca   : > { %v8551_v0 = vadd.f32 %v8468_v31, %v8368_v58  ;;  %v8369_v55 = vadd.f32 %v13286_v4, %v8257_v48  ;;  %v8486_v31 = vsel %vm3557_vm11, %v8483_v10, %v8485_v46 }
 0x6cb   : > { %v8593_v45 = vmax.f32 %v8553_v19, 0.0  ;;  %v8554_v12 = vadd.f32 %v8474_v2, %v8371_v28 }
 0x6cc   : > { %v8591_v50 = vmax.f32 %v8551_v0, 0.0  ;;  %v8552_v13 = vadd.f32 %v8470_v1, %v8369_v55 }
 0x6cd   : > { %8629 = vst.msk [vmem:[%s13266_s13 + $0xe3] sm:$0xff] %vm581_vm2, %v8593_v45  ;;  %v8594_v43 = vmax.f32 %v8554_v12, 0.0 }
 0x6ce   : > { %8627 = vst.msk [vmem:[%s13266_s13 + $0xd3] sm:$0xff] %vm581_vm2, %v8591_v50  ;;  %v8592_v32 = vmax.f32 %v8552_v13, 0.0  ;;  %v10384_v22 = vpop.f32.mrb[28].mxu1 }
 0x6cf   : > { %8630 = vst.msk [vmem:[%s13266_s13 + $0xeb] sm:$0xff] %vm581_vm2, %v8594_v43  ;;  %v8374_v23 = vadd.f32 %v10384_v22, %v13286_v4  ;;  %v8270_v51 = vpop.f32.mrb[29].mxu1 }
 0x6d0   : > { %8628 = vst.msk [vmem:[%s13266_s13 + $0xdb] sm:$0xff] %vm581_vm2, %v8592_v32  ;;  %v8372_v61 = vadd.f32 %v13286_v4, %v8270_v51  ;;  %v10385_v18 = vpop.f32.mrb[30].mxu1 }
 0x6d1   : > { %v8557_v16 = vadd.f32 %v8480_v47, %v8374_v23  ;;  %v8375_v52 = vadd.f32 %v10385_v18, %v13286_v4  ;;  %v8273_v40 = vpop.f32.mrb[31].mxu1 }
 0x6d2   : > { %v8555_v42 = vadd.f32 %v8476_v30, %v8372_v61  ;;  %v8373_v3 = vadd.f32 %v13286_v4, %v8273_v40 }
 0x6d3   : > { %v8597_v63 = vmax.f32 %v8557_v16, 0.0  ;;  %v8558_v53 = vadd.f32 %v8482_v54, %v8375_v52 }
 0x6d4   : > { %v8595_v35 = vmax.f32 %v8555_v42, 0.0  ;;  %v8556_v25 = vadd.f32 %v8478_v14, %v8373_v3 }
 0x6d5   : > { %8633 = vst.msk [vmem:[%s13266_s13 + $0x103] sm:$0xff] %vm581_vm2, %v8597_v63  ;;  %v8598_v38 = vmax.f32 %v8558_v53, 0.0 }
 0x6d6   : > { %8631 = vst.msk [vmem:[%s13266_s13 + $0xf3] sm:$0xff] %vm581_vm2, %v8595_v35  ;;  %v8596_v62 = vmax.f32 %v8556_v25, 0.0  ;;  %v10388_v5 = vpop.f32.mrb[32].mxu1 }
 0x6d7   : > { %8634 = vst.msk [vmem:[%s13266_s13 + $0x10b] sm:$0xff] %vm581_vm2, %v8598_v38  ;;  %v8378_v34 = vadd.f32 %v10388_v5, %v13286_v4  ;;  %v8286_v8 = vpop.f32.mrb[33].mxu1 }
 0x6d8   : > { %8632 = vst.msk [vmem:[%s13266_s13 + $0xfb] sm:$0xff] %vm581_vm2, %v8596_v62  ;;  %v8376_v49 = vadd.f32 %v13286_v4, %v8286_v8  ;;  %v10389_v37 = vpop.f32.mrb[34].mxu1 }
 0x6d9   : > { %v8561_v11 = vadd.f32 %v8488_v21, %v8378_v34  ;;  %v8379_v41 = vadd.f32 %v10389_v37, %v13286_v4  ;;  %v8289_v33 = vpop.f32.mrb[35].mxu1 }
 0x6da   : > { %v8559_v9 = vadd.f32 %v8484_v39, %v8376_v49  ;;  %v8377_v58 = vadd.f32 %v13286_v4, %v8289_v33 }
 0x6db   : > { %v8601_v44 = vmax.f32 %v8561_v11, 0.0  ;;  %v8562_v2 = vadd.f32 %v8490_v57, %v8379_v41 }
 0x6dc   : > { %v8599_v15 = vmax.f32 %v8559_v9, 0.0  ;;  %v8560_v19 = vadd.f32 %v8486_v31, %v8377_v58 }
 0x6dd   : > { %8637 = vst.msk [vmem:[%s13266_s13 + $0x123] sm:$0xff] %vm581_vm2, %v8601_v44  ;;  %v8602_v28 = vmax.f32 %v8562_v2, 0.0 }
 0x6de   : > { %8635 = vst.msk [vmem:[%s13266_s13 + $0x113] sm:$0xff] %vm581_vm2, %v8599_v15  ;;  %v8600_v48 = vmax.f32 %v8560_v19, 0.0 }
 0x6df   : > { %8639 = vst.msk [vmem:[%s13266_s13 + $0x12b] sm:$0x3f] %vm8638_vm1, %v8602_v28 }
 0x6e0   : > { %8636 = vst.msk [vmem:[%s13266_s13 + $0x11b] sm:$0xff] %vm581_vm2, %v8600_v48 }
 0x6e1 PF: > { %s16_s21 = sadd.s32 1, %s11171_s21  }
 0x6e2   : > { %p13_p4 = scmp.ge.s32.totalorder %s16_s21, 4  }
 0x6e4   :  { %15 = sbr.rel (!%p13_p4) target bundleno = 1 (0x1), region = 90 }

</bundles_post_ra>
